<compile_context>
chip_gen: v7x
topology: tpu7x:2x2x1
jax: 0.10.0
libtpu: 0.0.40
codegen_flags: <defaults>
</compile_context>

<pallas_src>
import jax
import jax.numpy as jnp
from jax.experimental import pallas as pl
from jax.experimental.pallas import tpu as pltpu

# ----------------------- model hyper-parameters (small) -----------------------
NUM_LAYERS = 2
D_MODEL = 32
D_FF = 64
NHEAD = 4
HEAD_DIM = D_MODEL // NHEAD
SEQ = 8          # module requires tgt_len == src_len (value=tgt with key=src)
BATCH = 2
LN_EPS = 1e-5
NEG_INF = -1e30

# Rows of the packed per-layer "vector params" slab (row width = 3*D_MODEL).
(AN_G, AN_B, CN_G, CN_B, FN_G, FN_B,
 SA_B_IN, SA_B_OUT, CA_B_IN, CA_B_OUT, FF_B1, FF_B2) = range(12)
NUM_VEC_ROWS = 12


# ----------------------------- in-kernel helpers ------------------------------
def _layer_norm(x, gamma, beta):
    # x: (BS, D); gamma/beta: (1, D)
    mu = jnp.mean(x, axis=-1, keepdims=True)
    var = jnp.mean(jnp.square(x - mu), axis=-1, keepdims=True)
    return (x - mu) * jax.lax.rsqrt(var + LN_EPS) * gamma + beta


def _mha(qk_in, v_in, w_in, b_in, w_out, b_out, bias, head_buf, same_qkv):
    """Multi-head attention with q_in == k_in (true for both uses of this module).

    w_in: (D, 3D) packed [Wq^T*scale | Wk^T | Wv^T]; b_in: (1, 3D) likewise.
    bias: (BS, BS) additive mask (0 / NEG_INF) covering causal + same-batch.
    head_buf: (BS, D) VMEM scratch used to concatenate head outputs so the
    output projection is a single matmul.
    """
    D = D_MODEL
    if same_qkv:
        qkv = jnp.dot(qk_in, w_in, preferred_element_type=jnp.float32) + b_in
        q, k, v = qkv[:, :D], qkv[:, D:2 * D], qkv[:, 2 * D:]
    else:
        qk = (jnp.dot(qk_in, w_in[:, :2 * D], preferred_element_type=jnp.float32)
              + b_in[:, :2 * D])
        v = (jnp.dot(v_in, w_in[:, 2 * D:], preferred_element_type=jnp.float32)
             + b_in[:, 2 * D:])
        q, k = qk[:, :D], qk[:, D:]
    for h in range(NHEAD):                      # static unroll (NHEAD = 4)
        lo, hi = h * HEAD_DIM, (h + 1) * HEAD_DIM
        s = jnp.dot(q[:, lo:hi], k[:, lo:hi].T,
                    preferred_element_type=jnp.float32) + bias
        s = s - jnp.max(s, axis=-1, keepdims=True)
        p = jnp.exp(s)
        p = p * pl.reciprocal(jnp.sum(p, axis=-1, keepdims=True), approx=True)
        head_buf[:, lo:hi] = jnp.dot(p, v[:, lo:hi],
                                     preferred_element_type=jnp.float32)
    return jnp.dot(head_buf[...], w_out, preferred_element_type=jnp.float32) + b_out


# -------------------------------- Pallas kernel -------------------------------
def decoder_stack_kernel(tgt_ref, src_ref, bias_ref, w_in_ref, w_out_ref,
                         ff1_ref, ff2_ref, vec_ref, out_ref, head_buf):
    D = D_MODEL
    tgt = tgt_ref[...]                          # (B*S, D) folded-batch slab
    src = src_ref[...]
    self_bias = bias_ref[0]                     # hoisted: shared by all heads/layers
    cross_bias = bias_ref[1]

    for l in range(NUM_LAYERS):                 # static unroll over layers
        vec = vec_ref[l]                        # (12, 3D): LN params + biases
        # --- self-attention sub-block: q = k = v = attn_norm(tgt), causal ---
        x = _layer_norm(tgt, vec[AN_G:AN_G + 1, :D], vec[AN_B:AN_B + 1, :D])
        z = _mha(x, x, w_in_ref[l, 0], vec[SA_B_IN:SA_B_IN + 1, :],
                 w_out_ref[l, 0], vec[SA_B_OUT:SA_B_OUT + 1, :D],
                 self_bias, head_buf, same_qkv=True)
        tgt = tgt + z
        # --- cross-attention sub-block: q = k = src, v = cross_attn_norm(tgt) ---
        tgt = _layer_norm(tgt, vec[CN_G:CN_G + 1, :D], vec[CN_B:CN_B + 1, :D])
        z = _mha(src, tgt, w_in_ref[l, 1], vec[CA_B_IN:CA_B_IN + 1, :],
                 w_out_ref[l, 1], vec[CA_B_OUT:CA_B_OUT + 1, :D],
                 cross_bias, head_buf, same_qkv=False)
        tgt = tgt + z
        # --- feed-forward sub-block (exact erf GELU, as nn.GELU default) ---
        tgt = _layer_norm(tgt, vec[FN_G:FN_G + 1, :D], vec[FN_B:FN_B + 1, :D])
        h = (jnp.dot(tgt, ff1_ref[l], preferred_element_type=jnp.float32)
             + vec[FF_B1:FF_B1 + 1, :D_FF])
        h = 0.5 * h * (1.0 + jax.lax.erf(h * 0.7071067811865476))
        tgt = tgt + (jnp.dot(h, ff2_ref[l], preferred_element_type=jnp.float32)
                     + vec[FF_B2:FF_B2 + 1, :D])

    out_ref[...] = tgt


@jax.jit
def transformer_decoder(tgt, src, w_in, w_out, ff1, ff2, vecs):
    B, S, D = tgt.shape
    BS = B * S
    # Additive attention biases, built once outside the kernel (hoisted masks).
    r = jnp.arange(BS, dtype=jnp.int32)
    same = (r[:, None] // S) == (r[None, :] // S)
    causal = r[None, :] <= r[:, None]
    self_bias = jnp.where(same & causal, 0.0, NEG_INF).astype(jnp.float32)
    cross_bias = jnp.where(same, 0.0, NEG_INF).astype(jnp.float32)
    attn_bias = jnp.stack([self_bias, cross_bias])          # (2, BS, BS)

    out = pl.pallas_call(
        decoder_stack_kernel,
        out_shape=jax.ShapeDtypeStruct((BS, D), jnp.float32),
        scratch_shapes=[pltpu.VMEM((BS, D), jnp.float32)],   # head-concat buffer
        compiler_params=pltpu.CompilerParams(vmem_limit_bytes=32 * 1024 * 1024),
    )(tgt.reshape(BS, D), src.reshape(BS, D), attn_bias, w_in, w_out, ff1, ff2, vecs)
    return out.reshape(B, S, D)


# --------------------------- deterministic params -----------------------------
def init_layer_params(key):
    D, F = D_MODEL, D_FF
    ks = jax.random.split(key, 18)

    def w(k, shape):
        return 0.05 * jax.random.normal(k, shape, jnp.float32)

    return {
        "an_g": 1.0 + 0.1 * jax.random.normal(ks[12], (D,), jnp.float32),
        "an_b": 0.1 * jax.random.normal(ks[13], (D,), jnp.float32),
        "sa_in_w": w(ks[0], (3 * D, D)), "sa_in_b": w(ks[1], (3 * D,)),
        "sa_out_w": w(ks[2], (D, D)),    "sa_out_b": w(ks[3], (D,)),
        "cn_g": 1.0 + 0.1 * jax.random.normal(ks[14], (D,), jnp.float32),
        "cn_b": 0.1 * jax.random.normal(ks[15], (D,), jnp.float32),
        "ca_in_w": w(ks[4], (3 * D, D)), "ca_in_b": w(ks[5], (3 * D,)),
        "ca_out_w": w(ks[6], (D, D)),    "ca_out_b": w(ks[7], (D,)),
        "fn_g": 1.0 + 0.1 * jax.random.normal(ks[16], (D,), jnp.float32),
        "fn_b": 0.1 * jax.random.normal(ks[17], (D,), jnp.float32),
        "ff_w1": w(ks[8], (F, D)),  "ff_b1": w(ks[9], (F,)),
        "ff_w2": w(ks[10], (D, F)), "ff_b2": w(ks[11], (D,)),
    }


def pack_params(layer_params):
    """Pack all layers' PyTorch-layout params into 5 dense kernel slabs."""
    D, W = D_MODEL, 3 * D_MODEL
    scale = 1.0 / float(HEAD_DIM) ** 0.5

    def pad_row(v):
        return jnp.pad(v, (0, W - v.shape[0]))

    def pack_in_proj(in_w, in_b):
        # y = x @ in_w.T  ->  packed (D, 3D), 1/sqrt(hd) folded into the q part.
        w_p = jnp.concatenate([in_w[:D] * scale, in_w[D:]], axis=0).T
        b_p = jnp.concatenate([in_b[:D] * scale, in_b[D:]], axis=0)
        return w_p, b_p

    w_in_l, w_out_l, ff1_l, ff2_l, vec_l = [], [], [], [], []
    for p in layer_params:
        sa_w, sa_b = pack_in_proj(p["sa_in_w"], p["sa_in_b"])
        ca_w, ca_b = pack_in_proj(p["ca_in_w"], p["ca_in_b"])
        w_in_l.append(jnp.stack([sa_w, ca_w]))                         # (2, D, 3D)
        w_out_l.append(jnp.stack([p["sa_out_w"].T, p["ca_out_w"].T]))  # (2, D, D)
        ff1_l.append(p["ff_w1"].T)                                     # (D, F)
        ff2_l.append(p["ff_w2"].T)                                     # (F, D)
        rows = [None] * NUM_VEC_ROWS
        rows[AN_G], rows[AN_B] = pad_row(p["an_g"]), pad_row(p["an_b"])
        rows[CN_G], rows[CN_B] = pad_row(p["cn_g"]), pad_row(p["cn_b"])
        rows[FN_G], rows[FN_B] = pad_row(p["fn_g"]), pad_row(p["fn_b"])
        rows[SA_B_IN], rows[SA_B_OUT] = sa_b, pad_row(p["sa_out_b"])
        rows[CA_B_IN], rows[CA_B_OUT] = ca_b, pad_row(p["ca_out_b"])
        rows[FF_B1], rows[FF_B2] = pad_row(p["ff_b1"]), pad_row(p["ff_b2"])
        vec_l.append(jnp.stack(rows))                                  # (12, 3D)
    return (jnp.stack(w_in_l), jnp.stack(w_out_l),
            jnp.stack(ff1_l), jnp.stack(ff2_l), jnp.stack(vec_l))


# ------------------ pure-JAX PyTorch-faithful reference ------------------------
def _ref_layer_norm(x, g, b):
    mu = jnp.mean(x, axis=-1, keepdims=True)
    var = jnp.mean(jnp.square(x - mu), axis=-1, keepdims=True)
    return (x - mu) / jnp.sqrt(var + LN_EPS) * g + b


def _ref_mha(q_in, k_in, v_in, in_w, in_b, out_w, out_b, causal):
    D = D_MODEL
    q = q_in @ in_w[:D].T + in_b[:D]
    k = k_in @ in_w[D:2 * D].T + in_b[D:2 * D]
    v = v_in @ in_w[2 * D:].T + in_b[2 * D:]
    B, S, _ = q.shape

    def heads(x):
        return x.reshape(B, S, NHEAD, HEAD_DIM).transpose(0, 2, 1, 3)

    qh, kh, vh = heads(q), heads(k), heads(v)
    s = jnp.einsum("bhqd,bhkd->bhqk", qh, kh) / (HEAD_DIM ** 0.5)
    if causal:
        m = jnp.tril(jnp.ones((S, S), bool))
        s = jnp.where(m, s, -jnp.inf)
    p = jax.nn.softmax(s, axis=-1)
    o = jnp.einsum("bhqk,bhkd->bhqd", p, vh)
    o = o.transpose(0, 2, 1, 3).reshape(B, S, D)
    return o @ out_w.T + out_b


def ref_decoder(tgt, src, layer_params):
    for p in layer_params:
        x = _ref_layer_norm(tgt, p["an_g"], p["an_b"])
        z = _ref_mha(x, x, x, p["sa_in_w"], p["sa_in_b"],
                     p["sa_out_w"], p["sa_out_b"], causal=True)
        tgt = tgt + z
        tgt = _ref_layer_norm(tgt, p["cn_g"], p["cn_b"])
        z = _ref_mha(src, src, tgt, p["ca_in_w"], p["ca_in_b"],
                     p["ca_out_w"], p["ca_out_b"], causal=False)
        tgt = tgt + z
        tgt = _ref_layer_norm(tgt, p["fn_g"], p["fn_b"])
        h = tgt @ p["ff_w1"].T + p["ff_b1"]
        h = jax.nn.gelu(h, approximate=False)
        tgt = tgt + h @ p["ff_w2"].T + p["ff_b2"]
    return tgt


if __name__ == "__main__":
    key = jax.random.PRNGKey(0)
    k_tgt, k_src, k_p = jax.random.split(key, 3)
    tgt = jax.random.normal(k_tgt, (BATCH, SEQ, D_MODEL), jnp.float32)
    src = jax.random.normal(k_src, (BATCH, SEQ, D_MODEL), jnp.float32)
    layer_keys = jax.random.split(k_p, NUM_LAYERS)
    layer_params = [init_layer_params(k) for k in layer_keys]
    w_in, w_out, ff1, ff2, vecs = pack_params(layer_params)

    out = transformer_decoder(tgt, src, w_in, w_out, ff1, ff2, vecs)
    out = jax.block_until_ready(out)

    ref = ref_decoder(tgt, src, layer_params)
    assert out.shape == (BATCH, SEQ, D_MODEL), out.shape
    err = float(jnp.max(jnp.abs(out - ref)))
    assert err < 5e-3, f"max abs error {err}"
    print("KERNEL_OK")
</pallas_src>

<mosaic_0001>
module attributes {stable_mosaic.version = 11 : i64} {
  func.func @decoder_stack_kernel(%arg0: memref<16x32xf32, #tpu.memory_space<vmem>>, %arg1: memref<16x32xf32, #tpu.memory_space<vmem>>, %arg2: memref<2x16x16xf32, #tpu.memory_space<vmem>>, %arg3: memref<2x2x32x96xf32, #tpu.memory_space<vmem>>, %arg4: memref<2x2x32x32xf32, #tpu.memory_space<vmem>>, %arg5: memref<2x32x64xf32, #tpu.memory_space<vmem>>, %arg6: memref<2x64x32xf32, #tpu.memory_space<vmem>>, %arg7: memref<2x12x96xf32, #tpu.memory_space<vmem>>, %arg8: memref<16x32xf32, #tpu.memory_space<vmem>>, %arg9: memref<16x32xf32, #tpu.memory_space<vmem>>) attributes {dimension_semantics = [], scalar_prefetch = 0 : i64, scratch_operands = 1 : i64, tpu.core_type = #tpu.core_type<tc>} {
    %c0 = arith.constant 0 : index
    %c0_0 = arith.constant 0 : index
    %0 = vector.load %arg0[%c0, %c0_0] : memref<16x32xf32, #tpu.memory_space<vmem>>, vector<16x32xf32>
    %c0_1 = arith.constant 0 : index
    %c0_2 = arith.constant 0 : index
    %1 = vector.load %arg1[%c0_1, %c0_2] : memref<16x32xf32, #tpu.memory_space<vmem>>, vector<16x32xf32>
    %c0_3 = arith.constant 0 : index
    %c0_4 = arith.constant 0 : index
    %c0_5 = arith.constant 0 : index
    %2 = vector.load %arg2[%c0_3, %c0_4, %c0_5] : memref<2x16x16xf32, #tpu.memory_space<vmem>>, vector<1x16x16xf32>
    %3 = vector.shape_cast %2 : vector<1x16x16xf32> to vector<16x16xf32>
    %c1 = arith.constant 1 : index
    %c0_6 = arith.constant 0 : index
    %c0_7 = arith.constant 0 : index
    %4 = vector.load %arg2[%c1, %c0_6, %c0_7] : memref<2x16x16xf32, #tpu.memory_space<vmem>>, vector<1x16x16xf32>
    %5 = vector.shape_cast %4 : vector<1x16x16xf32> to vector<16x16xf32>
    %c0_8 = arith.constant 0 : index
    %c0_9 = arith.constant 0 : index
    %c0_10 = arith.constant 0 : index
    %6 = vector.load %arg7[%c0_8, %c0_9, %c0_10] : memref<2x12x96xf32, #tpu.memory_space<vmem>>, vector<1x12x96xf32>
    %7 = vector.shape_cast %6 : vector<1x12x96xf32> to vector<12x96xf32>
    %8 = vector.extract_strided_slice %7 {offsets = [0, 0], sizes = [1, 32], strides = [1, 1]} : vector<12x96xf32> to vector<1x32xf32>
    %9 = vector.extract_strided_slice %7 {offsets = [1, 0], sizes = [1, 32], strides = [1, 1]} : vector<12x96xf32> to vector<1x32xf32>
    %cst = arith.constant dense<0.000000e+00> : vector<16xf32>
    %10 = vector.multi_reduction <add>, %0, %cst [1] : vector<16x32xf32> to vector<16xf32>
    %11 = vector.shape_cast %10 : vector<16xf32> to vector<16x1xf32>
    %cst_11 = arith.constant 3.200000e+01 : f32
    %12 = vector.broadcast %cst_11 : f32 to vector<16x1xf32>
    %13 = arith.divf %11, %12 : vector<16x1xf32>
    %14 = vector.broadcast %13 : vector<16x1xf32> to vector<16x32xf32>
    %15 = arith.subf %0, %14 : vector<16x32xf32>
    %16 = arith.mulf %15, %15 : vector<16x32xf32>
    %cst_12 = arith.constant dense<0.000000e+00> : vector<16xf32>
    %17 = vector.multi_reduction <add>, %16, %cst_12 [1] : vector<16x32xf32> to vector<16xf32>
    %18 = vector.shape_cast %17 : vector<16xf32> to vector<16x1xf32>
    %cst_13 = arith.constant 3.200000e+01 : f32
    %19 = vector.broadcast %cst_13 : f32 to vector<16x1xf32>
    %20 = arith.divf %18, %19 : vector<16x1xf32>
    %21 = vector.broadcast %13 : vector<16x1xf32> to vector<16x32xf32>
    %22 = arith.subf %0, %21 : vector<16x32xf32>
    %cst_14 = arith.constant 9.99999974E-6 : f32
    %23 = vector.broadcast %cst_14 : f32 to vector<16x1xf32>
    %24 = arith.addf %20, %23 : vector<16x1xf32>
    %25 = math.rsqrt %24 : vector<16x1xf32>
    %26 = vector.broadcast %25 : vector<16x1xf32> to vector<16x32xf32>
    %27 = arith.mulf %22, %26 : vector<16x32xf32>
    %28 = vector.broadcast %8 : vector<1x32xf32> to vector<16x32xf32>
    %29 = arith.mulf %27, %28 : vector<16x32xf32>
    %30 = vector.broadcast %9 : vector<1x32xf32> to vector<16x32xf32>
    %31 = arith.addf %29, %30 : vector<16x32xf32>
    %c0_15 = arith.constant 0 : index
    %c0_16 = arith.constant 0 : index
    %c0_17 = arith.constant 0 : index
    %c0_18 = arith.constant 0 : index
    %32 = vector.load %arg3[%c0_15, %c0_16, %c0_17, %c0_18] : memref<2x2x32x96xf32, #tpu.memory_space<vmem>>, vector<1x1x32x96xf32>
    %33 = vector.shape_cast %32 : vector<1x1x32x96xf32> to vector<32x96xf32>
    %34 = vector.extract_strided_slice %7 {offsets = [6, 0], sizes = [1, 96], strides = [1, 1]} : vector<12x96xf32> to vector<1x96xf32>
    %c0_19 = arith.constant 0 : index
    %c0_20 = arith.constant 0 : index
    %c0_21 = arith.constant 0 : index
    %c0_22 = arith.constant 0 : index
    %35 = vector.load %arg4[%c0_19, %c0_20, %c0_21, %c0_22] : memref<2x2x32x32xf32, #tpu.memory_space<vmem>>, vector<1x1x32x32xf32>
    %36 = vector.shape_cast %35 : vector<1x1x32x32xf32> to vector<32x32xf32>
    %37 = vector.extract_strided_slice %7 {offsets = [7, 0], sizes = [1, 32], strides = [1, 1]} : vector<12x96xf32> to vector<1x32xf32>
    %cst_23 = arith.constant dense<0.000000e+00> : vector<16x96xf32>
    %38 = tpu.matmul %31, %33, %cst_23 {dimension_numbers = #tpu.dot_dimension_numbers<[1], [0], [0], [1], [0, 0, 1, 1], [], []>} : vector<16x32xf32>, vector<32x96xf32>, vector<16x96xf32> -> vector<16x96xf32>
    %39 = vector.broadcast %34 : vector<1x96xf32> to vector<16x96xf32>
    %40 = arith.addf %38, %39 : vector<16x96xf32>
    %41 = vector.extract_strided_slice %40 {offsets = [0, 0], sizes = [16, 32], strides = [1, 1]} : vector<16x96xf32> to vector<16x32xf32>
    %42 = vector.extract_strided_slice %40 {offsets = [0, 32], sizes = [16, 32], strides = [1, 1]} : vector<16x96xf32> to vector<16x32xf32>
    %43 = vector.extract_strided_slice %40 {offsets = [0, 64], sizes = [16, 32], strides = [1, 1]} : vector<16x96xf32> to vector<16x32xf32>
    %44 = vector.extract_strided_slice %41 {offsets = [0, 0], sizes = [16, 8], strides = [1, 1]} : vector<16x32xf32> to vector<16x8xf32>
    %45 = vector.extract_strided_slice %42 {offsets = [0, 0], sizes = [16, 8], strides = [1, 1]} : vector<16x32xf32> to vector<16x8xf32>
    %46 = tpu.transpose %45, [1, 0] : vector<16x8xf32> -> vector<8x16xf32>
    %cst_24 = arith.constant dense<0.000000e+00> : vector<16x16xf32>
    %47 = tpu.matmul %44, %46, %cst_24 {dimension_numbers = #tpu.dot_dimension_numbers<[1], [0], [0], [1], [0, 0, 1, 1], [], []>} : vector<16x8xf32>, vector<8x16xf32>, vector<16x16xf32> -> vector<16x16xf32>
    %48 = arith.addf %47, %3 : vector<16x16xf32>
    %cst_25 = arith.constant dense<0xFF800000> : vector<16xf32>
    %49 = vector.multi_reduction <maximumf>, %48, %cst_25 [1] : vector<16x16xf32> to vector<16xf32>
    %50 = vector.shape_cast %49 : vector<16xf32> to vector<16x1xf32>
    %51 = vector.broadcast %50 : vector<16x1xf32> to vector<16x16xf32>
    %52 = arith.subf %48, %51 : vector<16x16xf32>
    %53 = math.exp %52 : vector<16x16xf32>
    %cst_26 = arith.constant dense<0.000000e+00> : vector<16xf32>
    %54 = vector.multi_reduction <add>, %53, %cst_26 [1] : vector<16x16xf32> to vector<16xf32>
    %55 = vector.shape_cast %54 : vector<16xf32> to vector<16x1xf32>
    %56 = tpu.reciprocal %55 {approx = true} : vector<16x1xf32> -> vector<16x1xf32>
    %57 = vector.broadcast %56 : vector<16x1xf32> to vector<16x16xf32>
    %58 = arith.mulf %53, %57 : vector<16x16xf32>
    %59 = vector.extract_strided_slice %43 {offsets = [0, 0], sizes = [16, 8], strides = [1, 1]} : vector<16x32xf32> to vector<16x8xf32>
    %cst_27 = arith.constant dense<0.000000e+00> : vector<16x8xf32>
    %60 = tpu.matmul %58, %59, %cst_27 {dimension_numbers = #tpu.dot_dimension_numbers<[1], [0], [0], [1], [0, 0, 1, 1], [], []>} : vector<16x16xf32>, vector<16x8xf32>, vector<16x8xf32> -> vector<16x8xf32>
    %c0_28 = arith.constant 0 : index
    %c0_29 = arith.constant 0 : index
    %61 = vector.load %arg9[%c0_28, %c0_29] : memref<16x32xf32, #tpu.memory_space<vmem>>, vector<16x8xf32>
    tpu.vector_store %arg9[%c0_28, %c0_29], %60 {strides = array<i32>} : memref<16x32xf32, #tpu.memory_space<vmem>>, vector<16x8xf32>,
    %62 = vector.extract_strided_slice %41 {offsets = [0, 8], sizes = [16, 8], strides = [1, 1]} : vector<16x32xf32> to vector<16x8xf32>
    %63 = vector.extract_strided_slice %42 {offsets = [0, 8], sizes = [16, 8], strides = [1, 1]} : vector<16x32xf32> to vector<16x8xf32>
    %64 = tpu.transpose %63, [1, 0] : vector<16x8xf32> -> vector<8x16xf32>
    %cst_30 = arith.constant dense<0.000000e+00> : vector<16x16xf32>
    %65 = tpu.matmul %62, %64, %cst_30 {dimension_numbers = #tpu.dot_dimension_numbers<[1], [0], [0], [1], [0, 0, 1, 1], [], []>} : vector<16x8xf32>, vector<8x16xf32>, vector<16x16xf32> -> vector<16x16xf32>
    %66 = arith.addf %65, %3 : vector<16x16xf32>
    %cst_31 = arith.constant dense<0xFF800000> : vector<16xf32>
    %67 = vector.multi_reduction <maximumf>, %66, %cst_31 [1] : vector<16x16xf32> to vector<16xf32>
    %68 = vector.shape_cast %67 : vector<16xf32> to vector<16x1xf32>
    %69 = vector.broadcast %68 : vector<16x1xf32> to vector<16x16xf32>
    %70 = arith.subf %66, %69 : vector<16x16xf32>
    %71 = math.exp %70 : vector<16x16xf32>
    %cst_32 = arith.constant dense<0.000000e+00> : vector<16xf32>
    %72 = vector.multi_reduction <add>, %71, %cst_32 [1] : vector<16x16xf32> to vector<16xf32>
    %73 = vector.shape_cast %72 : vector<16xf32> to vector<16x1xf32>
    %74 = tpu.reciprocal %73 {approx = true} : vector<16x1xf32> -> vector<16x1xf32>
    %75 = vector.broadcast %74 : vector<16x1xf32> to vector<16x16xf32>
    %76 = arith.mulf %71, %75 : vector<16x16xf32>
    %77 = vector.extract_strided_slice %43 {offsets = [0, 8], sizes = [16, 8], strides = [1, 1]} : vector<16x32xf32> to vector<16x8xf32>
    %cst_33 = arith.constant dense<0.000000e+00> : vector<16x8xf32>
    %78 = tpu.matmul %76, %77, %cst_33 {dimension_numbers = #tpu.dot_dimension_numbers<[1], [0], [0], [1], [0, 0, 1, 1], [], []>} : vector<16x16xf32>, vector<16x8xf32>, vector<16x8xf32> -> vector<16x8xf32>
    %c0_34 = arith.constant 0 : index
    %c8 = arith.constant 8 : index
    %79 = vector.load %arg9[%c0_34, %c8] : memref<16x32xf32, #tpu.memory_space<vmem>>, vector<16x8xf32>
    tpu.vector_store %arg9[%c0_34, %c8], %78 {strides = array<i32>} : memref<16x32xf32, #tpu.memory_space<vmem>>, vector<16x8xf32>,
    %80 = vector.extract_strided_slice %41 {offsets = [0, 16], sizes = [16, 8], strides = [1, 1]} : vector<16x32xf32> to vector<16x8xf32>
    %81 = vector.extract_strided_slice %42 {offsets = [0, 16], sizes = [16, 8], strides = [1, 1]} : vector<16x32xf32> to vector<16x8xf32>
    %82 = tpu.transpose %81, [1, 0] : vector<16x8xf32> -> vector<8x16xf32>
    %cst_35 = arith.constant dense<0.000000e+00> : vector<16x16xf32>
    %83 = tpu.matmul %80, %82, %cst_35 {dimension_numbers = #tpu.dot_dimension_numbers<[1], [0], [0], [1], [0, 0, 1, 1], [], []>} : vector<16x8xf32>, vector<8x16xf32>, vector<16x16xf32> -> vector<16x16xf32>
    %84 = arith.addf %83, %3 : vector<16x16xf32>
    %cst_36 = arith.constant dense<0xFF800000> : vector<16xf32>
    %85 = vector.multi_reduction <maximumf>, %84, %cst_36 [1] : vector<16x16xf32> to vector<16xf32>
    %86 = vector.shape_cast %85 : vector<16xf32> to vector<16x1xf32>
    %87 = vector.broadcast %86 : vector<16x1xf32> to vector<16x16xf32>
    %88 = arith.subf %84, %87 : vector<16x16xf32>
    %89 = math.exp %88 : vector<16x16xf32>
    %cst_37 = arith.constant dense<0.000000e+00> : vector<16xf32>
    %90 = vector.multi_reduction <add>, %89, %cst_37 [1] : vector<16x16xf32> to vector<16xf32>
    %91 = vector.shape_cast %90 : vector<16xf32> to vector<16x1xf32>
    %92 = tpu.reciprocal %91 {approx = true} : vector<16x1xf32> -> vector<16x1xf32>
    %93 = vector.broadcast %92 : vector<16x1xf32> to vector<16x16xf32>
    %94 = arith.mulf %89, %93 : vector<16x16xf32>
    %95 = vector.extract_strided_slice %43 {offsets = [0, 16], sizes = [16, 8], strides = [1, 1]} : vector<16x32xf32> to vector<16x8xf32>
    %cst_38 = arith.constant dense<0.000000e+00> : vector<16x8xf32>
    %96 = tpu.matmul %94, %95, %cst_38 {dimension_numbers = #tpu.dot_dimension_numbers<[1], [0], [0], [1], [0, 0, 1, 1], [], []>} : vector<16x16xf32>, vector<16x8xf32>, vector<16x8xf32> -> vector<16x8xf32>
    %c0_39 = arith.constant 0 : index
    %c16 = arith.constant 16 : index
    %97 = vector.load %arg9[%c0_39, %c16] : memref<16x32xf32, #tpu.memory_space<vmem>>, vector<16x8xf32>
    tpu.vector_store %arg9[%c0_39, %c16], %96 {strides = array<i32>} : memref<16x32xf32, #tpu.memory_space<vmem>>, vector<16x8xf32>,
    %98 = vector.extract_strided_slice %41 {offsets = [0, 24], sizes = [16, 8], strides = [1, 1]} : vector<16x32xf32> to vector<16x8xf32>
    %99 = vector.extract_strided_slice %42 {offsets = [0, 24], sizes = [16, 8], strides = [1, 1]} : vector<16x32xf32> to vector<16x8xf32>
    %100 = tpu.transpose %99, [1, 0] : vector<16x8xf32> -> vector<8x16xf32>
    %cst_40 = arith.constant dense<0.000000e+00> : vector<16x16xf32>
    %101 = tpu.matmul %98, %100, %cst_40 {dimension_numbers = #tpu.dot_dimension_numbers<[1], [0], [0], [1], [0, 0, 1, 1], [], []>} : vector<16x8xf32>, vector<8x16xf32>, vector<16x16xf32> -> vector<16x16xf32>
    %102 = arith.addf %101, %3 : vector<16x16xf32>
    %cst_41 = arith.constant dense<0xFF800000> : vector<16xf32>
    %103 = vector.multi_reduction <maximumf>, %102, %cst_41 [1] : vector<16x16xf32> to vector<16xf32>
    %104 = vector.shape_cast %103 : vector<16xf32> to vector<16x1xf32>
    %105 = vector.broadcast %104 : vector<16x1xf32> to vector<16x16xf32>
    %106 = arith.subf %102, %105 : vector<16x16xf32>
    %107 = math.exp %106 : vector<16x16xf32>
    %cst_42 = arith.constant dense<0.000000e+00> : vector<16xf32>
    %108 = vector.multi_reduction <add>, %107, %cst_42 [1] : vector<16x16xf32> to vector<16xf32>
    %109 = vector.shape_cast %108 : vector<16xf32> to vector<16x1xf32>
    %110 = tpu.reciprocal %109 {approx = true} : vector<16x1xf32> -> vector<16x1xf32>
    %111 = vector.broadcast %110 : vector<16x1xf32> to vector<16x16xf32>
    %112 = arith.mulf %107, %111 : vector<16x16xf32>
    %113 = vector.extract_strided_slice %43 {offsets = [0, 24], sizes = [16, 8], strides = [1, 1]} : vector<16x32xf32> to vector<16x8xf32>
    %cst_43 = arith.constant dense<0.000000e+00> : vector<16x8xf32>
    %114 = tpu.matmul %112, %113, %cst_43 {dimension_numbers = #tpu.dot_dimension_numbers<[1], [0], [0], [1], [0, 0, 1, 1], [], []>} : vector<16x16xf32>, vector<16x8xf32>, vector<16x8xf32> -> vector<16x8xf32>
    %c0_44 = arith.constant 0 : index
    %c24 = arith.constant 24 : index
    %115 = vector.load %arg9[%c0_44, %c24] : memref<16x32xf32, #tpu.memory_space<vmem>>, vector<16x8xf32>
    tpu.vector_store %arg9[%c0_44, %c24], %114 {strides = array<i32>} : memref<16x32xf32, #tpu.memory_space<vmem>>, vector<16x8xf32>,
    %c0_45 = arith.constant 0 : index
    %c0_46 = arith.constant 0 : index
    %116 = vector.load %arg9[%c0_45, %c0_46] : memref<16x32xf32, #tpu.memory_space<vmem>>, vector<16x32xf32>
    %cst_47 = arith.constant dense<0.000000e+00> : vector<16x32xf32>
    %117 = tpu.matmul %116, %36, %cst_47 {dimension_numbers = #tpu.dot_dimension_numbers<[1], [0], [0], [1], [0, 0, 1, 1], [], []>} : vector<16x32xf32>, vector<32x32xf32>, vector<16x32xf32> -> vector<16x32xf32>
    %118 = vector.broadcast %37 : vector<1x32xf32> to vector<16x32xf32>
    %119 = arith.addf %117, %118 : vector<16x32xf32>
    %120 = arith.addf %0, %119 : vector<16x32xf32>
    %121 = vector.extract_strided_slice %7 {offsets = [2, 0], sizes = [1, 32], strides = [1, 1]} : vector<12x96xf32> to vector<1x32xf32>
    %122 = vector.extract_strided_slice %7 {offsets = [3, 0], sizes = [1, 32], strides = [1, 1]} : vector<12x96xf32> to vector<1x32xf32>
    %cst_48 = arith.constant dense<0.000000e+00> : vector<16xf32>
    %123 = vector.multi_reduction <add>, %120, %cst_48 [1] : vector<16x32xf32> to vector<16xf32>
    %124 = vector.shape_cast %123 : vector<16xf32> to vector<16x1xf32>
    %cst_49 = arith.constant 3.200000e+01 : f32
    %125 = vector.broadcast %cst_49 : f32 to vector<16x1xf32>
    %126 = arith.divf %124, %125 : vector<16x1xf32>
    %127 = vector.broadcast %126 : vector<16x1xf32> to vector<16x32xf32>
    %128 = arith.subf %120, %127 : vector<16x32xf32>
    %129 = arith.mulf %128, %128 : vector<16x32xf32>
    %cst_50 = arith.constant dense<0.000000e+00> : vector<16xf32>
    %130 = vector.multi_reduction <add>, %129, %cst_50 [1] : vector<16x32xf32> to vector<16xf32>
    %131 = vector.shape_cast %130 : vector<16xf32> to vector<16x1xf32>
    %cst_51 = arith.constant 3.200000e+01 : f32
    %132 = vector.broadcast %cst_51 : f32 to vector<16x1xf32>
    %133 = arith.divf %131, %132 : vector<16x1xf32>
    %134 = vector.broadcast %126 : vector<16x1xf32> to vector<16x32xf32>
    %135 = arith.subf %120, %134 : vector<16x32xf32>
    %cst_52 = arith.constant 9.99999974E-6 : f32
    %136 = vector.broadcast %cst_52 : f32 to vector<16x1xf32>
    %137 = arith.addf %133, %136 : vector<16x1xf32>
    %138 = math.rsqrt %137 : vector<16x1xf32>
    %139 = vector.broadcast %138 : vector<16x1xf32> to vector<16x32xf32>
    %140 = arith.mulf %135, %139 : vector<16x32xf32>
    %141 = vector.broadcast %121 : vector<1x32xf32> to vector<16x32xf32>
    %142 = arith.mulf %140, %141 : vector<16x32xf32>
    %143 = vector.broadcast %122 : vector<1x32xf32> to vector<16x32xf32>
    %144 = arith.addf %142, %143 : vector<16x32xf32>
    %c0_53 = arith.constant 0 : index
    %c1_54 = arith.constant 1 : index
    %c0_55 = arith.constant 0 : index
    %c0_56 = arith.constant 0 : index
    %145 = vector.load %arg3[%c0_53, %c1_54, %c0_55, %c0_56] : memref<2x2x32x96xf32, #tpu.memory_space<vmem>>, vector<1x1x32x96xf32>
    %146 = vector.shape_cast %145 : vector<1x1x32x96xf32> to vector<32x96xf32>
    %147 = vector.extract_strided_slice %7 {offsets = [8, 0], sizes = [1, 96], strides = [1, 1]} : vector<12x96xf32> to vector<1x96xf32>
    %c0_57 = arith.constant 0 : index
    %c1_58 = arith.constant 1 : index
    %c0_59 = arith.constant 0 : index
    %c0_60 = arith.constant 0 : index
    %148 = vector.load %arg4[%c0_57, %c1_58, %c0_59, %c0_60] : memref<2x2x32x32xf32, #tpu.memory_space<vmem>>, vector<1x1x32x32xf32>
    %149 = vector.shape_cast %148 : vector<1x1x32x32xf32> to vector<32x32xf32>
    %150 = vector.extract_strided_slice %7 {offsets = [9, 0], sizes = [1, 32], strides = [1, 1]} : vector<12x96xf32> to vector<1x32xf32>
    %151 = vector.extract_strided_slice %146 {offsets = [0, 0], sizes = [32, 64], strides = [1, 1]} : vector<32x96xf32> to vector<32x64xf32>
    %cst_61 = arith.constant dense<0.000000e+00> : vector<16x64xf32>
    %152 = tpu.matmul %1, %151, %cst_61 {dimension_numbers = #tpu.dot_dimension_numbers<[1], [0], [0], [1], [0, 0, 1, 1], [], []>} : vector<16x32xf32>, vector<32x64xf32>, vector<16x64xf32> -> vector<16x64xf32>
    %153 = vector.extract_strided_slice %147 {offsets = [0, 0], sizes = [1, 64], strides = [1, 1]} : vector<1x96xf32> to vector<1x64xf32>
    %154 = vector.broadcast %153 : vector<1x64xf32> to vector<16x64xf32>
    %155 = arith.addf %152, %154 : vector<16x64xf32>
    %156 = vector.extract_strided_slice %146 {offsets = [0, 64], sizes = [32, 32], strides = [1, 1]} : vector<32x96xf32> to vector<32x32xf32>
    %cst_62 = arith.constant dense<0.000000e+00> : vector<16x32xf32>
    %157 = tpu.matmul %144, %156, %cst_62 {dimension_numbers = #tpu.dot_dimension_numbers<[1], [0], [0], [1], [0, 0, 1, 1], [], []>} : vector<16x32xf32>, vector<32x32xf32>, vector<16x32xf32> -> vector<16x32xf32>
    %158 = vector.extract_strided_slice %147 {offsets = [0, 64], sizes = [1, 32], strides = [1, 1]} : vector<1x96xf32> to vector<1x32xf32>
    %159 = vector.broadcast %158 : vector<1x32xf32> to vector<16x32xf32>
    %160 = arith.addf %157, %159 : vector<16x32xf32>
    %161 = vector.extract_strided_slice %155 {offsets = [0, 0], sizes = [16, 32], strides = [1, 1]} : vector<16x64xf32> to vector<16x32xf32>
    %162 = vector.extract_strided_slice %155 {offsets = [0, 32], sizes = [16, 32], strides = [1, 1]} : vector<16x64xf32> to vector<16x32xf32>
    %163 = vector.extract_strided_slice %161 {offsets = [0, 0], sizes = [16, 8], strides = [1, 1]} : vector<16x32xf32> to vector<16x8xf32>
    %164 = vector.extract_strided_slice %162 {offsets = [0, 0], sizes = [16, 8], strides = [1, 1]} : vector<16x32xf32> to vector<16x8xf32>
    %165 = tpu.transpose %164, [1, 0] : vector<16x8xf32> -> vector<8x16xf32>
    %cst_63 = arith.constant dense<0.000000e+00> : vector<16x16xf32>
    %166 = tpu.matmul %163, %165, %cst_63 {dimension_numbers = #tpu.dot_dimension_numbers<[1], [0], [0], [1], [0, 0, 1, 1], [], []>} : vector<16x8xf32>, vector<8x16xf32>, vector<16x16xf32> -> vector<16x16xf32>
    %167 = arith.addf %166, %5 : vector<16x16xf32>
    %cst_64 = arith.constant dense<0xFF800000> : vector<16xf32>
    %168 = vector.multi_reduction <maximumf>, %167, %cst_64 [1] : vector<16x16xf32> to vector<16xf32>
    %169 = vector.shape_cast %168 : vector<16xf32> to vector<16x1xf32>
    %170 = vector.broadcast %169 : vector<16x1xf32> to vector<16x16xf32>
    %171 = arith.subf %167, %170 : vector<16x16xf32>
    %172 = math.exp %171 : vector<16x16xf32>
    %cst_65 = arith.constant dense<0.000000e+00> : vector<16xf32>
    %173 = vector.multi_reduction <add>, %172, %cst_65 [1] : vector<16x16xf32> to vector<16xf32>
    %174 = vector.shape_cast %173 : vector<16xf32> to vector<16x1xf32>
    %175 = tpu.reciprocal %174 {approx = true} : vector<16x1xf32> -> vector<16x1xf32>
    %176 = vector.broadcast %175 : vector<16x1xf32> to vector<16x16xf32>
    %177 = arith.mulf %172, %176 : vector<16x16xf32>
    %178 = vector.extract_strided_slice %160 {offsets = [0, 0], sizes = [16, 8], strides = [1, 1]} : vector<16x32xf32> to vector<16x8xf32>
    %cst_66 = arith.constant dense<0.000000e+00> : vector<16x8xf32>
    %179 = tpu.matmul %177, %178, %cst_66 {dimension_numbers = #tpu.dot_dimension_numbers<[1], [0], [0], [1], [0, 0, 1, 1], [], []>} : vector<16x16xf32>, vector<16x8xf32>, vector<16x8xf32> -> vector<16x8xf32>
    %c0_67 = arith.constant 0 : index
    %c0_68 = arith.constant 0 : index
    %180 = vector.load %arg9[%c0_67, %c0_68] : memref<16x32xf32, #tpu.memory_space<vmem>>, vector<16x8xf32>
    tpu.vector_store %arg9[%c0_67, %c0_68], %179 {strides = array<i32>} : memref<16x32xf32, #tpu.memory_space<vmem>>, vector<16x8xf32>,
    %181 = vector.extract_strided_slice %161 {offsets = [0, 8], sizes = [16, 8], strides = [1, 1]} : vector<16x32xf32> to vector<16x8xf32>
    %182 = vector.extract_strided_slice %162 {offsets = [0, 8], sizes = [16, 8], strides = [1, 1]} : vector<16x32xf32> to vector<16x8xf32>
    %183 = tpu.transpose %182, [1, 0] : vector<16x8xf32> -> vector<8x16xf32>
    %cst_69 = arith.constant dense<0.000000e+00> : vector<16x16xf32>
    %184 = tpu.matmul %181, %183, %cst_69 {dimension_numbers = #tpu.dot_dimension_numbers<[1], [0], [0], [1], [0, 0, 1, 1], [], []>} : vector<16x8xf32>, vector<8x16xf32>, vector<16x16xf32> -> vector<16x16xf32>
    %185 = arith.addf %184, %5 : vector<16x16xf32>
    %cst_70 = arith.constant dense<0xFF800000> : vector<16xf32>
    %186 = vector.multi_reduction <maximumf>, %185, %cst_70 [1] : vector<16x16xf32> to vector<16xf32>
    %187 = vector.shape_cast %186 : vector<16xf32> to vector<16x1xf32>
    %188 = vector.broadcast %187 : vector<16x1xf32> to vector<16x16xf32>
    %189 = arith.subf %185, %188 : vector<16x16xf32>
    %190 = math.exp %189 : vector<16x16xf32>
    %cst_71 = arith.constant dense<0.000000e+00> : vector<16xf32>
    %191 = vector.multi_reduction <add>, %190, %cst_71 [1] : vector<16x16xf32> to vector<16xf32>
    %192 = vector.shape_cast %191 : vector<16xf32> to vector<16x1xf32>
    %193 = tpu.reciprocal %192 {approx = true} : vector<16x1xf32> -> vector<16x1xf32>
    %194 = vector.broadcast %193 : vector<16x1xf32> to vector<16x16xf32>
    %195 = arith.mulf %190, %194 : vector<16x16xf32>
    %196 = vector.extract_strided_slice %160 {offsets = [0, 8], sizes = [16, 8], strides = [1, 1]} : vector<16x32xf32> to vector<16x8xf32>
    %cst_72 = arith.constant dense<0.000000e+00> : vector<16x8xf32>
    %197 = tpu.matmul %195, %196, %cst_72 {dimension_numbers = #tpu.dot_dimension_numbers<[1], [0], [0], [1], [0, 0, 1, 1], [], []>} : vector<16x16xf32>, vector<16x8xf32>, vector<16x8xf32> -> vector<16x8xf32>
    %c0_73 = arith.constant 0 : index
    %c8_74 = arith.constant 8 : index
    %198 = vector.load %arg9[%c0_73, %c8_74] : memref<16x32xf32, #tpu.memory_space<vmem>>, vector<16x8xf32>
    tpu.vector_store %arg9[%c0_73, %c8_74], %197 {strides = array<i32>} : memref<16x32xf32, #tpu.memory_space<vmem>>, vector<16x8xf32>,
    %199 = vector.extract_strided_slice %161 {offsets = [0, 16], sizes = [16, 8], strides = [1, 1]} : vector<16x32xf32> to vector<16x8xf32>
    %200 = vector.extract_strided_slice %162 {offsets = [0, 16], sizes = [16, 8], strides = [1, 1]} : vector<16x32xf32> to vector<16x8xf32>
    %201 = tpu.transpose %200, [1, 0] : vector<16x8xf32> -> vector<8x16xf32>
    %cst_75 = arith.constant dense<0.000000e+00> : vector<16x16xf32>
    %202 = tpu.matmul %199, %201, %cst_75 {dimension_numbers = #tpu.dot_dimension_numbers<[1], [0], [0], [1], [0, 0, 1, 1], [], []>} : vector<16x8xf32>, vector<8x16xf32>, vector<16x16xf32> -> vector<16x16xf32>
    %203 = arith.addf %202, %5 : vector<16x16xf32>
    %cst_76 = arith.constant dense<0xFF800000> : vector<16xf32>
    %204 = vector.multi_reduction <maximumf>, %203, %cst_76 [1] : vector<16x16xf32> to vector<16xf32>
    %205 = vector.shape_cast %204 : vector<16xf32> to vector<16x1xf32>
    %206 = vector.broadcast %205 : vector<16x1xf32> to vector<16x16xf32>
    %207 = arith.subf %203, %206 : vector<16x16xf32>
    %208 = math.exp %207 : vector<16x16xf32>
    %cst_77 = arith.constant dense<0.000000e+00> : vector<16xf32>
    %209 = vector.multi_reduction <add>, %208, %cst_77 [1] : vector<16x16xf32> to vector<16xf32>
    %210 = vector.shape_cast %209 : vector<16xf32> to vector<16x1xf32>
    %211 = tpu.reciprocal %210 {approx = true} : vector<16x1xf32> -> vector<16x1xf32>
    %212 = vector.broadcast %211 : vector<16x1xf32> to vector<16x16xf32>
    %213 = arith.mulf %208, %212 : vector<16x16xf32>
    %214 = vector.extract_strided_slice %160 {offsets = [0, 16], sizes = [16, 8], strides = [1, 1]} : vector<16x32xf32> to vector<16x8xf32>
    %cst_78 = arith.constant dense<0.000000e+00> : vector<16x8xf32>
    %215 = tpu.matmul %213, %214, %cst_78 {dimension_numbers = #tpu.dot_dimension_numbers<[1], [0], [0], [1], [0, 0, 1, 1], [], []>} : vector<16x16xf32>, vector<16x8xf32>, vector<16x8xf32> -> vector<16x8xf32>
    %c0_79 = arith.constant 0 : index
    %c16_80 = arith.constant 16 : index
    %216 = vector.load %arg9[%c0_79, %c16_80] : memref<16x32xf32, #tpu.memory_space<vmem>>, vector<16x8xf32>
    tpu.vector_store %arg9[%c0_79, %c16_80], %215 {strides = array<i32>} : memref<16x32xf32, #tpu.memory_space<vmem>>, vector<16x8xf32>,
    %217 = vector.extract_strided_slice %161 {offsets = [0, 24], sizes = [16, 8], strides = [1, 1]} : vector<16x32xf32> to vector<16x8xf32>
    %218 = vector.extract_strided_slice %162 {offsets = [0, 24], sizes = [16, 8], strides = [1, 1]} : vector<16x32xf32> to vector<16x8xf32>
    %219 = tpu.transpose %218, [1, 0] : vector<16x8xf32> -> vector<8x16xf32>
    %cst_81 = arith.constant dense<0.000000e+00> : vector<16x16xf32>
    %220 = tpu.matmul %217, %219, %cst_81 {dimension_numbers = #tpu.dot_dimension_numbers<[1], [0], [0], [1], [0, 0, 1, 1], [], []>} : vector<16x8xf32>, vector<8x16xf32>, vector<16x16xf32> -> vector<16x16xf32>
    %221 = arith.addf %220, %5 : vector<16x16xf32>
    %cst_82 = arith.constant dense<0xFF800000> : vector<16xf32>
    %222 = vector.multi_reduction <maximumf>, %221, %cst_82 [1] : vector<16x16xf32> to vector<16xf32>
    %223 = vector.shape_cast %222 : vector<16xf32> to vector<16x1xf32>
    %224 = vector.broadcast %223 : vector<16x1xf32> to vector<16x16xf32>
    %225 = arith.subf %221, %224 : vector<16x16xf32>
    %226 = math.exp %225 : vector<16x16xf32>
    %cst_83 = arith.constant dense<0.000000e+00> : vector<16xf32>
    %227 = vector.multi_reduction <add>, %226, %cst_83 [1] : vector<16x16xf32> to vector<16xf32>
    %228 = vector.shape_cast %227 : vector<16xf32> to vector<16x1xf32>
    %229 = tpu.reciprocal %228 {approx = true} : vector<16x1xf32> -> vector<16x1xf32>
    %230 = vector.broadcast %229 : vector<16x1xf32> to vector<16x16xf32>
    %231 = arith.mulf %226, %230 : vector<16x16xf32>
    %232 = vector.extract_strided_slice %160 {offsets = [0, 24], sizes = [16, 8], strides = [1, 1]} : vector<16x32xf32> to vector<16x8xf32>
    %cst_84 = arith.constant dense<0.000000e+00> : vector<16x8xf32>
    %233 = tpu.matmul %231, %232, %cst_84 {dimension_numbers = #tpu.dot_dimension_numbers<[1], [0], [0], [1], [0, 0, 1, 1], [], []>} : vector<16x16xf32>, vector<16x8xf32>, vector<16x8xf32> -> vector<16x8xf32>
    %c0_85 = arith.constant 0 : index
    %c24_86 = arith.constant 24 : index
    %234 = vector.load %arg9[%c0_85, %c24_86] : memref<16x32xf32, #tpu.memory_space<vmem>>, vector<16x8xf32>
    tpu.vector_store %arg9[%c0_85, %c24_86], %233 {strides = array<i32>} : memref<16x32xf32, #tpu.memory_space<vmem>>, vector<16x8xf32>,
    %c0_87 = arith.constant 0 : index
    %c0_88 = arith.constant 0 : index
    %235 = vector.load %arg9[%c0_87, %c0_88] : memref<16x32xf32, #tpu.memory_space<vmem>>, vector<16x32xf32>
    %cst_89 = arith.constant dense<0.000000e+00> : vector<16x32xf32>
    %236 = tpu.matmul %235, %149, %cst_89 {dimension_numbers = #tpu.dot_dimension_numbers<[1], [0], [0], [1], [0, 0, 1, 1], [], []>} : vector<16x32xf32>, vector<32x32xf32>, vector<16x32xf32> -> vector<16x32xf32>
    %237 = vector.broadcast %150 : vector<1x32xf32> to vector<16x32xf32>
    %238 = arith.addf %236, %237 : vector<16x32xf32>
    %239 = arith.addf %144, %238 : vector<16x32xf32>
    %240 = vector.extract_strided_slice %7 {offsets = [4, 0], sizes = [1, 32], strides = [1, 1]} : vector<12x96xf32> to vector<1x32xf32>
    %241 = vector.extract_strided_slice %7 {offsets = [5, 0], sizes = [1, 32], strides = [1, 1]} : vector<12x96xf32> to vector<1x32xf32>
    %cst_90 = arith.constant dense<0.000000e+00> : vector<16xf32>
    %242 = vector.multi_reduction <add>, %239, %cst_90 [1] : vector<16x32xf32> to vector<16xf32>
    %243 = vector.shape_cast %242 : vector<16xf32> to vector<16x1xf32>
    %cst_91 = arith.constant 3.200000e+01 : f32
    %244 = vector.broadcast %cst_91 : f32 to vector<16x1xf32>
    %245 = arith.divf %243, %244 : vector<16x1xf32>
    %246 = vector.broadcast %245 : vector<16x1xf32> to vector<16x32xf32>
    %247 = arith.subf %239, %246 : vector<16x32xf32>
    %248 = arith.mulf %247, %247 : vector<16x32xf32>
    %cst_92 = arith.constant dense<0.000000e+00> : vector<16xf32>
    %249 = vector.multi_reduction <add>, %248, %cst_92 [1] : vector<16x32xf32> to vector<16xf32>
    %250 = vector.shape_cast %249 : vector<16xf32> to vector<16x1xf32>
    %cst_93 = arith.constant 3.200000e+01 : f32
    %251 = vector.broadcast %cst_93 : f32 to vector<16x1xf32>
    %252 = arith.divf %250, %251 : vector<16x1xf32>
    %253 = vector.broadcast %245 : vector<16x1xf32> to vector<16x32xf32>
    %254 = arith.subf %239, %253 : vector<16x32xf32>
    %cst_94 = arith.constant 9.99999974E-6 : f32
    %255 = vector.broadcast %cst_94 : f32 to vector<16x1xf32>
    %256 = arith.addf %252, %255 : vector<16x1xf32>
    %257 = math.rsqrt %256 : vector<16x1xf32>
    %258 = vector.broadcast %257 : vector<16x1xf32> to vector<16x32xf32>
    %259 = arith.mulf %254, %258 : vector<16x32xf32>
    %260 = vector.broadcast %240 : vector<1x32xf32> to vector<16x32xf32>
    %261 = arith.mulf %259, %260 : vector<16x32xf32>
    %262 = vector.broadcast %241 : vector<1x32xf32> to vector<16x32xf32>
    %263 = arith.addf %261, %262 : vector<16x32xf32>
    %c0_95 = arith.constant 0 : index
    %c0_96 = arith.constant 0 : index
    %c0_97 = arith.constant 0 : index
    %264 = vector.load %arg5[%c0_95, %c0_96, %c0_97] : memref<2x32x64xf32, #tpu.memory_space<vmem>>, vector<1x32x64xf32>
    %265 = vector.shape_cast %264 : vector<1x32x64xf32> to vector<32x64xf32>
    %cst_98 = arith.constant dense<0.000000e+00> : vector<16x64xf32>
    %266 = tpu.matmul %263, %265, %cst_98 {dimension_numbers = #tpu.dot_dimension_numbers<[1], [0], [0], [1], [0, 0, 1, 1], [], []>} : vector<16x32xf32>, vector<32x64xf32>, vector<16x64xf32> -> vector<16x64xf32>
    %267 = vector.extract_strided_slice %7 {offsets = [10, 0], sizes = [1, 64], strides = [1, 1]} : vector<12x96xf32> to vector<1x64xf32>
    %268 = vector.broadcast %267 : vector<1x64xf32> to vector<16x64xf32>
    %269 = arith.addf %266, %268 : vector<16x64xf32>
    %cst_99 = arith.constant 5.000000e-01 : f32
    %270 = vector.broadcast %cst_99 : f32 to vector<16x64xf32>
    %271 = arith.mulf %270, %269 : vector<16x64xf32>
    %cst_100 = arith.constant 0.707106769 : f32
    %272 = vector.broadcast %cst_100 : f32 to vector<16x64xf32>
    %273 = arith.mulf %269, %272 : vector<16x64xf32>
    %274 = math.erf %273 : vector<16x64xf32>
    %cst_101 = arith.constant 1.000000e+00 : f32
    %275 = vector.broadcast %cst_101 : f32 to vector<16x64xf32>
    %276 = arith.addf %275, %274 : vector<16x64xf32>
    %277 = arith.mulf %271, %276 : vector<16x64xf32>
    %c0_102 = arith.constant 0 : index
    %c0_103 = arith.constant 0 : index
    %c0_104 = arith.constant 0 : index
    %278 = vector.load %arg6[%c0_102, %c0_103, %c0_104] : memref<2x64x32xf32, #tpu.memory_space<vmem>>, vector<1x64x32xf32>
    %279 = vector.shape_cast %278 : vector<1x64x32xf32> to vector<64x32xf32>
    %cst_105 = arith.constant dense<0.000000e+00> : vector<16x32xf32>
    %280 = tpu.matmul %277, %279, %cst_105 {dimension_numbers = #tpu.dot_dimension_numbers<[1], [0], [0], [1], [0, 0, 1, 1], [], []>} : vector<16x64xf32>, vector<64x32xf32>, vector<16x32xf32> -> vector<16x32xf32>
    %281 = vector.extract_strided_slice %7 {offsets = [11, 0], sizes = [1, 32], strides = [1, 1]} : vector<12x96xf32> to vector<1x32xf32>
    %282 = vector.broadcast %281 : vector<1x32xf32> to vector<16x32xf32>
    %283 = arith.addf %280, %282 : vector<16x32xf32>
    %284 = arith.addf %263, %283 : vector<16x32xf32>
    %c1_106 = arith.constant 1 : index
    %c0_107 = arith.constant 0 : index
    %c0_108 = arith.constant 0 : index
    %285 = vector.load %arg7[%c1_106, %c0_107, %c0_108] : memref<2x12x96xf32, #tpu.memory_space<vmem>>, vector<1x12x96xf32>
    %286 = vector.shape_cast %285 : vector<1x12x96xf32> to vector<12x96xf32>
    %287 = vector.extract_strided_slice %286 {offsets = [0, 0], sizes = [1, 32], strides = [1, 1]} : vector<12x96xf32> to vector<1x32xf32>
    %288 = vector.extract_strided_slice %286 {offsets = [1, 0], sizes = [1, 32], strides = [1, 1]} : vector<12x96xf32> to vector<1x32xf32>
    %cst_109 = arith.constant dense<0.000000e+00> : vector<16xf32>
    %289 = vector.multi_reduction <add>, %284, %cst_109 [1] : vector<16x32xf32> to vector<16xf32>
    %290 = vector.shape_cast %289 : vector<16xf32> to vector<16x1xf32>
    %cst_110 = arith.constant 3.200000e+01 : f32
    %291 = vector.broadcast %cst_110 : f32 to vector<16x1xf32>
    %292 = arith.divf %290, %291 : vector<16x1xf32>
    %293 = vector.broadcast %292 : vector<16x1xf32> to vector<16x32xf32>
    %294 = arith.subf %284, %293 : vector<16x32xf32>
    %295 = arith.mulf %294, %294 : vector<16x32xf32>
    %cst_111 = arith.constant dense<0.000000e+00> : vector<16xf32>
    %296 = vector.multi_reduction <add>, %295, %cst_111 [1] : vector<16x32xf32> to vector<16xf32>
    %297 = vector.shape_cast %296 : vector<16xf32> to vector<16x1xf32>
    %cst_112 = arith.constant 3.200000e+01 : f32
    %298 = vector.broadcast %cst_112 : f32 to vector<16x1xf32>
    %299 = arith.divf %297, %298 : vector<16x1xf32>
    %300 = vector.broadcast %292 : vector<16x1xf32> to vector<16x32xf32>
    %301 = arith.subf %284, %300 : vector<16x32xf32>
    %cst_113 = arith.constant 9.99999974E-6 : f32
    %302 = vector.broadcast %cst_113 : f32 to vector<16x1xf32>
    %303 = arith.addf %299, %302 : vector<16x1xf32>
    %304 = math.rsqrt %303 : vector<16x1xf32>
    %305 = vector.broadcast %304 : vector<16x1xf32> to vector<16x32xf32>
    %306 = arith.mulf %301, %305 : vector<16x32xf32>
    %307 = vector.broadcast %287 : vector<1x32xf32> to vector<16x32xf32>
    %308 = arith.mulf %306, %307 : vector<16x32xf32>
    %309 = vector.broadcast %288 : vector<1x32xf32> to vector<16x32xf32>
    %310 = arith.addf %308, %309 : vector<16x32xf32>
    %c1_114 = arith.constant 1 : index
    %c0_115 = arith.constant 0 : index
    %c0_116 = arith.constant 0 : index
    %c0_117 = arith.constant 0 : index
    %311 = vector.load %arg3[%c1_114, %c0_115, %c0_116, %c0_117] : memref<2x2x32x96xf32, #tpu.memory_space<vmem>>, vector<1x1x32x96xf32>
    %312 = vector.shape_cast %311 : vector<1x1x32x96xf32> to vector<32x96xf32>
    %313 = vector.extract_strided_slice %286 {offsets = [6, 0], sizes = [1, 96], strides = [1, 1]} : vector<12x96xf32> to vector<1x96xf32>
    %c1_118 = arith.constant 1 : index
    %c0_119 = arith.constant 0 : index
    %c0_120 = arith.constant 0 : index
    %c0_121 = arith.constant 0 : index
    %314 = vector.load %arg4[%c1_118, %c0_119, %c0_120, %c0_121] : memref<2x2x32x32xf32, #tpu.memory_space<vmem>>, vector<1x1x32x32xf32>
    %315 = vector.shape_cast %314 : vector<1x1x32x32xf32> to vector<32x32xf32>
    %316 = vector.extract_strided_slice %286 {offsets = [7, 0], sizes = [1, 32], strides = [1, 1]} : vector<12x96xf32> to vector<1x32xf32>
    %cst_122 = arith.constant dense<0.000000e+00> : vector<16x96xf32>
    %317 = tpu.matmul %310, %312, %cst_122 {dimension_numbers = #tpu.dot_dimension_numbers<[1], [0], [0], [1], [0, 0, 1, 1], [], []>} : vector<16x32xf32>, vector<32x96xf32>, vector<16x96xf32> -> vector<16x96xf32>
    %318 = vector.broadcast %313 : vector<1x96xf32> to vector<16x96xf32>
    %319 = arith.addf %317, %318 : vector<16x96xf32>
    %320 = vector.extract_strided_slice %319 {offsets = [0, 0], sizes = [16, 32], strides = [1, 1]} : vector<16x96xf32> to vector<16x32xf32>
    %321 = vector.extract_strided_slice %319 {offsets = [0, 32], sizes = [16, 32], strides = [1, 1]} : vector<16x96xf32> to vector<16x32xf32>
    %322 = vector.extract_strided_slice %319 {offsets = [0, 64], sizes = [16, 32], strides = [1, 1]} : vector<16x96xf32> to vector<16x32xf32>
    %323 = vector.extract_strided_slice %320 {offsets = [0, 0], sizes = [16, 8], strides = [1, 1]} : vector<16x32xf32> to vector<16x8xf32>
    %324 = vector.extract_strided_slice %321 {offsets = [0, 0], sizes = [16, 8], strides = [1, 1]} : vector<16x32xf32> to vector<16x8xf32>
    %325 = tpu.transpose %324, [1, 0] : vector<16x8xf32> -> vector<8x16xf32>
    %cst_123 = arith.constant dense<0.000000e+00> : vector<16x16xf32>
    %326 = tpu.matmul %323, %325, %cst_123 {dimension_numbers = #tpu.dot_dimension_numbers<[1], [0], [0], [1], [0, 0, 1, 1], [], []>} : vector<16x8xf32>, vector<8x16xf32>, vector<16x16xf32> -> vector<16x16xf32>
    %327 = arith.addf %326, %3 : vector<16x16xf32>
    %cst_124 = arith.constant dense<0xFF800000> : vector<16xf32>
    %328 = vector.multi_reduction <maximumf>, %327, %cst_124 [1] : vector<16x16xf32> to vector<16xf32>
    %329 = vector.shape_cast %328 : vector<16xf32> to vector<16x1xf32>
    %330 = vector.broadcast %329 : vector<16x1xf32> to vector<16x16xf32>
    %331 = arith.subf %327, %330 : vector<16x16xf32>
    %332 = math.exp %331 : vector<16x16xf32>
    %cst_125 = arith.constant dense<0.000000e+00> : vector<16xf32>
    %333 = vector.multi_reduction <add>, %332, %cst_125 [1] : vector<16x16xf32> to vector<16xf32>
    %334 = vector.shape_cast %333 : vector<16xf32> to vector<16x1xf32>
    %335 = tpu.reciprocal %334 {approx = true} : vector<16x1xf32> -> vector<16x1xf32>
    %336 = vector.broadcast %335 : vector<16x1xf32> to vector<16x16xf32>
    %337 = arith.mulf %332, %336 : vector<16x16xf32>
    %338 = vector.extract_strided_slice %322 {offsets = [0, 0], sizes = [16, 8], strides = [1, 1]} : vector<16x32xf32> to vector<16x8xf32>
    %cst_126 = arith.constant dense<0.000000e+00> : vector<16x8xf32>
    %339 = tpu.matmul %337, %338, %cst_126 {dimension_numbers = #tpu.dot_dimension_numbers<[1], [0], [0], [1], [0, 0, 1, 1], [], []>} : vector<16x16xf32>, vector<16x8xf32>, vector<16x8xf32> -> vector<16x8xf32>
    %c0_127 = arith.constant 0 : index
    %c0_128 = arith.constant 0 : index
    %340 = vector.load %arg9[%c0_127, %c0_128] : memref<16x32xf32, #tpu.memory_space<vmem>>, vector<16x8xf32>
    tpu.vector_store %arg9[%c0_127, %c0_128], %339 {strides = array<i32>} : memref<16x32xf32, #tpu.memory_space<vmem>>, vector<16x8xf32>,
    %341 = vector.extract_strided_slice %320 {offsets = [0, 8], sizes = [16, 8], strides = [1, 1]} : vector<16x32xf32> to vector<16x8xf32>
    %342 = vector.extract_strided_slice %321 {offsets = [0, 8], sizes = [16, 8], strides = [1, 1]} : vector<16x32xf32> to vector<16x8xf32>
    %343 = tpu.transpose %342, [1, 0] : vector<16x8xf32> -> vector<8x16xf32>
    %cst_129 = arith.constant dense<0.000000e+00> : vector<16x16xf32>
    %344 = tpu.matmul %341, %343, %cst_129 {dimension_numbers = #tpu.dot_dimension_numbers<[1], [0], [0], [1], [0, 0, 1, 1], [], []>} : vector<16x8xf32>, vector<8x16xf32>, vector<16x16xf32> -> vector<16x16xf32>
    %345 = arith.addf %344, %3 : vector<16x16xf32>
    %cst_130 = arith.constant dense<0xFF800000> : vector<16xf32>
    %346 = vector.multi_reduction <maximumf>, %345, %cst_130 [1] : vector<16x16xf32> to vector<16xf32>
    %347 = vector.shape_cast %346 : vector<16xf32> to vector<16x1xf32>
    %348 = vector.broadcast %347 : vector<16x1xf32> to vector<16x16xf32>
    %349 = arith.subf %345, %348 : vector<16x16xf32>
    %350 = math.exp %349 : vector<16x16xf32>
    %cst_131 = arith.constant dense<0.000000e+00> : vector<16xf32>
    %351 = vector.multi_reduction <add>, %350, %cst_131 [1] : vector<16x16xf32> to vector<16xf32>
    %352 = vector.shape_cast %351 : vector<16xf32> to vector<16x1xf32>
    %353 = tpu.reciprocal %352 {approx = true} : vector<16x1xf32> -> vector<16x1xf32>
    %354 = vector.broadcast %353 : vector<16x1xf32> to vector<16x16xf32>
    %355 = arith.mulf %350, %354 : vector<16x16xf32>
    %356 = vector.extract_strided_slice %322 {offsets = [0, 8], sizes = [16, 8], strides = [1, 1]} : vector<16x32xf32> to vector<16x8xf32>
    %cst_132 = arith.constant dense<0.000000e+00> : vector<16x8xf32>
    %357 = tpu.matmul %355, %356, %cst_132 {dimension_numbers = #tpu.dot_dimension_numbers<[1], [0], [0], [1], [0, 0, 1, 1], [], []>} : vector<16x16xf32>, vector<16x8xf32>, vector<16x8xf32> -> vector<16x8xf32>
    %c0_133 = arith.constant 0 : index
    %c8_134 = arith.constant 8 : index
    %358 = vector.load %arg9[%c0_133, %c8_134] : memref<16x32xf32, #tpu.memory_space<vmem>>, vector<16x8xf32>
    tpu.vector_store %arg9[%c0_133, %c8_134], %357 {strides = array<i32>} : memref<16x32xf32, #tpu.memory_space<vmem>>, vector<16x8xf32>,
    %359 = vector.extract_strided_slice %320 {offsets = [0, 16], sizes = [16, 8], strides = [1, 1]} : vector<16x32xf32> to vector<16x8xf32>
    %360 = vector.extract_strided_slice %321 {offsets = [0, 16], sizes = [16, 8], strides = [1, 1]} : vector<16x32xf32> to vector<16x8xf32>
    %361 = tpu.transpose %360, [1, 0] : vector<16x8xf32> -> vector<8x16xf32>
    %cst_135 = arith.constant dense<0.000000e+00> : vector<16x16xf32>
    %362 = tpu.matmul %359, %361, %cst_135 {dimension_numbers = #tpu.dot_dimension_numbers<[1], [0], [0], [1], [0, 0, 1, 1], [], []>} : vector<16x8xf32>, vector<8x16xf32>, vector<16x16xf32> -> vector<16x16xf32>
    %363 = arith.addf %362, %3 : vector<16x16xf32>
    %cst_136 = arith.constant dense<0xFF800000> : vector<16xf32>
    %364 = vector.multi_reduction <maximumf>, %363, %cst_136 [1] : vector<16x16xf32> to vector<16xf32>
    %365 = vector.shape_cast %364 : vector<16xf32> to vector<16x1xf32>
    %366 = vector.broadcast %365 : vector<16x1xf32> to vector<16x16xf32>
    %367 = arith.subf %363, %366 : vector<16x16xf32>
    %368 = math.exp %367 : vector<16x16xf32>
    %cst_137 = arith.constant dense<0.000000e+00> : vector<16xf32>
    %369 = vector.multi_reduction <add>, %368, %cst_137 [1] : vector<16x16xf32> to vector<16xf32>
    %370 = vector.shape_cast %369 : vector<16xf32> to vector<16x1xf32>
    %371 = tpu.reciprocal %370 {approx = true} : vector<16x1xf32> -> vector<16x1xf32>
    %372 = vector.broadcast %371 : vector<16x1xf32> to vector<16x16xf32>
    %373 = arith.mulf %368, %372 : vector<16x16xf32>
    %374 = vector.extract_strided_slice %322 {offsets = [0, 16], sizes = [16, 8], strides = [1, 1]} : vector<16x32xf32> to vector<16x8xf32>
    %cst_138 = arith.constant dense<0.000000e+00> : vector<16x8xf32>
    %375 = tpu.matmul %373, %374, %cst_138 {dimension_numbers = #tpu.dot_dimension_numbers<[1], [0], [0], [1], [0, 0, 1, 1], [], []>} : vector<16x16xf32>, vector<16x8xf32>, vector<16x8xf32> -> vector<16x8xf32>
    %c0_139 = arith.constant 0 : index
    %c16_140 = arith.constant 16 : index
    %376 = vector.load %arg9[%c0_139, %c16_140] : memref<16x32xf32, #tpu.memory_space<vmem>>, vector<16x8xf32>
    tpu.vector_store %arg9[%c0_139, %c16_140], %375 {strides = array<i32>} : memref<16x32xf32, #tpu.memory_space<vmem>>, vector<16x8xf32>,
    %377 = vector.extract_strided_slice %320 {offsets = [0, 24], sizes = [16, 8], strides = [1, 1]} : vector<16x32xf32> to vector<16x8xf32>
    %378 = vector.extract_strided_slice %321 {offsets = [0, 24], sizes = [16, 8], strides = [1, 1]} : vector<16x32xf32> to vector<16x8xf32>
    %379 = tpu.transpose %378, [1, 0] : vector<16x8xf32> -> vector<8x16xf32>
    %cst_141 = arith.constant dense<0.000000e+00> : vector<16x16xf32>
    %380 = tpu.matmul %377, %379, %cst_141 {dimension_numbers = #tpu.dot_dimension_numbers<[1], [0], [0], [1], [0, 0, 1, 1], [], []>} : vector<16x8xf32>, vector<8x16xf32>, vector<16x16xf32> -> vector<16x16xf32>
    %381 = arith.addf %380, %3 : vector<16x16xf32>
    %cst_142 = arith.constant dense<0xFF800000> : vector<16xf32>
    %382 = vector.multi_reduction <maximumf>, %381, %cst_142 [1] : vector<16x16xf32> to vector<16xf32>
    %383 = vector.shape_cast %382 : vector<16xf32> to vector<16x1xf32>
    %384 = vector.broadcast %383 : vector<16x1xf32> to vector<16x16xf32>
    %385 = arith.subf %381, %384 : vector<16x16xf32>
    %386 = math.exp %385 : vector<16x16xf32>
    %cst_143 = arith.constant dense<0.000000e+00> : vector<16xf32>
    %387 = vector.multi_reduction <add>, %386, %cst_143 [1] : vector<16x16xf32> to vector<16xf32>
    %388 = vector.shape_cast %387 : vector<16xf32> to vector<16x1xf32>
    %389 = tpu.reciprocal %388 {approx = true} : vector<16x1xf32> -> vector<16x1xf32>
    %390 = vector.broadcast %389 : vector<16x1xf32> to vector<16x16xf32>
    %391 = arith.mulf %386, %390 : vector<16x16xf32>
    %392 = vector.extract_strided_slice %322 {offsets = [0, 24], sizes = [16, 8], strides = [1, 1]} : vector<16x32xf32> to vector<16x8xf32>
    %cst_144 = arith.constant dense<0.000000e+00> : vector<16x8xf32>
    %393 = tpu.matmul %391, %392, %cst_144 {dimension_numbers = #tpu.dot_dimension_numbers<[1], [0], [0], [1], [0, 0, 1, 1], [], []>} : vector<16x16xf32>, vector<16x8xf32>, vector<16x8xf32> -> vector<16x8xf32>
    %c0_145 = arith.constant 0 : index
    %c24_146 = arith.constant 24 : index
    %394 = vector.load %arg9[%c0_145, %c24_146] : memref<16x32xf32, #tpu.memory_space<vmem>>, vector<16x8xf32>
    tpu.vector_store %arg9[%c0_145, %c24_146], %393 {strides = array<i32>} : memref<16x32xf32, #tpu.memory_space<vmem>>, vector<16x8xf32>,
    %c0_147 = arith.constant 0 : index
    %c0_148 = arith.constant 0 : index
    %395 = vector.load %arg9[%c0_147, %c0_148] : memref<16x32xf32, #tpu.memory_space<vmem>>, vector<16x32xf32>
    %cst_149 = arith.constant dense<0.000000e+00> : vector<16x32xf32>
    %396 = tpu.matmul %395, %315, %cst_149 {dimension_numbers = #tpu.dot_dimension_numbers<[1], [0], [0], [1], [0, 0, 1, 1], [], []>} : vector<16x32xf32>, vector<32x32xf32>, vector<16x32xf32> -> vector<16x32xf32>
    %397 = vector.broadcast %316 : vector<1x32xf32> to vector<16x32xf32>
    %398 = arith.addf %396, %397 : vector<16x32xf32>
    %399 = arith.addf %284, %398 : vector<16x32xf32>
    %400 = vector.extract_strided_slice %286 {offsets = [2, 0], sizes = [1, 32], strides = [1, 1]} : vector<12x96xf32> to vector<1x32xf32>
    %401 = vector.extract_strided_slice %286 {offsets = [3, 0], sizes = [1, 32], strides = [1, 1]} : vector<12x96xf32> to vector<1x32xf32>
    %cst_150 = arith.constant dense<0.000000e+00> : vector<16xf32>
    %402 = vector.multi_reduction <add>, %399, %cst_150 [1] : vector<16x32xf32> to vector<16xf32>
    %403 = vector.shape_cast %402 : vector<16xf32> to vector<16x1xf32>
    %cst_151 = arith.constant 3.200000e+01 : f32
    %404 = vector.broadcast %cst_151 : f32 to vector<16x1xf32>
    %405 = arith.divf %403, %404 : vector<16x1xf32>
    %406 = vector.broadcast %405 : vector<16x1xf32> to vector<16x32xf32>
    %407 = arith.subf %399, %406 : vector<16x32xf32>
    %408 = arith.mulf %407, %407 : vector<16x32xf32>
    %cst_152 = arith.constant dense<0.000000e+00> : vector<16xf32>
    %409 = vector.multi_reduction <add>, %408, %cst_152 [1] : vector<16x32xf32> to vector<16xf32>
    %410 = vector.shape_cast %409 : vector<16xf32> to vector<16x1xf32>
    %cst_153 = arith.constant 3.200000e+01 : f32
    %411 = vector.broadcast %cst_153 : f32 to vector<16x1xf32>
    %412 = arith.divf %410, %411 : vector<16x1xf32>
    %413 = vector.broadcast %405 : vector<16x1xf32> to vector<16x32xf32>
    %414 = arith.subf %399, %413 : vector<16x32xf32>
    %cst_154 = arith.constant 9.99999974E-6 : f32
    %415 = vector.broadcast %cst_154 : f32 to vector<16x1xf32>
    %416 = arith.addf %412, %415 : vector<16x1xf32>
    %417 = math.rsqrt %416 : vector<16x1xf32>
    %418 = vector.broadcast %417 : vector<16x1xf32> to vector<16x32xf32>
    %419 = arith.mulf %414, %418 : vector<16x32xf32>
    %420 = vector.broadcast %400 : vector<1x32xf32> to vector<16x32xf32>
    %421 = arith.mulf %419, %420 : vector<16x32xf32>
    %422 = vector.broadcast %401 : vector<1x32xf32> to vector<16x32xf32>
    %423 = arith.addf %421, %422 : vector<16x32xf32>
    %c1_155 = arith.constant 1 : index
    %c1_156 = arith.constant 1 : index
    %c0_157 = arith.constant 0 : index
    %c0_158 = arith.constant 0 : index
    %424 = vector.load %arg3[%c1_155, %c1_156, %c0_157, %c0_158] : memref<2x2x32x96xf32, #tpu.memory_space<vmem>>, vector<1x1x32x96xf32>
    %425 = vector.shape_cast %424 : vector<1x1x32x96xf32> to vector<32x96xf32>
    %426 = vector.extract_strided_slice %286 {offsets = [8, 0], sizes = [1, 96], strides = [1, 1]} : vector<12x96xf32> to vector<1x96xf32>
    %c1_159 = arith.constant 1 : index
    %c1_160 = arith.constant 1 : index
    %c0_161 = arith.constant 0 : index
    %c0_162 = arith.constant 0 : index
    %427 = vector.load %arg4[%c1_159, %c1_160, %c0_161, %c0_162] : memref<2x2x32x32xf32, #tpu.memory_space<vmem>>, vector<1x1x32x32xf32>
    %428 = vector.shape_cast %427 : vector<1x1x32x32xf32> to vector<32x32xf32>
    %429 = vector.extract_strided_slice %286 {offsets = [9, 0], sizes = [1, 32], strides = [1, 1]} : vector<12x96xf32> to vector<1x32xf32>
    %430 = vector.extract_strided_slice %425 {offsets = [0, 0], sizes = [32, 64], strides = [1, 1]} : vector<32x96xf32> to vector<32x64xf32>
    %cst_163 = arith.constant dense<0.000000e+00> : vector<16x64xf32>
    %431 = tpu.matmul %1, %430, %cst_163 {dimension_numbers = #tpu.dot_dimension_numbers<[1], [0], [0], [1], [0, 0, 1, 1], [], []>} : vector<16x32xf32>, vector<32x64xf32>, vector<16x64xf32> -> vector<16x64xf32>
    %432 = vector.extract_strided_slice %426 {offsets = [0, 0], sizes = [1, 64], strides = [1, 1]} : vector<1x96xf32> to vector<1x64xf32>
    %433 = vector.broadcast %432 : vector<1x64xf32> to vector<16x64xf32>
    %434 = arith.addf %431, %433 : vector<16x64xf32>
    %435 = vector.extract_strided_slice %425 {offsets = [0, 64], sizes = [32, 32], strides = [1, 1]} : vector<32x96xf32> to vector<32x32xf32>
    %cst_164 = arith.constant dense<0.000000e+00> : vector<16x32xf32>
    %436 = tpu.matmul %423, %435, %cst_164 {dimension_numbers = #tpu.dot_dimension_numbers<[1], [0], [0], [1], [0, 0, 1, 1], [], []>} : vector<16x32xf32>, vector<32x32xf32>, vector<16x32xf32> -> vector<16x32xf32>
    %437 = vector.extract_strided_slice %426 {offsets = [0, 64], sizes = [1, 32], strides = [1, 1]} : vector<1x96xf32> to vector<1x32xf32>
    %438 = vector.broadcast %437 : vector<1x32xf32> to vector<16x32xf32>
    %439 = arith.addf %436, %438 : vector<16x32xf32>
    %440 = vector.extract_strided_slice %434 {offsets = [0, 0], sizes = [16, 32], strides = [1, 1]} : vector<16x64xf32> to vector<16x32xf32>
    %441 = vector.extract_strided_slice %434 {offsets = [0, 32], sizes = [16, 32], strides = [1, 1]} : vector<16x64xf32> to vector<16x32xf32>
    %442 = vector.extract_strided_slice %440 {offsets = [0, 0], sizes = [16, 8], strides = [1, 1]} : vector<16x32xf32> to vector<16x8xf32>
    %443 = vector.extract_strided_slice %441 {offsets = [0, 0], sizes = [16, 8], strides = [1, 1]} : vector<16x32xf32> to vector<16x8xf32>
    %444 = tpu.transpose %443, [1, 0] : vector<16x8xf32> -> vector<8x16xf32>
    %cst_165 = arith.constant dense<0.000000e+00> : vector<16x16xf32>
    %445 = tpu.matmul %442, %444, %cst_165 {dimension_numbers = #tpu.dot_dimension_numbers<[1], [0], [0], [1], [0, 0, 1, 1], [], []>} : vector<16x8xf32>, vector<8x16xf32>, vector<16x16xf32> -> vector<16x16xf32>
    %446 = arith.addf %445, %5 : vector<16x16xf32>
    %cst_166 = arith.constant dense<0xFF800000> : vector<16xf32>
    %447 = vector.multi_reduction <maximumf>, %446, %cst_166 [1] : vector<16x16xf32> to vector<16xf32>
    %448 = vector.shape_cast %447 : vector<16xf32> to vector<16x1xf32>
    %449 = vector.broadcast %448 : vector<16x1xf32> to vector<16x16xf32>
    %450 = arith.subf %446, %449 : vector<16x16xf32>
    %451 = math.exp %450 : vector<16x16xf32>
    %cst_167 = arith.constant dense<0.000000e+00> : vector<16xf32>
    %452 = vector.multi_reduction <add>, %451, %cst_167 [1] : vector<16x16xf32> to vector<16xf32>
    %453 = vector.shape_cast %452 : vector<16xf32> to vector<16x1xf32>
    %454 = tpu.reciprocal %453 {approx = true} : vector<16x1xf32> -> vector<16x1xf32>
    %455 = vector.broadcast %454 : vector<16x1xf32> to vector<16x16xf32>
    %456 = arith.mulf %451, %455 : vector<16x16xf32>
    %457 = vector.extract_strided_slice %439 {offsets = [0, 0], sizes = [16, 8], strides = [1, 1]} : vector<16x32xf32> to vector<16x8xf32>
    %cst_168 = arith.constant dense<0.000000e+00> : vector<16x8xf32>
    %458 = tpu.matmul %456, %457, %cst_168 {dimension_numbers = #tpu.dot_dimension_numbers<[1], [0], [0], [1], [0, 0, 1, 1], [], []>} : vector<16x16xf32>, vector<16x8xf32>, vector<16x8xf32> -> vector<16x8xf32>
    %c0_169 = arith.constant 0 : index
    %c0_170 = arith.constant 0 : index
    %459 = vector.load %arg9[%c0_169, %c0_170] : memref<16x32xf32, #tpu.memory_space<vmem>>, vector<16x8xf32>
    tpu.vector_store %arg9[%c0_169, %c0_170], %458 {strides = array<i32>} : memref<16x32xf32, #tpu.memory_space<vmem>>, vector<16x8xf32>,
    %460 = vector.extract_strided_slice %440 {offsets = [0, 8], sizes = [16, 8], strides = [1, 1]} : vector<16x32xf32> to vector<16x8xf32>
    %461 = vector.extract_strided_slice %441 {offsets = [0, 8], sizes = [16, 8], strides = [1, 1]} : vector<16x32xf32> to vector<16x8xf32>
    %462 = tpu.transpose %461, [1, 0] : vector<16x8xf32> -> vector<8x16xf32>
    %cst_171 = arith.constant dense<0.000000e+00> : vector<16x16xf32>
    %463 = tpu.matmul %460, %462, %cst_171 {dimension_numbers = #tpu.dot_dimension_numbers<[1], [0], [0], [1], [0, 0, 1, 1], [], []>} : vector<16x8xf32>, vector<8x16xf32>, vector<16x16xf32> -> vector<16x16xf32>
    %464 = arith.addf %463, %5 : vector<16x16xf32>
    %cst_172 = arith.constant dense<0xFF800000> : vector<16xf32>
    %465 = vector.multi_reduction <maximumf>, %464, %cst_172 [1] : vector<16x16xf32> to vector<16xf32>
    %466 = vector.shape_cast %465 : vector<16xf32> to vector<16x1xf32>
    %467 = vector.broadcast %466 : vector<16x1xf32> to vector<16x16xf32>
    %468 = arith.subf %464, %467 : vector<16x16xf32>
    %469 = math.exp %468 : vector<16x16xf32>
    %cst_173 = arith.constant dense<0.000000e+00> : vector<16xf32>
    %470 = vector.multi_reduction <add>, %469, %cst_173 [1] : vector<16x16xf32> to vector<16xf32>
    %471 = vector.shape_cast %470 : vector<16xf32> to vector<16x1xf32>
    %472 = tpu.reciprocal %471 {approx = true} : vector<16x1xf32> -> vector<16x1xf32>
    %473 = vector.broadcast %472 : vector<16x1xf32> to vector<16x16xf32>
    %474 = arith.mulf %469, %473 : vector<16x16xf32>
    %475 = vector.extract_strided_slice %439 {offsets = [0, 8], sizes = [16, 8], strides = [1, 1]} : vector<16x32xf32> to vector<16x8xf32>
    %cst_174 = arith.constant dense<0.000000e+00> : vector<16x8xf32>
    %476 = tpu.matmul %474, %475, %cst_174 {dimension_numbers = #tpu.dot_dimension_numbers<[1], [0], [0], [1], [0, 0, 1, 1], [], []>} : vector<16x16xf32>, vector<16x8xf32>, vector<16x8xf32> -> vector<16x8xf32>
    %c0_175 = arith.constant 0 : index
    %c8_176 = arith.constant 8 : index
    %477 = vector.load %arg9[%c0_175, %c8_176] : memref<16x32xf32, #tpu.memory_space<vmem>>, vector<16x8xf32>
    tpu.vector_store %arg9[%c0_175, %c8_176], %476 {strides = array<i32>} : memref<16x32xf32, #tpu.memory_space<vmem>>, vector<16x8xf32>,
    %478 = vector.extract_strided_slice %440 {offsets = [0, 16], sizes = [16, 8], strides = [1, 1]} : vector<16x32xf32> to vector<16x8xf32>
    %479 = vector.extract_strided_slice %441 {offsets = [0, 16], sizes = [16, 8], strides = [1, 1]} : vector<16x32xf32> to vector<16x8xf32>
    %480 = tpu.transpose %479, [1, 0] : vector<16x8xf32> -> vector<8x16xf32>
    %cst_177 = arith.constant dense<0.000000e+00> : vector<16x16xf32>
    %481 = tpu.matmul %478, %480, %cst_177 {dimension_numbers = #tpu.dot_dimension_numbers<[1], [0], [0], [1], [0, 0, 1, 1], [], []>} : vector<16x8xf32>, vector<8x16xf32>, vector<16x16xf32> -> vector<16x16xf32>
    %482 = arith.addf %481, %5 : vector<16x16xf32>
    %cst_178 = arith.constant dense<0xFF800000> : vector<16xf32>
    %483 = vector.multi_reduction <maximumf>, %482, %cst_178 [1] : vector<16x16xf32> to vector<16xf32>
    %484 = vector.shape_cast %483 : vector<16xf32> to vector<16x1xf32>
    %485 = vector.broadcast %484 : vector<16x1xf32> to vector<16x16xf32>
    %486 = arith.subf %482, %485 : vector<16x16xf32>
    %487 = math.exp %486 : vector<16x16xf32>
    %cst_179 = arith.constant dense<0.000000e+00> : vector<16xf32>
    %488 = vector.multi_reduction <add>, %487, %cst_179 [1] : vector<16x16xf32> to vector<16xf32>
    %489 = vector.shape_cast %488 : vector<16xf32> to vector<16x1xf32>
    %490 = tpu.reciprocal %489 {approx = true} : vector<16x1xf32> -> vector<16x1xf32>
    %491 = vector.broadcast %490 : vector<16x1xf32> to vector<16x16xf32>
    %492 = arith.mulf %487, %491 : vector<16x16xf32>
    %493 = vector.extract_strided_slice %439 {offsets = [0, 16], sizes = [16, 8], strides = [1, 1]} : vector<16x32xf32> to vector<16x8xf32>
    %cst_180 = arith.constant dense<0.000000e+00> : vector<16x8xf32>
    %494 = tpu.matmul %492, %493, %cst_180 {dimension_numbers = #tpu.dot_dimension_numbers<[1], [0], [0], [1], [0, 0, 1, 1], [], []>} : vector<16x16xf32>, vector<16x8xf32>, vector<16x8xf32> -> vector<16x8xf32>
    %c0_181 = arith.constant 0 : index
    %c16_182 = arith.constant 16 : index
    %495 = vector.load %arg9[%c0_181, %c16_182] : memref<16x32xf32, #tpu.memory_space<vmem>>, vector<16x8xf32>
    tpu.vector_store %arg9[%c0_181, %c16_182], %494 {strides = array<i32>} : memref<16x32xf32, #tpu.memory_space<vmem>>, vector<16x8xf32>,
    %496 = vector.extract_strided_slice %440 {offsets = [0, 24], sizes = [16, 8], strides = [1, 1]} : vector<16x32xf32> to vector<16x8xf32>
    %497 = vector.extract_strided_slice %441 {offsets = [0, 24], sizes = [16, 8], strides = [1, 1]} : vector<16x32xf32> to vector<16x8xf32>
    %498 = tpu.transpose %497, [1, 0] : vector<16x8xf32> -> vector<8x16xf32>
    %cst_183 = arith.constant dense<0.000000e+00> : vector<16x16xf32>
    %499 = tpu.matmul %496, %498, %cst_183 {dimension_numbers = #tpu.dot_dimension_numbers<[1], [0], [0], [1], [0, 0, 1, 1], [], []>} : vector<16x8xf32>, vector<8x16xf32>, vector<16x16xf32> -> vector<16x16xf32>
    %500 = arith.addf %499, %5 : vector<16x16xf32>
    %cst_184 = arith.constant dense<0xFF800000> : vector<16xf32>
    %501 = vector.multi_reduction <maximumf>, %500, %cst_184 [1] : vector<16x16xf32> to vector<16xf32>
    %502 = vector.shape_cast %501 : vector<16xf32> to vector<16x1xf32>
    %503 = vector.broadcast %502 : vector<16x1xf32> to vector<16x16xf32>
    %504 = arith.subf %500, %503 : vector<16x16xf32>
    %505 = math.exp %504 : vector<16x16xf32>
    %cst_185 = arith.constant dense<0.000000e+00> : vector<16xf32>
    %506 = vector.multi_reduction <add>, %505, %cst_185 [1] : vector<16x16xf32> to vector<16xf32>
    %507 = vector.shape_cast %506 : vector<16xf32> to vector<16x1xf32>
    %508 = tpu.reciprocal %507 {approx = true} : vector<16x1xf32> -> vector<16x1xf32>
    %509 = vector.broadcast %508 : vector<16x1xf32> to vector<16x16xf32>
    %510 = arith.mulf %505, %509 : vector<16x16xf32>
    %511 = vector.extract_strided_slice %439 {offsets = [0, 24], sizes = [16, 8], strides = [1, 1]} : vector<16x32xf32> to vector<16x8xf32>
    %cst_186 = arith.constant dense<0.000000e+00> : vector<16x8xf32>
    %512 = tpu.matmul %510, %511, %cst_186 {dimension_numbers = #tpu.dot_dimension_numbers<[1], [0], [0], [1], [0, 0, 1, 1], [], []>} : vector<16x16xf32>, vector<16x8xf32>, vector<16x8xf32> -> vector<16x8xf32>
    %c0_187 = arith.constant 0 : index
    %c24_188 = arith.constant 24 : index
    %513 = vector.load %arg9[%c0_187, %c24_188] : memref<16x32xf32, #tpu.memory_space<vmem>>, vector<16x8xf32>
    tpu.vector_store %arg9[%c0_187, %c24_188], %512 {strides = array<i32>} : memref<16x32xf32, #tpu.memory_space<vmem>>, vector<16x8xf32>,
    %c0_189 = arith.constant 0 : index
    %c0_190 = arith.constant 0 : index
    %514 = vector.load %arg9[%c0_189, %c0_190] : memref<16x32xf32, #tpu.memory_space<vmem>>, vector<16x32xf32>
    %cst_191 = arith.constant dense<0.000000e+00> : vector<16x32xf32>
    %515 = tpu.matmul %514, %428, %cst_191 {dimension_numbers = #tpu.dot_dimension_numbers<[1], [0], [0], [1], [0, 0, 1, 1], [], []>} : vector<16x32xf32>, vector<32x32xf32>, vector<16x32xf32> -> vector<16x32xf32>
    %516 = vector.broadcast %429 : vector<1x32xf32> to vector<16x32xf32>
    %517 = arith.addf %515, %516 : vector<16x32xf32>
    %518 = arith.addf %423, %517 : vector<16x32xf32>
    %519 = vector.extract_strided_slice %286 {offsets = [4, 0], sizes = [1, 32], strides = [1, 1]} : vector<12x96xf32> to vector<1x32xf32>
    %520 = vector.extract_strided_slice %286 {offsets = [5, 0], sizes = [1, 32], strides = [1, 1]} : vector<12x96xf32> to vector<1x32xf32>
    %cst_192 = arith.constant dense<0.000000e+00> : vector<16xf32>
    %521 = vector.multi_reduction <add>, %518, %cst_192 [1] : vector<16x32xf32> to vector<16xf32>
    %522 = vector.shape_cast %521 : vector<16xf32> to vector<16x1xf32>
    %cst_193 = arith.constant 3.200000e+01 : f32
    %523 = vector.broadcast %cst_193 : f32 to vector<16x1xf32>
    %524 = arith.divf %522, %523 : vector<16x1xf32>
    %525 = vector.broadcast %524 : vector<16x1xf32> to vector<16x32xf32>
    %526 = arith.subf %518, %525 : vector<16x32xf32>
    %527 = arith.mulf %526, %526 : vector<16x32xf32>
    %cst_194 = arith.constant dense<0.000000e+00> : vector<16xf32>
    %528 = vector.multi_reduction <add>, %527, %cst_194 [1] : vector<16x32xf32> to vector<16xf32>
    %529 = vector.shape_cast %528 : vector<16xf32> to vector<16x1xf32>
    %cst_195 = arith.constant 3.200000e+01 : f32
    %530 = vector.broadcast %cst_195 : f32 to vector<16x1xf32>
    %531 = arith.divf %529, %530 : vector<16x1xf32>
    %532 = vector.broadcast %524 : vector<16x1xf32> to vector<16x32xf32>
    %533 = arith.subf %518, %532 : vector<16x32xf32>
    %cst_196 = arith.constant 9.99999974E-6 : f32
    %534 = vector.broadcast %cst_196 : f32 to vector<16x1xf32>
    %535 = arith.addf %531, %534 : vector<16x1xf32>
    %536 = math.rsqrt %535 : vector<16x1xf32>
    %537 = vector.broadcast %536 : vector<16x1xf32> to vector<16x32xf32>
    %538 = arith.mulf %533, %537 : vector<16x32xf32>
    %539 = vector.broadcast %519 : vector<1x32xf32> to vector<16x32xf32>
    %540 = arith.mulf %538, %539 : vector<16x32xf32>
    %541 = vector.broadcast %520 : vector<1x32xf32> to vector<16x32xf32>
    %542 = arith.addf %540, %541 : vector<16x32xf32>
    %c1_197 = arith.constant 1 : index
    %c0_198 = arith.constant 0 : index
    %c0_199 = arith.constant 0 : index
    %543 = vector.load %arg5[%c1_197, %c0_198, %c0_199] : memref<2x32x64xf32, #tpu.memory_space<vmem>>, vector<1x32x64xf32>
    %544 = vector.shape_cast %543 : vector<1x32x64xf32> to vector<32x64xf32>
    %cst_200 = arith.constant dense<0.000000e+00> : vector<16x64xf32>
    %545 = tpu.matmul %542, %544, %cst_200 {dimension_numbers = #tpu.dot_dimension_numbers<[1], [0], [0], [1], [0, 0, 1, 1], [], []>} : vector<16x32xf32>, vector<32x64xf32>, vector<16x64xf32> -> vector<16x64xf32>
    %546 = vector.extract_strided_slice %286 {offsets = [10, 0], sizes = [1, 64], strides = [1, 1]} : vector<12x96xf32> to vector<1x64xf32>
    %547 = vector.broadcast %546 : vector<1x64xf32> to vector<16x64xf32>
    %548 = arith.addf %545, %547 : vector<16x64xf32>
    %cst_201 = arith.constant 5.000000e-01 : f32
    %549 = vector.broadcast %cst_201 : f32 to vector<16x64xf32>
    %550 = arith.mulf %549, %548 : vector<16x64xf32>
    %cst_202 = arith.constant 0.707106769 : f32
    %551 = vector.broadcast %cst_202 : f32 to vector<16x64xf32>
    %552 = arith.mulf %548, %551 : vector<16x64xf32>
    %553 = math.erf %552 : vector<16x64xf32>
    %cst_203 = arith.constant 1.000000e+00 : f32
    %554 = vector.broadcast %cst_203 : f32 to vector<16x64xf32>
    %555 = arith.addf %554, %553 : vector<16x64xf32>
    %556 = arith.mulf %550, %555 : vector<16x64xf32>
    %c1_204 = arith.constant 1 : index
    %c0_205 = arith.constant 0 : index
    %c0_206 = arith.constant 0 : index
    %557 = vector.load %arg6[%c1_204, %c0_205, %c0_206] : memref<2x64x32xf32, #tpu.memory_space<vmem>>, vector<1x64x32xf32>
    %558 = vector.shape_cast %557 : vector<1x64x32xf32> to vector<64x32xf32>
    %cst_207 = arith.constant dense<0.000000e+00> : vector<16x32xf32>
    %559 = tpu.matmul %556, %558, %cst_207 {dimension_numbers = #tpu.dot_dimension_numbers<[1], [0], [0], [1], [0, 0, 1, 1], [], []>} : vector<16x64xf32>, vector<64x32xf32>, vector<16x32xf32> -> vector<16x32xf32>
    %560 = vector.extract_strided_slice %286 {offsets = [11, 0], sizes = [1, 32], strides = [1, 1]} : vector<12x96xf32> to vector<1x32xf32>
    %561 = vector.broadcast %560 : vector<1x32xf32> to vector<16x32xf32>
    %562 = arith.addf %559, %561 : vector<16x32xf32>
    %563 = arith.addf %542, %562 : vector<16x32xf32>
    %c0_208 = arith.constant 0 : index
    %c0_209 = arith.constant 0 : index
    %564 = vector.load %arg8[%c0_208, %c0_209] : memref<16x32xf32, #tpu.memory_space<vmem>>, vector<16x32xf32>
    tpu.vector_store %arg8[%c0_208, %c0_209], %563 {strides = array<i32>} : memref<16x32xf32, #tpu.memory_space<vmem>>, vector<16x32xf32>,
    return
  }
}

</mosaic_0001>

<bundles_post_ra>
// kernel: transformer_decoder.1
= control target key start
LH: loop header
LB: loop body
LE: loop exit
PB: predicated region body
PF: predicated region fallthrough
CT: control target
= control target key end

     0   :  { %13 = vsyncpa [#allocation4], 0  ;;  %s7450_s0 = inlined_call_operand.vmem [shape: f32[16,32], index: 0, kind: input, shape index: {}]   ;;  %s7451_s1 = inlined_call_operand.hbm [shape: f32[16,32], index: 1, kind: input, shape index: {}]   ;;  %s7452_s2 = inlined_call_operand.vmem [shape: f32[2,16,16], index: 2, kind: input, shape index: {}]   ;;  %s7453_s3 = inlined_call_operand.vmem [shape: f32[2,2,32,96], index: 3, kind: input, shape index: {}]   ;;  %s7454_s4 = inlined_call_operand.vmem [shape: f32[2,2,32,32], index: 4, kind: input, shape index: {}]   ;;  %s7455_s5 = inlined_call_operand.hbm [shape: f32[2,32,64], index: 5, kind: input, shape index: {}]   ;;  %s7456_s6 = inlined_call_operand.vmem [shape: f32[2,64,32], index: 6, kind: input, shape index: {}]   ;;  %s7457_s7 = inlined_call_operand.vmem [shape: f32[2,12,96], index: 7, kind: input, shape index: {}]   ;;  %s7458_s8 = inlined_call_operand.hbm [shape: f32[16,32], index: 8, kind: output, shape index: {}]  }
   0x1   :  { %14 = vsyncpa [#allocation7], 0 }
   0x2   :  { %15 = vsyncpa [#allocation5], 0  ;;  %s6450_s27 = smov [#allocation3]   ;;  %s6378_s9 = scalar_lea.hbm %s7451_s1, 256 }
   0x3   :  { %s23_s28 = sshll.u32 %s6450_s27, 4  ;;  %p6379_p0 = scmp.ne.s32.totalorder %s7451_s1, %s6378_s9  ;;  %s24_s28 = int_to_ptr.vmem [resolvable:$true] %s23_s28 }
   0x4   :  { %p6382_p1 = scmp.lt.u32.totalorder %s6378_s9, %s7451_s1 }
   0x6   :  { %p6384_p2 = pnand %p6382_p1, %p6379_p0 }
   0x8   :  { %6387 = shalt.err (!%p6384_p2)
}
   0x9   :  { %s6388_s14 = scalar_lea.vmem %s24_s28, 256  ;;  %p6393_p4 = scmp.lt.s32.totalorder %s24_s28, %s24_s28 }
   0xa   :  { %p6389_p3 = scmp.ne.s32.totalorder %s24_s28, %s6388_s14  ;;  %p6394_p5 = scmp.lt.s32.totalorder %s6388_s14, %s6388_s14 }
   0xc   :  { %p6395_p6 = por %p6394_p5, %p6393_p4 }
   0xe   :  { %p6396_p7 = pnand %p6395_p6, %p6389_p3 }
  0x10   :  { %6399 = shalt.err (!%p6396_p7)
}
  0x11   :  { %s6451_s15 = smov 128   ;;  %s6452_s16 = smov 8  }
  0x12   :  { %29 = dma.hbm_to_vmem [thread:$0]  %s7451_s1, 256, %s24_s28, [#allocation4], %s6451_s15, %s6451_s15, %s6452_s16  }
  0x13   :  { %s6453_s19 = smov [#allocation6]   ;;  %s6400_s23 = scalar_lea.hbm %s7455_s5, 1024 }
  0x14   :  { %s41_s20 = sshll.u32 %s6453_s19, 4  ;;  %p6401_p8 = scmp.ne.s32.totalorder %s7455_s5, %s6400_s23  ;;  %s42_s20 = int_to_ptr.vmem [resolvable:$true] %s41_s20 }
  0x15   :  { %p6404_p9 = scmp.lt.u32.totalorder %s6400_s23, %s7455_s5 }
  0x17   :  { %p6406_p10 = pnand %p6404_p9, %p6401_p8 }
  0x19   :  { %6409 = shalt.err (!%p6406_p10)
}
  0x1a   :  { %s6410_s29 = scalar_lea.vmem %s42_s20, 1024  ;;  %p6415_p12 = scmp.lt.s32.totalorder %s42_s20, %s42_s20 }
  0x1b   :  { %p6411_p11 = scmp.ne.s32.totalorder %s42_s20, %s6410_s29  ;;  %p6416_p13 = scmp.lt.s32.totalorder %s6410_s29, %s6410_s29 }
  0x1d   :  { %p6417_p0 = por %p6416_p13, %p6415_p12 }
  0x1f   :  { %p6418_p1 = pnand %p6417_p0, %p6411_p11 }
  0x21   :  { %6421 = shalt.err (!%p6418_p1)
}
  0x22   :  { %47 = dma.hbm_to_vmem [thread:$0]  %s7455_s5, 1024, %s42_s20, [#allocation7], %s6451_s15, %s6451_s15, %s6452_s16  }
  0x23   :  { %6444 = dma.done.wait [#allocation4], 256  }
  0x24   :  { %6445 = vsyncadd [#allocation4], 4294967040 }
  0x25   :  { %6446 = dma.done.wait [#allocation7], 1024  }
  0x26   :  { %6447 = vsyncadd [#allocation7], 4294966272  ;;  %vm69_vm0 = vcmask 261120   ;;  %v6546_v0 = vld [vmem:[%s7450_s0] sm:$0xff]  ;;  %v6551_v1 = vld [vmem:[%s7450_s0 + $0x8] sm:$0xff]  ;;  %v97_v22 = vlaneseq  ;;  %vm208_vm1 = vcmask 64512  }
  0x27   :  { %v70_v2 = vsel %vm69_vm0, %v6546_v0, 0.0  ;;  %v73_v3 = vsel %vm69_vm0, %v6551_v1, 0.0  ;;  %v109_v14 = vld [vmem:[%s7453_s3] sm:$0xff]  ;;  %v110_v15 = vld [vmem:[%s7453_s3 + $0x8] sm:$0xff]  ;;  %v111_v16 = vld [vmem:[%s7453_s3 + $0x10] sm:$0xff]  ;;  %s6454_s22 = smov 88  }
  0x28   :  { %71 = vadd.xlane.f32.xlu0 %v70_v2  ;;  %v5734_v17 = vpack.c.bf16 %v110_v15, %v109_v14  ;;  %v112_v18 = vld [vmem:[%s7453_s3 + $0x18] sm:$0xff]  ;;  %v6573_v26 = vshrl.u32 %v97_v22, 7  ;;  %v6581_v29 = vld [vmem:[%s7457_s7] sm:$0xff]  ;;  %s6455_s23 = smov 96   ;;  %s6456_s24 = smov 120   ;;  %vm6616_vm2 = vmpackc.low %vm208_vm1, %vm208_vm1  ;;  %vm292_vm3 = vcmask 130048  }
  0x29   :  { %v5738_v19 = vpack.c.bf16 %v112_v18, %v111_v16  ;;  %v6635_v59 = vld [vmem:[%s7452_s2 + $0x8] sm:$0xff]  ;;  %v6640_v60 = vld [vmem:[%s7452_s2] sm:$0xff]  ;;  %s6457_s1 = smov 56   ;;  %s6458_s28 = smov 64   ;;  %vm612_vm4 = vcmask 130112   ;;  %vm823_vm5 = vcmask 195712  }
  0x2a   :  { %5735 = vmatprep.subr.bf16.mxu1 %v5734_v17  ;;  %v6576_v28 = vsub.s32 0, %v6573_v26  ;;  %v6584_v30 = vsub.s32 1, %v6573_v26  ;;  %v119_v41 = vsub.s32 6, %v6573_v26  ;;  %s6459_s30 = smov 80   ;;  %s6460_s9 = smov 112   ;;  %vm1034_vm6 = vcmask 261312  }
  0x2b   :  { %5737 = vmatpush3.bf16.msra.mxu1 %v5734_v17  ;;  %s6461_s10 = smov 48   ;;  %s6462_s11 = smov 104   ;;  %vm2424_vm7 = vcmask 523264  }
  0x2c   :  { %74 = vadd.xlane.f32.xlu0 %v73_v3  ;;  %5739 = vmatprep.subr.bf16.mxu1 %v5738_v19  ;;  %v100_v31 = vrot.slane %v6581_v29, %v6576_v28  ;;  %v106_v34 = vrot.slane %v6581_v29, %v6584_v30  ;;  %v120_v42 = vrot.slane %v6581_v29, %v119_v41  ;;  %s6463_s0 = smov 72   ;;  %s6464_s5 = smov 40  }
  0x2d   :  { %s6465_s12 = smov 16   ;;  %s6466_s25 = smov 24  }
  0x2f   :  { %5741 = vmatpush3.bf16.msra.mxu1 %v5738_v19 }
  0xb5   :  { %v72_v4 = vpop.xlane.xlu0 %71 }
  0xb6   :  { %v77_v5 = vmul.f32 0.03125, %v72_v4 }
  0xb8   :  { %v79_v6 = vsub.f32 %v6546_v0, %v77_v5 }
  0xb9   :  { %v75_v7 = vpop.xlane.xlu0 %74 }
  0xba   :  { %v78_v8 = vmul.f32 0.03125, %v75_v7  ;;  %v81_v9 = vmul.f32 %v79_v6, %v79_v6 }
  0xbc   :  { %v80_v10 = vsub.f32 %v6551_v1, %v78_v8  ;;  %v83_v11 = vsel %vm69_vm0, %v81_v9, 0.0 }
  0xbd   :  { %84 = vadd.xlane.f32.xlu1 %v83_v11 }
  0xbe   :  { %v82_v12 = vmul.f32 %v80_v10, %v80_v10 }
  0xc0   :  { %v86_v13 = vsel %vm69_vm0, %v82_v12, 0.0 }
  0xc1   :  { %87 = vadd.xlane.f32.xlu1 %v86_v13 }
 0x14a   :  { %v85_v20 = vpop.xlane.xlu1 %84 }
 0x14b   :  { %v89_v21 = vmul.f32 0.03125, %v85_v20 }
 0x14d   :  { %v91_v23 = vadd.f32 1e-05, %v89_v21 }
 0x14e   :  { %v88_v24 = vpop.xlane.xlu1 %87 }
 0x14f   :  { %6210 = vrsqrt.f32 %v91_v23  ;;  %v90_v25 = vmul.f32 0.03125, %v88_v24 }
 0x151   :  { %v92_v27 = vadd.f32 1e-05, %v90_v25 }
 0x153   :  { %6212 = vrsqrt.f32 %v92_v27 }
 0x159   :  { %v6211_v32 = vpop.eup %6210 }
 0x15a   :  { %v95_v33 = vmul.f32 %v6211_v32, %v79_v6 }
 0x15c   :  { %v101_v35 = vmul.f32 %v100_v31, %v95_v33 }
 0x15d   :  { %v6213_v36 = vpop.eup %6212 }
 0x15e   :  { %v96_v37 = vmul.f32 %v6213_v36, %v80_v10  ;;  %v107_v38 = vadd.f32 %v106_v34, %v101_v35 }
 0x160   :  { %v102_v39 = vmul.f32 %v100_v31, %v96_v37  ;;  %5348 = vmatprep.mubr.msk.f32.mxu1 %vm69_vm0, %v107_v38 }
 0x162   :  { %v108_v40 = vadd.f32 %v106_v34, %v102_v39 }
 0x164   :  { %5349 = vmatmul.mubr.msk.f32.vlgmr.msra.gmra.mrb[0].mxu1 %vm69_vm0, %v108_v40 }
 0x237   :  { %v5350_v43 = vpop.f32.mrb[0].mxu1 }
 0x238   :  { %v6596_v44 = vadd.f32 %v5350_v43, %v120_v42  ;;  %v193_v45 = vpop.f32.mrb[1].mxu1 }
 0x239   :  { %v6598_v46 = vadd.f32 %v193_v45, %v120_v42 }
 0x23b   :  { %5355 = vmatprep.mubr.msk.f32.mxu1 %vm208_vm1, %v6598_v46  ;;  %v6604_v47 = vpack.i.bf16 %v6596_v44, %v6598_v46 }
 0x23d   :  { %6046 = vrot.lane.b32.xlu1 %v6604_v47, %s6454_s22  ;;  %6041 = vrot.lane.b32.xlu0 %v6604_v47, %s6455_s23 }
 0x241   :  { %404 = vrot.lane.b32.xlu1 %v6598_v46, %s6456_s24 }
 0x245   :  { %406 = vrot.lane.b32.xlu1 %v6596_v44, %s6456_s24 }
 0x2af   :  { %v6047_v48 = vpop.permute.xlu1 %6046  ;;  %v6042_v49 = vpop.permute.xlu0 %6041 }
 0x2b0   :  { %v6049_v50 = vunpack.i.h.bf16 %v6047_v48  ;;  %v6048_v51 = vunpack.i.l.bf16 %v6047_v48  ;;  %v6044_v52 = vunpack.i.h.bf16 %v6042_v49  ;;  %v6043_v53 = vunpack.i.l.bf16 %v6042_v49 }
 0x2b2   :  { %v5742_v55 = vpack.c.bf16 %v6044_v52, %v6043_v53  ;;  %v5752_v56 = vpack.c.bf16 %v6049_v50, %v6048_v51 }
 0x2b3   :  { %v405_v57 = vpop.permute.xlu1 %404 }
 0x2b4   :  { %5744 = vmatprep.subr.msk.bf16.mxu1 %vm6616_vm2, %v5742_v55 }
 0x2b5   :  { %5747 = vmatpush3.bf16.xpose.msk.msra.mxu1 %vm6616_vm2, %v5742_v55 }
 0x2b6   :  { %5754 = vmatprep.subr.msk.bf16.mxu1 %vm6616_vm2, %v5752_v56 }
 0x2b7   :  { %v407_v58 = vpop.permute.xlu1 %406 }
 0x2bc   :  { %5356 = vmatmul.mubr.msk.f32.vlgmr.msra.gmra.mrb[2].mxu1 %vm208_vm1, %v6596_v44 }
 0x2bd   :  { %5757 = vmatpush3.bf16.xpose.msk.msra.mxu1 %vm6616_vm2, %v5752_v56  ;;  %5369 = vmatprep.mubr.msk.f32.mxu1 %vm208_vm1, %v405_v57 }
 0x2c4   :  { %5370 = vmatmul.mubr.msk.f32.vlgmr.msra.gmra.mrb[4].mxu1 %vm208_vm1, %v407_v58 }
 0x38f   :  { %v5357_v61 = vpop.f32.mrb[2].mxu1 }
 0x390   :  { %v289_v62 = vadd.f32 %v5357_v61, %v6635_v59  ;;  %v283_v63 = vpop.f32.mrb[3].mxu1 }
 0x391   :  { %v284_v2 = vadd.f32 %v283_v63, %v6640_v60 }
 0x392   :  { %v296_v3 = vsel %vm292_vm3, %v289_v62, -inf }
 0x393   :  { %297 = vmax.xlane.f32.xlu1 %v296_v3  ;;  %v293_v4 = vsel %vm292_vm3, %v284_v2, -inf }
 0x394   :  { %294 = vmax.xlane.f32.xlu0 %v293_v4 }
 0x397   :  { %v5371_v5 = vpop.f32.mrb[4].mxu1 }
 0x398   :  { %v486_v6 = vpop.f32.mrb[5].mxu1  ;;  %v492_v8 = vadd.f32 %v5371_v5, %v6635_v59 }
 0x399   :  { %v487_v7 = vadd.f32 %v486_v6, %v6640_v60 }
 0x39a   :  { %v498_v10 = vsel %vm292_vm3, %v492_v8, -inf }
 0x39b   :  { %v495_v9 = vsel %vm292_vm3, %v487_v7, -inf }
 0x39c   :  { %496 = vmax.xlane.f32.xlu0 %v495_v9 }
 0x3a0   :  { %499 = vmax.xlane.f32.xlu0 %v498_v10 }
 0x420   :  { %v298_v11 = vpop.xlane.xlu1 %297 }
 0x421   :  { %v300_v12 = vsub.f32 %v289_v62, %v298_v11  ;;  %v295_v13 = vpop.xlane.xlu0 %294 }
 0x422   :  { %v299_v14 = vsub.f32 %v284_v2, %v295_v13 }
 0x423   :  { %v303_v15 = vmul.f32 1.442695, %v300_v12 }
 0x424   :  { %v301_v16 = vmul.f32 1.442695, %v299_v14 }
 0x425   :  { %6214 = vpow2.f32 %v303_v15 }
 0x426   :  { %6216 = vpow2.f32 %v301_v16 }
 0x429   :  { %v497_v17 = vpop.xlane.xlu0 %496 }
 0x42a   :  { %v501_v18 = vsub.f32 %v487_v7, %v497_v17 }
 0x42c   :  { %v503_v19 = vmul.f32 1.442695, %v501_v18 }
 0x42d   :  { %v500_v20 = vpop.xlane.xlu0 %499 }
 0x42e   :  { %6218 = vpow2.f32 %v503_v19  ;;  %v502_v21 = vsub.f32 %v492_v8, %v500_v20 }
 0x42f   :  { %v6215_v22 = vpop.eup %6214 }
 0x430   :  { %v6217_v23 = vpop.eup %6216  ;;  %v505_v24 = vmul.f32 1.442695, %v502_v21  ;;  %v308_v25 = vsel %vm292_vm3, %v6215_v22, 0.0 }
 0x431   :  { %309 = vadd.xlane.f32.xlu1 %v308_v25  ;;  %v305_v27 = vsel %vm292_vm3, %v6217_v23, 0.0 }
 0x432   :  { %6220 = vpow2.f32 %v505_v24  ;;  %306 = vadd.xlane.f32.xlu0 %v305_v27 }
 0x438   :  { %v6219_v31 = vpop.eup %6218 }
 0x439   :  { %v507_v32 = vsel %vm292_vm3, %v6219_v31, 0.0 }
 0x43a   :  { %508 = vadd.xlane.f32.xlu0 %v507_v32 }
 0x43c   :  { %v6221_v33 = vpop.eup %6220 }
 0x43d   :  { %v510_v34 = vsel %vm292_vm3, %v6221_v33, 0.0 }
 0x43e   :  { %511 = vadd.xlane.f32.xlu1 %v510_v34 }
 0x44f   :  { %6056 = vrot.lane.b32.xlu1 %v6604_v47, %s6457_s1 }
 0x450   :  { %6051 = vrot.lane.b32.xlu0 %v6604_v47, %s6458_s28 }
 0x453   :  { %6061 = vrot.lane.b32.xlu1 %v6604_v47, %s6459_s30 }
 0x454   :  { %617 = vrot.lane.b32.xlu0 %v6596_v44, %s6460_s9 }
 0x457   :  { %615 = vrot.lane.b32.xlu1 %v6598_v46, %s6460_s9 }
 0x4be   :  { %v310_v36 = vpop.xlane.xlu1 %309 }
 0x4bf   :  { %v307_v35 = vpop.xlane.xlu0 %306 }
 0x4c0   :  { %6222 = vrcp.f32 %v307_v35 }
 0x4c1   :  { %6224 = vrcp.f32 %v310_v36 }
 0x4c7   :  { %v509_v37 = vpop.xlane.xlu0 %508 }
 0x4c8   :  { %6226 = vrcp.f32 %v509_v37 }
 0x4ca   :  { %v6223_v38 = vpop.eup %6222 }
 0x4cb   :  { %v512_v39 = vpop.xlane.xlu1 %511  ;;  %v6052_v40 = vpop.permute.xlu0 %6051  ;;  %v313_v42 = vmul.f32 %v6223_v38, %v6217_v23 }
 0x4cc   :  { %6228 = vrcp.f32 %v512_v39  ;;  %v6054_v43 = vunpack.i.h.bf16 %v6052_v40  ;;  %v6053_v45 = vunpack.i.l.bf16 %v6052_v40  ;;  %v6225_v49 = vpop.eup %6224 }
 0x4cd   :  { %5362 = vmatprep.mubr.msk.f32.mxu0 %vm292_vm3, %v313_v42  ;;  %v314_v55 = vmul.f32 %v6225_v49, %v6215_v22 }
 0x4ce   :  { %v5748_v48 = vpack.c.bf16 %v6054_v43, %v6053_v45 }
 0x4cf   :  { %v6057_v50 = vpop.permute.xlu1 %6056  ;;  %v618_v5 = vpop.permute.xlu0 %617 }
 0x4d0   :  { %v6059_v51 = vunpack.i.h.bf16 %v6057_v50  ;;  %v6058_v52 = vunpack.i.l.bf16 %v6057_v50  ;;  %5749 = vmatprep.subr.bf16.mxu0 %v5748_v48 }
 0x4d1   :  { %5751 = vmatpush3.bf16.msra.mxu0 %v5748_v48 }
 0x4d2   :  { %v6227_v53 = vpop.eup %6226  ;;  %v5758_v56 = vpack.c.bf16 %v6059_v51, %v6058_v52 }
 0x4d3   :  { %v6062_v57 = vpop.permute.xlu1 %6061  ;;  %v515_v58 = vmul.f32 %v6227_v53, %v6219_v31 }
 0x4d4   :  { %v6064_v61 = vunpack.i.h.bf16 %v6062_v57  ;;  %v6063_v62 = vunpack.i.l.bf16 %v6062_v57  ;;  %5363 = vmatmul.mubr.msk.f32.vlgmr.msra.gmra.mrb[0].mxu0 %vm292_vm3, %v314_v55  ;;  %5759 = vmatprep.subr.bf16.mxu0 %v5758_v56 }
 0x4d5   :  { %5761 = vmatpush3.bf16.msra.mxu0 %v5758_v56  ;;  %5376 = vmatprep.mubr.msk.f32.mxu0 %vm292_vm3, %v515_v58 }
 0x4d6   :  { %v6229_v63 = vpop.eup %6228  ;;  %v5762_v2 = vpack.c.bf16 %v6064_v61, %v6063_v62 }
 0x4d7   :  { %v516_v3 = vmul.f32 %v6229_v63, %v6221_v33  ;;  %v616_v4 = vpop.permute.xlu1 %615 }
 0x4d8   :  { %5764 = vmatprep.subr.msk.bf16.mxu0 %vm6616_vm2, %v5762_v2 }
 0x4d9   :  { %5377 = vmatmul.mubr.msk.f32.vlgmr.msra.gmra.mrb[2].mxu0 %vm292_vm3, %v516_v3 }
 0x4da   :  { %5383 = vmatprep.mubr.msk.f32.mxu0 %vm208_vm1, %v616_v4 }
 0x4de   :  { %5767 = vmatpush3.bf16.xpose.msk.msra.mxu0 %vm6616_vm2, %v5762_v2 }
 0x4e5   :  { %5384 = vmatmul.mubr.msk.f32.vlgmr.msra.gmra.mrb[4].mxu0 %vm208_vm1, %v618_v5 }
 0x5a7   :  { %v5364_v6 = vpop.f32.mrb[0].mxu0 }
 0x5a8   :  { %403 = vst.msk [vmem:[#allocation2 + $0x8] sm:$0xff] %vm208_vm1, %v5364_v6  ;;  %v393_v7 = vpop.f32.mrb[1].mxu0 }
 0x5a9   :  { %402 = vst.msk [vmem:[#allocation2] sm:$0xff] %vm208_vm1, %v393_v7 }
 0x5ac   :  { %v6676_v8 = vpop.f32.mrb[2].mxu0 }
 0x5ad   :  { %v6678_v9 = vpop.f32.mrb[3].mxu0 }
 0x5b8   :  { %v5385_v10 = vpop.f32.mrb[4].mxu0 }
 0x5b9   :  { %v703_v11 = vadd.f32 %v5385_v10, %v6635_v59  ;;  %v697_v12 = vpop.f32.mrb[5].mxu0 }
 0x5ba   :  { %v698_v13 = vadd.f32 %v697_v12, %v6640_v60  ;;  %v6721_v12 = vld [vmem:[%s7453_s3 + $0x20] sm:$0xff] }
 0x5bb   :  { %v709_v14 = vsel %vm292_vm3, %v703_v11, -inf }
 0x5bc   :  { %710 = vmax.xlane.f32.xlu0 %v709_v14  ;;  %v706_v15 = vsel %vm292_vm3, %v698_v13, -inf  ;;  %v6731_v14 = vld [vmem:[%s7453_s3 + $0x30] sm:$0xff] }
 0x5bd   :  { %707 = vmax.xlane.f32.xlu1 %v706_v15 }
 0x5ce   :  { %6066 = vrot.lane.b32.xlu1 %v6604_v47, %s6461_s10 }
 0x5d2   :  { %826 = vrot.lane.b32.xlu1 %v6598_v46, %s6462_s11 }
 0x5d6   :  { %828 = vrot.lane.b32.xlu1 %v6596_v44, %s6462_s11 }
 0x649   :  { %v711_v16 = vpop.xlane.xlu0 %710 }
 0x64a   :  { %v713_v17 = vsub.f32 %v703_v11, %v711_v16  ;;  %v708_v18 = vpop.xlane.xlu1 %707  ;;  %v60_v16 = vld [vmem:[#allocation3] sm:$0xff] }
 0x64b   :  { %v712_v19 = vsub.f32 %v698_v13, %v708_v18  ;;  %v6726_v13 = vld [vmem:[%s7453_s3 + $0x28] sm:$0xff]  ;;  %v61_v18 = vld [vmem:[#allocation3 + $0x8] sm:$0xff] }
 0x64c   :  { %v716_v20 = vmul.f32 1.442695, %v713_v17  ;;  %v5790_v15 = vpack.c.bf16 %v6726_v13, %v6721_v12 }
 0x64d   :  { %v714_v21 = vmul.f32 1.442695, %v712_v19 }
 0x64e   :  { %6230 = vpow2.f32 %v716_v20  ;;  %v6067_v22 = vpop.permute.xlu1 %6066 }
 0x64f   :  { %v6069_v23 = vunpack.i.h.bf16 %v6067_v22  ;;  %v6068_v24 = vunpack.i.l.bf16 %v6067_v22  ;;  %6232 = vpow2.f32 %v714_v21 }
 0x651   :  { %v5768_v25 = vpack.c.bf16 %v6069_v23, %v6068_v24 }
 0x652   :  { %v827_v43 = vpop.permute.xlu1 %826 }
 0x653   :  { %5769 = vmatprep.subr.bf16.mxu1 %v5768_v25 }
 0x654   :  { %5771 = vmatpush3.bf16.msra.mxu1 %v5768_v25 }
 0x656   :  { %v829_v45 = vpop.permute.xlu1 %828 }
 0x658   :  { %v6231_v27 = vpop.eup %6230 }
 0x659   :  { %v721_v46 = vsel %vm292_vm3, %v6231_v27, 0.0  ;;  %v6233_v31 = vpop.eup %6232 }
 0x65a   :  { %722 = vadd.xlane.f32.xlu0 %v721_v46  ;;  %v718_v44 = vsel %vm292_vm3, %v6233_v31, 0.0  ;;  %v114_v46 = vld [vmem:[%s7454_s4 + $0x8] sm:$0xff] }
 0x65e   :  { %719 = vadd.xlane.f32.xlu0 %v718_v44  ;;  %v115_v44 = vld [vmem:[%s7454_s4 + $0x10] sm:$0xff] }
 0x674   :  { %6071 = vrot.lane.b32.xlu0 %v6604_v47, %s6463_s0 }
 0x6e7   :  { %v723_v32 = vpop.xlane.xlu0 %722 }
 0x6e8   :  { %6234 = vrcp.f32 %v723_v32  ;;  %v116_v32 = vld [vmem:[%s7454_s4 + $0x18] sm:$0xff] }
 0x6eb   :  { %v720_v33 = vpop.xlane.xlu0 %719 }
 0x6ec   :  { %6236 = vrcp.f32 %v720_v33  ;;  %v5786_v33 = vpack.c.bf16 %v116_v32, %v115_v44 }
 0x6ef   :  { %v6072_v34 = vpop.permute.xlu0 %6071 }
 0x6f0   :  { %v6074_v35 = vunpack.i.h.bf16 %v6072_v34  ;;  %v6073_v36 = vunpack.i.l.bf16 %v6072_v34  ;;  %v6763_v34 = vld [vmem:[%s7457_s7 + $0x8] sm:$0xf] }
 0x6f2   :  { %v5772_v37 = vpack.c.bf16 %v6074_v35, %v6073_v36  ;;  %v6235_v38 = vpop.eup %6234  ;;  %v6767_v36 = vrot.slane %v6763_v34, %v6576_v28 }
 0x6f3   :  { %v727_v42 = vmul.f32 %v6235_v38, %v6231_v27  ;;  %v113_v27 = vld [vmem:[%s7454_s4] sm:$0xff] }
 0x6f4   :  { %5774 = vmatprep.subr.msk.bf16.mxu1 %vm6616_vm2, %v5772_v37 }
 0x6f6   :  { %v6237_v39 = vpop.eup %6236 }
 0x6f7   :  { %v726_v40 = vmul.f32 %v6237_v39, %v6233_v31  ;;  %v5782_v31 = vpack.c.bf16 %v114_v46, %v113_v27  ;;  %v6831_v27 = vld [vmem:[%s7452_s2 + $0x10] sm:$0xff] }
 0x6f9   :  { %5390 = vmatprep.mubr.msk.f32.mxu1 %vm292_vm3, %v726_v40 }
 0x6fa   :  { %5391 = vmatmul.mubr.msk.f32.vlgmr.msra.gmra.mrb[6].mxu1 %vm292_vm3, %v727_v42 }
 0x6fb   :  { %5777 = vmatpush3.bf16.xpose.msk.msra.mxu1 %vm6616_vm2, %v5772_v37  ;;  %5397 = vmatprep.mubr.msk.f32.mxu1 %vm208_vm1, %v827_v43 }
 0x6fc   :  { %5791 = vmatprep.subr.bf16.mxu1 %v5790_v15 }
 0x702   :  { %5398 = vmatmul.mubr.msk.f32.vlgmr.msra.gmra.mrb[8].mxu1 %vm208_vm1, %v829_v45 }
 0x703   :  { %5426 = vmatprep.mubr.msk.f32.mxu1 %vm69_vm0, %v60_v16  ;;  %5793 = vmatpush3.bf16.msra.mxu1 %v5790_v15 }
 0x7cd   :  { %v5392_v48 = vpop.f32.mrb[6].mxu1 }
 0x7ce   :  { %v806_v49 = vpop.f32.mrb[7].mxu1 }
 0x7d5   :  { %v5399_v50 = vpop.f32.mrb[8].mxu1 }
 0x7d6   :  { %v914_v51 = vadd.f32 %v5399_v50, %v6635_v59  ;;  %v908_v52 = vpop.f32.mrb[9].mxu1 }
 0x7d7   :  { %v909_v53 = vadd.f32 %v908_v52, %v6640_v60 }
 0x7d8   :  { %v920_v55 = vsel %vm292_vm3, %v914_v51, -inf }
 0x7d9   :  { %921 = vmax.xlane.f32.xlu0 %v920_v55  ;;  %v917_v56 = vsel %vm292_vm3, %v909_v53, -inf }
 0x7da   :  { %918 = vmax.xlane.f32.xlu1 %v917_v56 }
 0x7eb   :  { %6076 = vrot.lane.b32.xlu1 %v6604_v47, %s6464_s5 }
 0x7ef   :  { %608 = vrot.lane.b32.xlu1 %v6676_v8, %s6452_s16 }
 0x7f3   :  { %817 = vrot.lane.b32.xlu1 %v806_v49, %s6465_s12 }
 0x7f7   :  { %819 = vrot.lane.b32.xlu1 %v5392_v48, %s6465_s12 }
 0x866   :  { %v922_v59 = vpop.xlane.xlu0 %921 }
 0x867   :  { %v924_v60 = vsub.f32 %v914_v51, %v922_v59  ;;  %v919_v57 = vpop.xlane.xlu1 %918 }
 0x868   :  { %v923_v58 = vsub.f32 %v909_v53, %v919_v57 }
 0x869   :  { %v927_v61 = vmul.f32 1.442695, %v924_v60 }
 0x86a   :  { %v925_v62 = vmul.f32 1.442695, %v923_v58  ;;  %v1041_v58 = vsub.s32 7, %v6573_v26 }
 0x86b   :  { %v6077_v63 = vpop.permute.xlu1 %6076 }
 0x86c   :  { %6238 = vpow2.f32 %v925_v62  ;;  %v6079_v2 = vunpack.i.h.bf16 %v6077_v63  ;;  %v6078_v3 = vunpack.i.l.bf16 %v6077_v63 }
 0x86d   :  { %6240 = vpow2.f32 %v927_v61  ;;  %v1042_v61 = vrot.slane %v6581_v29, %v1041_v58 }
 0x86e   :  { %v5778_v47 = vpack.c.bf16 %v6079_v2, %v6078_v3 }
 0x86f   :  { %v609_v4 = vpop.permute.xlu1 %608 }
 0x870   :  { %614 = vst.msk [vmem:[#allocation2 + $0x8] sm:$0xff] %vm612_vm4, %v609_v4  ;;  %5779 = vmatprep.subr.bf16.mxu0 %v5778_v47 }
 0x871   :  { %5781 = vmatpush3.bf16.msra.mxu0 %v5778_v47 }
 0x872   :  { %5783 = vmatprep.subr.bf16.mxu0 %v5782_v31 }
 0x873   :  { %v818_v5 = vpop.permute.xlu1 %817 }
 0x876   :  { %v6239_v6 = vpop.eup %6238 }
 0x877   :  { %v820_v7 = vpop.permute.xlu1 %819  ;;  %v929_v8 = vsel %vm292_vm3, %v6239_v6, 0.0  ;;  %v6241_v10 = vpop.eup %6240 }
 0x878   :  { %825 = vst.msk [vmem:[#allocation2 + $0x8] sm:$0xff] %vm823_vm5, %v820_v7  ;;  %930 = vadd.xlane.f32.xlu0 %v929_v8  ;;  %v932_v11 = vsel %vm292_vm3, %v6241_v10, 0.0 }
 0x87c   :  { %933 = vadd.xlane.f32.xlu0 %v932_v11 }
 0x892   :  { %606 = vrot.lane.b32.xlu0 %v6678_v9, %s6452_s16  ;;  %v6738_v9 = vld [vmem:[%s7453_s3 + $0x38] sm:$0xff] }
 0x893   :  { %v5794_v17 = vpack.c.bf16 %v6738_v9, %v6731_v14 }
 0x895   :  { %5795 = vmatprep.subr.bf16.mxu1 %v5794_v17 }
 0x896   :  { %5797 = vmatpush3.bf16.msra.mxu1 %v5794_v17 }
 0x899   :  { %5427 = vmatmul.mubr.msk.f32.vlgmr.msra.gmra.mrb[10].mxu1 %vm69_vm0, %v61_v18 }
 0x905   :  { %v931_v19 = vpop.xlane.xlu0 %930 }
 0x906   :  { %6242 = vrcp.f32 %v931_v19 }
 0x909   :  { %v934_v20 = vpop.xlane.xlu0 %933 }
 0x90a   :  { %6244 = vrcp.f32 %v934_v20 }
 0x90d   :  { %v607_v21 = vpop.permute.xlu0 %606 }
 0x90e   :  { %613 = vst.msk [vmem:[#allocation2] sm:$0xff] %vm612_vm4, %v607_v21 }
 0x90f   :  { %824 = vst.msk [vmem:[#allocation2] sm:$0xff] %vm823_vm5, %v818_v5 }
 0x910   :  { %v6243_v22 = vpop.eup %6242 }
 0x911   :  { %v937_v23 = vmul.f32 %v6243_v22, %v6239_v6 }
 0x913   :  { %5404 = vmatprep.mubr.msk.f32.mxu0 %vm292_vm3, %v937_v23  ;;  %v6095_v23 = vpack.i.bf16 %v6738_v9, %v6731_v14 }
 0x914   :  { %v6245_v24 = vpop.eup %6244 }
 0x915   :  { %v938_v25 = vmul.f32 %v6245_v24, %v6241_v10  ;;  %v6090_v24 = vpack.i.bf16 %v6726_v13, %v6721_v12 }
 0x917   :  { %5405 = vmatmul.mubr.msk.f32.vlgmr.msra.gmra.mrb[6].mxu0 %vm292_vm3, %v938_v25  ;;  %v6826_v25 = vld [vmem:[%s7452_s2 + $0x18] sm:$0xff] }
 0x918   :  { %5785 = vmatpush3.bf16.msra.mxu0 %v5782_v31 }
 0x919   :  { %5787 = vmatprep.subr.bf16.mxu0 %v5786_v33 }
 0x91c   :  { %5789 = vmatpush3.bf16.msra.mxu0 %v5786_v33 }
 0x96c   :  { %v5428_v35 = vpop.f32.mrb[10].mxu1 }
 0x96d   :  { %v1250_v37 = vpop.f32.mrb[11].mxu1  ;;  %v6771_v40 = vadd.f32 %v5428_v35, %v6767_v36 }
 0x96e   :  { %v6774_v42 = vadd.f32 %v1250_v37, %v6767_v36 }
 0x970   :  { %v6779_v43 = vpack.i.bf16 %v6771_v40, %v6774_v42  ;;  %5444 = vmatprep.mubr.msk.f32.mxu1 %vm208_vm1, %v6774_v42 }
 0x9ea   :  { %v5406_v38 = vpop.f32.mrb[6].mxu0 }
 0x9eb   :  { %1030 = vrot.lane.b32.xlu1 %v5406_v38, %s6466_s25  ;;  %v1017_v39 = vpop.f32.mrb[7].mxu0 }
 0x9ec   :  { %1028 = vrot.lane.b32.xlu0 %v1017_v39, %s6466_s25 }
 0x9f0   :  { %6081 = vrot.lane.b32.xlu0 %v6779_v43, %s6455_s23 }
 0x9f4   :  { %6086 = vrot.lane.b32.xlu0 %v6779_v43, %s6454_s22 }
 0xa5d   :  { %v1031_v45 = vpop.permute.xlu1 %1030 }
 0xa5e   :  { %1036 = vst.msk [vmem:[#allocation2 + $0x8] sm:$0xff] %vm1034_vm6, %v1031_v45  ;;  %v1029_v48 = vpop.permute.xlu0 %1028 }
 0xa5f   :  { %1035 = vst.msk [vmem:[#allocation2] sm:$0xff] %vm1034_vm6, %v1029_v48 }
 0xa62   :  { %v6082_v49 = vpop.permute.xlu0 %6081 }
 0xa63   :  { %v6084_v50 = vunpack.i.h.bf16 %v6082_v49  ;;  %v6083_v51 = vunpack.i.l.bf16 %v6082_v49 }
 0xa65   :  { %v5806_v52 = vpack.c.bf16 %v6084_v50, %v6083_v51  ;;  %v1038_v55 = vld [vmem:[#allocation2 + $0x8] sm:$0xff] }
 0xa66   :  { %v1037_v53 = vld [vmem:[#allocation2] sm:$0xff]  ;;  %v6087_v56 = vpop.permute.xlu0 %6086 }
 0xa67   :  { %5415 = vmatprep.mubr.msk.f32.mxu0 %vm69_vm0, %v1037_v53  ;;  %5808 = vmatprep.subr.msk.bf16.mxu1 %vm6616_vm2, %v5806_v52  ;;  %v6089_v59 = vunpack.i.h.bf16 %v6087_v56  ;;  %v6088_v60 = vunpack.i.l.bf16 %v6087_v56  ;;  %v6841_v53 = vsub.s32 3, %v6573_v26 }
 0xa68   :  { %5416 = vmatmul.mubr.msk.f32.vlgmr.msra.gmra.mrb[8].mxu0 %vm69_vm0, %v1038_v55  ;;  %5811 = vmatpush3.bf16.xpose.msk.msra.mxu1 %vm6616_vm2, %v5806_v52  ;;  %v6838_v52 = vsub.s32 2, %v6573_v26 }
 0xa69   :  { %v5816_v57 = vpack.c.bf16 %v6089_v59, %v6088_v60 }
 0xa6a   :  { %v1155_v55 = vrot.slane %v6581_v29, %v6838_v52 }
 0xa6b   :  { %5818 = vmatprep.subr.msk.bf16.mxu1 %vm6616_vm2, %v5816_v57 }
 0xa6f   :  { %5445 = vmatmul.mubr.msk.f32.vlgmr.msra.gmra.mrb[12].mxu1 %vm208_vm1, %v6771_v40 }
 0xa70   :  { %5821 = vmatpush3.bf16.xpose.msk.msra.mxu1 %vm6616_vm2, %v5816_v57 }
 0xb3b   :  { %v5417_v62 = vpop.f32.mrb[8].mxu0 }
 0xb3c   :  { %v1121_v63 = vadd.f32 %v5417_v62, %v1042_v61  ;;  %v1115_v2 = vpop.f32.mrb[9].mxu0 }
 0xb3d   :  { %v1116_v3 = vadd.f32 %v1115_v2, %v1042_v61  ;;  %v1161_v61 = vrot.slane %v6581_v29, %v6841_v53 }
 0xb3e   :  { %v1125_v47 = vadd.f32 %v1121_v63, %v6551_v1 }
 0xb3f   :  { %v1124_v4 = vadd.f32 %v1116_v3, %v6546_v0 }
 0xb40   :  { %v1129_v5 = vsel %vm69_vm0, %v1125_v47, 0.0 }
 0xb41   :  { %1130 = vadd.xlane.f32.xlu0 %v1129_v5  ;;  %v1126_v6 = vsel %vm69_vm0, %v1124_v4, 0.0 }
 0xb42   :  { %1127 = vadd.xlane.f32.xlu1 %v1126_v6  ;;  %v5446_v7 = vpop.f32.mrb[12].mxu1 }
 0xb43   :  { %v1440_v8 = vpop.f32.mrb[13].mxu1  ;;  %v1446_v46 = vadd.f32 %v5446_v7, %v6826_v25 }
 0xb44   :  { %v1441_v14 = vadd.f32 %v6831_v27, %v1440_v8 }
 0xb45   :  { %v1452_v9 = vsel %vm292_vm3, %v1446_v46, -inf }
 0xb46   :  { %v1449_v12 = vsel %vm292_vm3, %v1441_v14, -inf }
 0xb53   :  { %1556 = vrot.lane.b32.xlu1 %v6771_v40, %s6456_s24 }
 0xb57   :  { %1554 = vrot.lane.b32.xlu0 %v6774_v42, %s6456_s24 }
 0xbce   :  { %v1131_v10 = vpop.xlane.xlu0 %1130 }
 0xbcf   :  { %v1133_v11 = vmul.f32 0.03125, %v1131_v10  ;;  %v1128_v15 = vpop.xlane.xlu1 %1127 }
 0xbd0   :  { %v1132_v1 = vmul.f32 0.03125, %v1128_v15 }
 0xbd1   :  { %v1135_v16 = vsub.f32 %v1125_v47, %v1133_v11 }
 0xbd2   :  { %v1134_v0 = vsub.f32 %v1124_v4, %v1132_v1  ;;  %v1555_v17 = vpop.permute.xlu0 %1554 }
 0xbd3   :  { %5458 = vmatprep.mubr.msk.f32.mxu1 %vm208_vm1, %v1555_v17  ;;  %v1557_v18 = vpop.permute.xlu1 %1556  ;;  %v1137_v19 = vmul.f32 %v1135_v16, %v1135_v16 }
 0xbd4   :  { %5459 = vmatmul.mubr.msk.f32.vlgmr.msra.gmra.mrb[14].mxu1 %vm208_vm1, %v1557_v18  ;;  %v1136_v20 = vmul.f32 %v1134_v0, %v1134_v0 }
 0xbd5   :  { %v1141_v21 = vsel %vm69_vm0, %v1137_v19, 0.0 }
 0xbd6   :  { %1142 = vadd.xlane.f32.xlu0 %v1141_v21  ;;  %v1138_v22 = vsel %vm69_vm0, %v1136_v20, 0.0 }
 0xbd7   :  { %1139 = vadd.xlane.f32.xlu1 %v1138_v22 }
 0xbe8   :  { %6096 = vrot.lane.b32.xlu1 %v6095_v23, %s6458_s28 }
 0xbec   :  { %6091 = vrot.lane.b32.xlu0 %v6090_v24, %s6458_s28 }
 0xc0b   :  { %1453 = vmax.xlane.f32.xlu0 %v1452_v9 }
 0xc0c   :  { %1450 = vmax.xlane.f32.xlu1 %v1449_v12 }
 0xc63   :  { %v1143_v13 = vpop.xlane.xlu0 %1142 }
 0xc64   :  { %v1145_v31 = vmul.f32 0.03125, %v1143_v13  ;;  %v1140_v44 = vpop.xlane.xlu1 %1139 }
 0xc65   :  { %v1144_v32 = vmul.f32 0.03125, %v1140_v44 }
 0xc66   :  { %v1147_v33 = vadd.f32 1e-05, %v1145_v31 }
 0xc67   :  { %v1146_v35 = vadd.f32 1e-05, %v1144_v32  ;;  %v6092_v37 = vpop.permute.xlu0 %6091 }
 0xc68   :  { %6246 = vrsqrt.f32 %v1147_v33  ;;  %v6094_v38 = vunpack.i.h.bf16 %v6092_v37  ;;  %v6093_v39 = vunpack.i.l.bf16 %v6092_v37  ;;  %v6097_v45 = vpop.permute.xlu1 %6096 }
 0xc69   :  { %6248 = vrsqrt.f32 %v1146_v35  ;;  %v6099_v48 = vunpack.i.h.bf16 %v6097_v45  ;;  %v6098_v49 = vunpack.i.l.bf16 %v6097_v45 }
 0xc6a   :  { %v5798_v50 = vpack.c.bf16 %v6094_v38, %v6093_v39 }
 0xc6b   :  { %v5802_v51 = vpack.c.bf16 %v6099_v48, %v6098_v49 }
 0xc6c   :  { %5799 = vmatprep.subr.bf16.mxu0 %v5798_v50 }
 0xc6d   :  { %5801 = vmatpush3.bf16.msra.mxu0 %v5798_v50 }
 0xc6e   :  { %5803 = vmatprep.subr.bf16.mxu0 %v5802_v51 }
 0xc71   :  { %5805 = vmatpush3.bf16.msra.mxu0 %v5802_v51 }
 0xc72   :  { %v6247_v56 = vpop.eup %6246 }
 0xc73   :  { %v6249_v59 = vpop.eup %6248  ;;  %v1151_v60 = vmul.f32 %v6247_v56, %v1135_v16 }
 0xc74   :  { %v1150_v57 = vmul.f32 %v6249_v59, %v1134_v0 }
 0xc75   :  { %v1157_v62 = vmul.f32 %v1155_v55, %v1151_v60 }
 0xc76   :  { %v1156_v63 = vmul.f32 %v1155_v55, %v1150_v57 }
 0xc77   :  { %v6849_v3 = vadd.f32 %v1161_v61, %v1157_v62 }
 0xc78   :  { %v6847_v2 = vadd.f32 %v1161_v61, %v1156_v63 }
 0xc7a   :  { %5437 = vmatprep.mubr.msk.f32.mxu0 %vm69_vm0, %v6847_v2 }
 0xc7b   :  { %5438 = vmatmul.mubr.msk.f32.vlgmr.msra.gmra.mrb[10].mxu0 %vm69_vm0, %v6849_v3 }
 0xc98   :  { %v1454_v4 = vpop.xlane.xlu0 %1453 }
 0xc99   :  { %v1451_v47 = vpop.xlane.xlu1 %1450  ;;  %v1456_v6 = vsub.f32 %v1446_v46, %v1454_v4 }
 0xc9a   :  { %v1455_v5 = vsub.f32 %v1441_v14, %v1451_v47 }
 0xc9b   :  { %v1459_v8 = vmul.f32 1.442695, %v1456_v6 }
 0xc9c   :  { %v1457_v7 = vmul.f32 1.442695, %v1455_v5 }
 0xc9e   :  { %6250 = vpow2.f32 %v1457_v7 }
 0xc9f   :  { %6252 = vpow2.f32 %v1459_v8 }
 0xca7   :  { %v5460_v29 = vpop.f32.mrb[14].mxu1 }
 0xca8   :  { %v1642_v10 = vadd.f32 %v5460_v29, %v6826_v25  ;;  %v1636_v11 = vpop.f32.mrb[15].mxu1  ;;  %v6251_v16 = vpop.eup %6250 }
 0xca9   :  { %v1637_v15 = vadd.f32 %v6831_v27, %v1636_v11  ;;  %v1461_v17 = vsel %vm292_vm3, %v6251_v16, 0.0  ;;  %v6253_v18 = vpop.eup %6252 }
 0xcaa   :  { %v1648_v1 = vsel %vm292_vm3, %v1642_v10, -inf  ;;  %v1464_v19 = vsel %vm292_vm3, %v6253_v18, 0.0 }
 0xcab   :  { %1649 = vmax.xlane.f32.xlu1 %v1648_v1  ;;  %v1645_v0 = vsel %vm292_vm3, %v1637_v15, -inf }
 0xcac   :  { %1646 = vmax.xlane.f32.xlu0 %v1645_v0 }
 0xcaf   :  { %1462 = vadd.xlane.f32.xlu1 %v1461_v17 }
 0xcb3   :  { %1465 = vadd.xlane.f32.xlu1 %v1464_v19 }
 0xcc2   :  { %1276 = vrot.lane.b32.xlu0 %v6767_v36, %s6458_s28 }
 0xcc6   :  { %6106 = vrot.lane.b32.xlu0 %v6779_v43, %s6459_s30 }
 0xcca   :  { %1766 = vrot.lane.b32.xlu0 %v6774_v42, %s6460_s9 }
 0xcce   :  { %1768 = vrot.lane.b32.xlu0 %v6771_v40, %s6460_s9 }
 0xd38   :  { %v1650_v20 = vpop.xlane.xlu1 %1649 }
 0xd39   :  { %v1652_v21 = vsub.f32 %v1642_v10, %v1650_v20  ;;  %v1647_v22 = vpop.xlane.xlu0 %1646 }
 0xd3a   :  { %v1651_v23 = vsub.f32 %v1637_v15, %v1647_v22 }
 0xd3b   :  { %v1655_v24 = vmul.f32 1.442695, %v1652_v21 }
 0xd3c   :  { %v1653_v46 = vmul.f32 1.442695, %v1651_v23  ;;  %v1463_v14 = vpop.xlane.xlu1 %1462 }
 0xd3d   :  { %v1277_v33 = vpop.permute.xlu0 %1276 }
 0xd3e   :  { %6254 = vpow2.f32 %v1653_v46 }
 0xd3f   :  { %6256 = vrcp.f32 %v1463_v14 }
 0xd40   :  { %6258 = vpow2.f32 %v1655_v24  ;;  %v1466_v36 = vpop.xlane.xlu1 %1465 }
 0xd41   :  { %6260 = vrcp.f32 %v1466_v36  ;;  %v6107_v56 = vpop.permute.xlu0 %6106 }
 0xd42   :  { %v6109_v60 = vunpack.i.h.bf16 %v6107_v56  ;;  %v6108_v57 = vunpack.i.l.bf16 %v6107_v56 }
 0xd44   :  { %v5826_v5 = vpack.c.bf16 %v6109_v60, %v6108_v57 }
 0xd45   :  { %v1767_v8 = vpop.permute.xlu0 %1766 }
 0xd48   :  { %v6255_v9 = vpop.eup %6254 }
 0xd49   :  { %v6257_v12 = vpop.eup %6256  ;;  %v1657_v13 = vsel %vm292_vm3, %v6255_v9, 0.0  ;;  %v1769_v29 = vpop.permute.xlu0 %1768 }
 0xd4a   :  { %v6259_v31 = vpop.eup %6258  ;;  %1658 = vadd.xlane.f32.xlu1 %v1657_v13  ;;  %v1469_v44 = vmul.f32 %v6257_v12, %v6251_v16 }
 0xd4b   :  { %v1660_v32 = vsel %vm292_vm3, %v6259_v31, 0.0  ;;  %v6261_v49 = vpop.eup %6260 }
 0xd4c   :  { %5451 = vmatprep.mubr.msk.f32.mxu0 %vm292_vm3, %v1469_v44  ;;  %v1470_v50 = vmul.f32 %v6261_v49, %v6253_v18 }
 0xd4e   :  { %1661 = vadd.xlane.f32.xlu1 %v1660_v32  ;;  %v5439_v35 = vpop.f32.mrb[10].mxu0 }
 0xd4f   :  { %v1357_v37 = vadd.f32 %v5439_v35, %v1277_v33  ;;  %v1351_v38 = vpop.f32.mrb[11].mxu0 }
 0xd50   :  { %v1352_v39 = vadd.f32 %v1351_v38, %v1277_v33 }
 0xd52   :  { %v5812_v45 = vpack.c.bf16 %v1357_v37, %v1352_v39  ;;  %v6872_v48 = vpack.i.bf16 %v1357_v37, %v1352_v39 }
 0xd54   :  { %5813 = vmatprep.subr.bf16.mxu0 %v5812_v45 }
 0xd55   :  { %5815 = vmatpush3.bf16.msra.mxu0 %v5812_v45 }
 0xd58   :  { %5452 = vmatmul.mubr.msk.f32.vlgmr.msra.gmra.mrb[12].mxu0 %vm292_vm3, %v1470_v50 }
 0xd5f   :  { %6101 = vrot.lane.b32.xlu1 %v6872_v48, %s6456_s24 }
 0xdd7   :  { %v1659_v51 = vpop.xlane.xlu1 %1658 }
 0xdd8   :  { %6262 = vrcp.f32 %v1659_v51 }
 0xddb   :  { %v1662_v55 = vpop.xlane.xlu1 %1661 }
 0xddc   :  { %6264 = vrcp.f32 %v1662_v55 }
 0xddf   :  { %v6102_v59 = vpop.permute.xlu1 %6101 }
 0xde0   :  { %v6104_v61 = vunpack.i.h.bf16 %v6102_v59  ;;  %v6103_v62 = vunpack.i.l.bf16 %v6102_v59 }
 0xde2   :  { %v6263_v63 = vpop.eup %6262  ;;  %v5822_v47 = vpack.c.bf16 %v6104_v61, %v6103_v62 }
 0xde3   :  { %v1665_v4 = vmul.f32 %v6263_v63, %v6255_v9 }
 0xde4   :  { %5823 = vmatprep.subr.bf16.mxu0 %v5822_v47 }
 0xde5   :  { %5825 = vmatpush3.bf16.msra.mxu0 %v5822_v47  ;;  %5465 = vmatprep.mubr.msk.f32.mxu0 %vm292_vm3, %v1665_v4 }
 0xde6   :  { %v6265_v6 = vpop.eup %6264  ;;  %5828 = vmatprep.subr.msk.bf16.mxu0 %vm6616_vm2, %v5826_v5 }
 0xde7   :  { %v1666_v7 = vmul.f32 %v6265_v6, %v6259_v31 }
 0xde9   :  { %5466 = vmatmul.mubr.msk.f32.vlgmr.msra.gmra.mrb[14].mxu0 %vm292_vm3, %v1666_v7 }
 0xdea   :  { %5472 = vmatprep.mubr.msk.f32.mxu0 %vm208_vm1, %v1767_v8 }
 0xdee   :  { %5831 = vmatpush3.bf16.xpose.msk.msra.mxu0 %vm6616_vm2, %v5826_v5 }
 0xdf5   :  { %5473 = vmatmul.mubr.msk.f32.vlgmr.msra.gmra.mrb[16].mxu0 %vm208_vm1, %v1769_v29 }
 0xe2b   :  { %v5453_v10 = vpop.f32.mrb[12].mxu0 }
 0xe2c   :  { %1553 = vst.msk [vmem:[#allocation2 + $0x8] sm:$0xff] %vm208_vm1, %v5453_v10  ;;  %v1543_v11 = vpop.f32.mrb[13].mxu0 }
 0xe2d   :  { %1552 = vst.msk [vmem:[#allocation2] sm:$0xff] %vm208_vm1, %v1543_v11 }
 0xebc   :  { %v6887_v15 = vpop.f32.mrb[14].mxu0 }
 0xebd   :  { %v6889_v1 = vpop.f32.mrb[15].mxu0 }
 0xec8   :  { %v5474_v16 = vpop.f32.mrb[16].mxu0 }
 0xec9   :  { %v1854_v0 = vadd.f32 %v5474_v16, %v6826_v25  ;;  %v1848_v17 = vpop.f32.mrb[17].mxu0 }
 0xeca   :  { %v1849_v18 = vadd.f32 %v6831_v27, %v1848_v17 }
 0xecb   :  { %v1860_v19 = vsel %vm292_vm3, %v1854_v0, -inf }
 0xecc   :  { %1861 = vmax.xlane.f32.xlu0 %v1860_v19  ;;  %v1857_v20 = vsel %vm292_vm3, %v1849_v18, -inf }
 0xecd   :  { %1858 = vmax.xlane.f32.xlu1 %v1857_v20 }
 0xede   :  { %6111 = vrot.lane.b32.xlu1 %v6872_v48, %s6460_s9 }
 0xee2   :  { %1976 = vrot.lane.b32.xlu1 %v6774_v42, %s6462_s11 }
 0xee6   :  { %1978 = vrot.lane.b32.xlu1 %v6771_v40, %s6462_s11 }
 0xf59   :  { %v1862_v21 = vpop.xlane.xlu0 %1861 }
 0xf5a   :  { %v1864_v22 = vsub.f32 %v1854_v0, %v1862_v21  ;;  %v1859_v23 = vpop.xlane.xlu1 %1858 }
 0xf5b   :  { %v1863_v24 = vsub.f32 %v1849_v18, %v1859_v23 }
 0xf5c   :  { %v1867_v46 = vmul.f32 1.442695, %v1864_v22 }
 0xf5d   :  { %v1865_v14 = vmul.f32 1.442695, %v1863_v24 }
 0xf5e   :  { %6266 = vpow2.f32 %v1867_v46  ;;  %v6112_v36 = vpop.permute.xlu1 %6111 }
 0xf5f   :  { %v6114_v9 = vunpack.i.h.bf16 %v6112_v36  ;;  %v6113_v12 = vunpack.i.l.bf16 %v6112_v36  ;;  %6268 = vpow2.f32 %v1865_v14  ;;  %v4995_v36 = vld [vmem:[%s7454_s4 + $0x28] sm:$0xff] }
 0xf61   :  { %v5832_v13 = vpack.c.bf16 %v6114_v9, %v6113_v12  ;;  %v4996_v12 = vld [vmem:[%s7454_s4 + $0x30] sm:$0xff] }
 0xf62   :  { %v1977_v55 = vpop.permute.xlu1 %1976 }
 0xf63   :  { %5833 = vmatprep.subr.bf16.mxu1 %v5832_v13 }
 0xf64   :  { %5835 = vmatpush3.bf16.msra.mxu1 %v5832_v13  ;;  %v4997_v13 = vld [vmem:[%s7454_s4 + $0x38] sm:$0xff] }
 0xf68   :  { %v6267_v31 = vpop.eup %6266 }
 0xf69   :  { %v1872_v42 = vsel %vm292_vm3, %v6267_v31, 0.0  ;;  %v6269_v44 = vpop.eup %6268 }
 0xf6a   :  { %1873 = vadd.xlane.f32.xlu0 %v1872_v42  ;;  %v1869_v40 = vsel %vm292_vm3, %v6269_v44, 0.0 }
 0xf6e   :  { %1870 = vadd.xlane.f32.xlu0 %v1869_v40 }
 0xf84   :  { %6116 = vrot.lane.b32.xlu0 %v6779_v43, %s6463_s0  ;;  %v1979_v43 = vpop.permute.xlu1 %1978 }
 0xff7   :  { %v1874_v32 = vpop.xlane.xlu0 %1873 }
 0xff8   :  { %6270 = vrcp.f32 %v1874_v32 }
 0xffb   :  { %v1871_v33 = vpop.xlane.xlu0 %1870 }
 0xffc   :  { %6272 = vrcp.f32 %v1871_v33 }
 0xfff   :  { %v6117_v35 = vpop.permute.xlu0 %6116 }
0x1000   :  { %v6119_v37 = vunpack.i.h.bf16 %v6117_v35  ;;  %v6118_v38 = vunpack.i.l.bf16 %v6117_v35 }
0x1002   :  { %v5836_v39 = vpack.c.bf16 %v6119_v37, %v6118_v38  ;;  %v6271_v45 = vpop.eup %6270  ;;  %v2191_v37 = vrot.slane %v6763_v34, %v6584_v30 }
0x1003   :  { %v1878_v51 = vmul.f32 %v6271_v45, %v6267_v31  ;;  %v5850_v31 = vpack.c.bf16 %v4997_v13, %v4996_v12  ;;  %v2414_v13 = vld [vmem:[%s7456_s6 + $0x10] sm:$0xff] }
0x1004   :  { %5838 = vmatprep.subr.msk.bf16.mxu1 %vm6616_vm2, %v5836_v39 }
0x1006   :  { %v6273_v49 = vpop.eup %6272 }
0x1007   :  { %v1877_v50 = vmul.f32 %v6273_v49, %v6269_v44 }
0x1009   :  { %5479 = vmatprep.mubr.msk.f32.mxu1 %vm292_vm3, %v1877_v50 }
0x100a   :  { %5480 = vmatmul.mubr.msk.f32.vlgmr.msra.gmra.mrb[16].mxu1 %vm292_vm3, %v1878_v51 }
0x100b   :  { %5841 = vmatpush3.bf16.xpose.msk.msra.mxu1 %vm6616_vm2, %v5836_v39  ;;  %5486 = vmatprep.mubr.msk.f32.mxu1 %vm208_vm1, %v1977_v55 }
0x1012   :  { %5487 = vmatmul.mubr.msk.f32.vlgmr.msra.gmra.mrb[18].mxu1 %vm208_vm1, %v1979_v43 }
0x10dd   :  { %v5481_v56 = vpop.f32.mrb[16].mxu1 }
0x10de   :  { %v1957_v59 = vpop.f32.mrb[17].mxu1 }
0x10e5   :  { %v5488_v60 = vpop.f32.mrb[18].mxu1 }
0x10e6   :  { %v2064_v57 = vadd.f32 %v5488_v60, %v6826_v25  ;;  %v2058_v61 = vpop.f32.mrb[19].mxu1 }
0x10e7   :  { %v2059_v62 = vadd.f32 %v6831_v27, %v2058_v61 }
0x10e8   :  { %v2070_v63 = vsel %vm292_vm3, %v2064_v57, -inf }
0x10e9   :  { %2071 = vmax.xlane.f32.xlu0 %v2070_v63  ;;  %v2067_v47 = vsel %vm292_vm3, %v2059_v62, -inf }
0x10ea   :  { %2068 = vmax.xlane.f32.xlu1 %v2067_v47 }
0x10fb   :  { %6121 = vrot.lane.b32.xlu1 %v6872_v48, %s6462_s11 }
0x10ff   :  { %1760 = vrot.lane.b32.xlu1 %v6887_v15, %s6452_s16 }
0x1103   :  { %1968 = vrot.lane.b32.xlu1 %v1957_v59, %s6465_s12 }
0x1107   :  { %1970 = vrot.lane.b32.xlu1 %v5481_v56, %s6465_s12 }
0x1176   :  { %v2072_v25 = vpop.xlane.xlu0 %2071 }
0x1177   :  { %v2074_v4 = vsub.f32 %v2064_v57, %v2072_v25  ;;  %v2069_v5 = vpop.xlane.xlu1 %2068 }
0x1178   :  { %v2073_v27 = vsub.f32 %v2059_v62, %v2069_v5 }
0x1179   :  { %v2077_v6 = vmul.f32 1.442695, %v2074_v4  ;;  %v2314_v4 = vld [vmem:[#allocation6 + $0x8] sm:$0xff] }
0x117a   :  { %v2075_v7 = vmul.f32 1.442695, %v2073_v27  ;;  %v2315_v27 = vld [vmem:[#allocation6 + $0x10] sm:$0xff] }
0x117b   :  { %v6122_v8 = vpop.permute.xlu1 %6121 }
0x117c   :  { %6274 = vpow2.f32 %v2075_v7  ;;  %v6124_v29 = vunpack.i.h.bf16 %v6122_v8  ;;  %v6123_v10 = vunpack.i.l.bf16 %v6122_v8 }
0x117d   :  { %6276 = vpow2.f32 %v2077_v6  ;;  %v2316_v6 = vld [vmem:[#allocation6 + $0x18] sm:$0xff] }
0x117e   :  { %v5842_v11 = vpack.c.bf16 %v6124_v29, %v6123_v10  ;;  %v5858_v7 = vpack.c.bf16 %v2316_v6, %v2315_v27 }
0x117f   :  { %v1761_v48 = vpop.permute.xlu1 %1760 }
0x1180   :  { %1765 = vst.msk [vmem:[#allocation2 + $0x8] sm:$0xff] %vm612_vm4, %v1761_v48  ;;  %5843 = vmatprep.subr.bf16.mxu0 %v5842_v11 }
0x1181   :  { %5845 = vmatpush3.bf16.msra.mxu0 %v5842_v11 }
0x1183   :  { %v1969_v15 = vpop.permute.xlu1 %1968 }
0x1186   :  { %v6275_v16 = vpop.eup %6274 }
0x1187   :  { %v1971_v0 = vpop.permute.xlu1 %1970  ;;  %v2079_v17 = vsel %vm292_vm3, %v6275_v16, 0.0  ;;  %v6277_v18 = vpop.eup %6276 }
0x1188   :  { %1975 = vst.msk [vmem:[#allocation2 + $0x8] sm:$0xff] %vm823_vm5, %v1971_v0  ;;  %2080 = vadd.xlane.f32.xlu0 %v2079_v17  ;;  %v2082_v19 = vsel %vm292_vm3, %v6277_v18, 0.0  ;;  %v2309_v0 = vsub.s32 5, %v6573_v26  ;;  %v6370_v17 = vld [vmem:[%s7457_s7] sm:$0xff] }
0x118c   :  { %2083 = vadd.xlane.f32.xlu0 %v2082_v19 }
0x11a2   :  { %1758 = vrot.lane.b32.xlu0 %v6889_v1, %s6452_s16  ;;  %v4994_v1 = vld [vmem:[%s7454_s4 + $0x20] sm:$0xff] }
0x11a3   :  { %v5846_v9 = vpack.c.bf16 %v4995_v36, %v4994_v1  ;;  %v2412_v36 = vld [vmem:[%s7456_s6] sm:$0xff] }
0x11a5   :  { %5847 = vmatprep.subr.bf16.mxu0 %v5846_v9 }
0x1215   :  { %v2081_v20 = vpop.xlane.xlu0 %2080 }
0x1216   :  { %6278 = vrcp.f32 %v2081_v20 }
0x1219   :  { %v2084_v21 = vpop.xlane.xlu0 %2083 }
0x121a   :  { %6280 = vrcp.f32 %v2084_v21  ;;  %v2310_v21 = vrot.slane %v6370_v17, %v2309_v0 }
0x121d   :  { %v1759_v22 = vpop.permute.xlu0 %1758 }
0x121e   :  { %1764 = vst.msk [vmem:[#allocation2] sm:$0xff] %vm612_vm4, %v1759_v22 }
0x121f   :  { %1974 = vst.msk [vmem:[#allocation2] sm:$0xff] %vm823_vm5, %v1969_v15 }
0x1220   :  { %v6279_v23 = vpop.eup %6278 }
0x1221   :  { %v2087_v24 = vmul.f32 %v6279_v23, %v6275_v16  ;;  %v2303_v16 = vsub.s32 4, %v6573_v26 }
0x1223   :  { %5493 = vmatprep.mubr.msk.f32.mxu0 %vm292_vm3, %v2087_v24 }
0x1224   :  { %v6281_v46 = vpop.eup %6280 }
0x1225   :  { %v2088_v14 = vmul.f32 %v6281_v46, %v6277_v18  ;;  %v2304_v18 = vrot.slane %v6370_v17, %v2303_v16 }
0x1227   :  { %5494 = vmatmul.mubr.msk.f32.vlgmr.msra.gmra.mrb[18].mxu0 %vm292_vm3, %v2088_v14 }
0x1228   :  { %5849 = vmatpush3.bf16.msra.mxu0 %v5846_v9  ;;  %v2413_v9 = vld [vmem:[%s7456_s6 + $0x8] sm:$0xff] }
0x1229   :  { %5851 = vmatprep.subr.bf16.mxu0 %v5850_v31  ;;  %v5862_v12 = vpack.c.bf16 %v2413_v9, %v2412_v36 }
0x122c   :  { %5853 = vmatpush3.bf16.msra.mxu0 %v5850_v31  ;;  %v2415_v31 = vld [vmem:[%s7456_s6 + $0x18] sm:$0xff] }
0x122d   :  { %5863 = vmatprep.subr.bf16.mxu0 %v5862_v12 }
0x12fa   :  { %v5495_v42 = vpop.f32.mrb[18].mxu0 }
0x12fb   :  { %2180 = vrot.lane.b32.xlu1 %v5495_v42, %s6466_s25  ;;  %v2167_v44 = vpop.f32.mrb[19].mxu0  ;;  %v5866_v42 = vpack.c.bf16 %v2415_v31, %v2414_v13  ;;  %v7027_v31 = vld [vmem:[%s7457_s7 + $0x10] sm:$0xff] }
0x12fc   :  { %2178 = vrot.lane.b32.xlu0 %v2167_v44, %s6466_s25  ;;  %v2416_v44 = vld [vmem:[%s7456_s6 + $0x20] sm:$0xff] }
0x136d   :  { %v2181_v40 = vpop.permute.xlu1 %2180 }
0x136e   :  { %2185 = vst.msk [vmem:[#allocation2 + $0x8] sm:$0xff] %vm1034_vm6, %v2181_v40  ;;  %v2179_v32 = vpop.permute.xlu0 %2178  ;;  %v2417_v40 = vld [vmem:[%s7456_s6 + $0x28] sm:$0xff] }
0x136f   :  { %2184 = vst.msk [vmem:[#allocation2] sm:$0xff] %vm1034_vm6, %v2179_v32  ;;  %v5870_v32 = vpack.c.bf16 %v2417_v40, %v2416_v44 }
0x1375   :  { %v2187_v35 = vld [vmem:[#allocation2 + $0x8] sm:$0xff] }
0x1376   :  { %v2186_v33 = vld [vmem:[#allocation2] sm:$0xff] }
0x1377   :  { %5504 = vmatprep.mubr.msk.f32.mxu0 %vm69_vm0, %v2186_v33  ;;  %v2418_v33 = vld [vmem:[%s7456_s6 + $0x30] sm:$0xff] }
0x1378   :  { %5505 = vmatmul.mubr.msk.f32.vlgmr.msra.gmra.mrb[20].mxu0 %vm69_vm0, %v2187_v35  ;;  %v2419_v35 = vld [vmem:[%s7456_s6 + $0x38] sm:$0xff] }
0x1379   :  { %5865 = vmatpush3.bf16.msra.mxu0 %v5862_v12 }
0x137a   :  { %5867 = vmatprep.subr.bf16.mxu0 %v5866_v42 }
0x137d   :  { %5869 = vmatpush3.bf16.msra.mxu0 %v5866_v42  ;;  %v2540_v42 = vrot.slane %v7027_v31, %v6576_v28 }
0x137e   :  { %5871 = vmatprep.subr.bf16.mxu0 %v5870_v32 }
0x1381   :  { %5873 = vmatpush3.bf16.msra.mxu0 %v5870_v32 }
0x144b   :  { %v5506_v38 = vpop.f32.mrb[20].mxu0 }
0x144c   :  { %v2270_v39 = vadd.f32 %v5506_v38, %v2191_v37  ;;  %v2264_v45 = vpop.f32.mrb[21].mxu0  ;;  %v2320_v38 = vrot.slane %v6763_v34, %v6838_v52 }
0x144d   :  { %v2265_v49 = vadd.f32 %v2264_v45, %v2191_v37  ;;  %v5874_v37 = vpack.c.bf16 %v2419_v35, %v2418_v33  ;;  %v2546_v35 = vrot.slane %v7027_v31, %v6584_v30 }
0x144e   :  { %v2274_v50 = vadd.f32 %v2270_v39, %v6849_v3 }
0x144f   :  { %v2273_v51 = vadd.f32 %v2265_v49, %v6847_v2  ;;  %v2313_v2 = vld [vmem:[#allocation6] sm:$0xff]  ;;  %5875 = vmatprep.subr.bf16.mxu0 %v5874_v37 }
0x1450   :  { %v2278_v55 = vsel %vm69_vm0, %v2274_v50, 0.0  ;;  %v5854_v5 = vpack.c.bf16 %v2314_v4, %v2313_v2  ;;  %5877 = vmatpush3.bf16.msra.mxu0 %v5874_v37 }
0x1451   :  { %2279 = vadd.xlane.f32.xlu1 %v2278_v55  ;;  %v2275_v43 = vsel %vm69_vm0, %v2273_v51, 0.0 }
0x1452   :  { %2276 = vadd.xlane.f32.xlu0 %v2275_v43  ;;  %5855 = vmatprep.subr.bf16.mxu1 %v5854_v5 }
0x1453   :  { %5857 = vmatpush3.bf16.msra.mxu1 %v5854_v5 }
0x1454   :  { %5859 = vmatprep.subr.bf16.mxu1 %v5858_v7 }
0x1457   :  { %5861 = vmatpush3.bf16.msra.mxu1 %v5858_v7 }
0x14de   :  { %v2280_v56 = vpop.xlane.xlu1 %2279 }
0x14df   :  { %v2282_v59 = vmul.f32 0.03125, %v2280_v56  ;;  %v2277_v60 = vpop.xlane.xlu0 %2276 }
0x14e0   :  { %v2281_v57 = vmul.f32 0.03125, %v2277_v60 }
0x14e1   :  { %v2284_v61 = vsub.f32 %v2274_v50, %v2282_v59 }
0x14e2   :  { %v2283_v62 = vsub.f32 %v2273_v51, %v2281_v57 }
0x14e3   :  { %v2286_v25 = vmul.f32 %v2284_v61, %v2284_v61 }
0x14e4   :  { %v2285_v63 = vmul.f32 %v2283_v62, %v2283_v62 }
0x14e5   :  { %v2290_v3 = vsel %vm69_vm0, %v2286_v25, 0.0 }
0x14e6   :  { %v2287_v47 = vsel %vm69_vm0, %v2285_v63, 0.0 }
0x14e7   :  { %2288 = vadd.xlane.f32.xlu0 %v2287_v47  ;;  %v2423_v47 = vrot.slane %v6763_v34, %v6841_v53 }
0x14eb   :  { %2291 = vadd.xlane.f32.xlu0 %v2290_v3 }
0x1574   :  { %v2289_v8 = vpop.xlane.xlu0 %2288 }
0x1575   :  { %v2293_v29 = vmul.f32 0.03125, %v2289_v8 }
0x1577   :  { %v2295_v10 = vadd.f32 1e-05, %v2293_v29 }
0x1578   :  { %v2292_v11 = vpop.xlane.xlu0 %2291 }
0x1579   :  { %6282 = vrsqrt.f32 %v2295_v10  ;;  %v2294_v48 = vmul.f32 0.03125, %v2292_v11 }
0x157b   :  { %v2296_v15 = vadd.f32 1e-05, %v2294_v48 }
0x157d   :  { %6284 = vrsqrt.f32 %v2296_v15 }
0x1583   :  { %v6283_v19 = vpop.eup %6282 }
0x1584   :  { %v2299_v20 = vmul.f32 %v6283_v19, %v2283_v62 }
0x1586   :  { %v2305_v22 = vmul.f32 %v2304_v18, %v2299_v20  ;;  %v5034_v20 = vld [vmem:[%s7453_s3 + $0x40] sm:$0xff] }
0x1587   :  { %v6285_v23 = vpop.eup %6284 }
0x1588   :  { %v2300_v24 = vmul.f32 %v6285_v23, %v2284_v61  ;;  %v2311_v46 = vadd.f32 %v2310_v21, %v2305_v22  ;;  %v5036_v23 = vld [vmem:[%s7453_s3 + $0x50] sm:$0xff] }
0x158a   :  { %v2306_v14 = vmul.f32 %v2304_v18, %v2300_v24  ;;  %5515 = vmatprep.mubr.msk.f32.mxu1 %vm69_vm0, %v2311_v46  ;;  %v5037_v24 = vld [vmem:[%s7453_s3 + $0x58] sm:$0xff] }
0x158c   :  { %v2312_v1 = vadd.f32 %v2310_v21, %v2306_v14  ;;  %v5035_v21 = vld [vmem:[%s7453_s3 + $0x48] sm:$0xff] }
0x158d   :  { %v5878_v22 = vpack.c.bf16 %v5035_v21, %v5034_v20 }
0x158e   :  { %5516 = vmatmul.mubr.msk.f32.vlgmr.msra.gmra.mrb[20].mxu1 %vm69_vm0, %v2312_v1 }
0x158f   :  { %5879 = vmatprep.subr.bf16.mxu1 %v5878_v22 }
0x1590   :  { %5881 = vmatpush3.bf16.msra.mxu1 %v5878_v22 }
0x1661   :  { %v5517_v39 = vpop.f32.mrb[20].mxu1 }
0x1662   :  { %v2399_v45 = vadd.f32 %v5517_v39, %v2320_v38  ;;  %v2393_v49 = vpop.f32.mrb[21].mxu1 }
0x1663   :  { %v2394_v50 = vadd.f32 %v2393_v49, %v2320_v38  ;;  %v2562_v49 = vrot.slane %v7027_v31, %v119_v41 }
0x1664   :  { %v2405_v51 = vmul.f32 0.70710677, %v2399_v45  ;;  %v2403_v61 = vmul.f32 0.5, %v2399_v45 }
0x1665   :  { %v2404_v55 = vmul.f32 0.70710677, %v2394_v50  ;;  %v2402_v60 = vmul.f32 0.5, %v2394_v50 }
0x1666   :  { %6286 = verf.f32 %v2405_v51 }
0x1667   :  { %6288 = verf.f32 %v2404_v55 }
0x1670   :  { %v6287_v43 = vpop.eup %6286 }
0x1671   :  { %v6289_v56 = vpop.eup %6288  ;;  %v2409_v59 = vadd.f32 1.0, %v6287_v43 }
0x1672   :  { %v2408_v57 = vadd.f32 1.0, %v6289_v56 }
0x1673   :  { %v2411_v63 = vmul.f32 %v2409_v59, %v2403_v61 }
0x1674   :  { %v2410_v62 = vmul.f32 %v2408_v57, %v2402_v60 }
0x1676   :  { %5534 = vmatprep.mubr.msk.f32.mxu0 %vm2424_vm7, %v2410_v62 }
0x1677   :  { %5535 = vmatmul.mubr.msk.f32.vlgmr.msra.gmra.mrb[22].mxu0 %vm2424_vm7, %v2411_v63 }
0x174a   :  { %v5536_v25 = vpop.f32.mrb[22].mxu0 }
0x174b   :  { %v2503_v3 = vadd.f32 %v5536_v25, %v2423_v47  ;;  %v2497_v2 = vpop.f32.mrb[23].mxu0 }
0x174c   :  { %v2498_v4 = vadd.f32 %v2497_v2, %v2423_v47 }
0x174d   :  { %v7000_v5 = vadd.f32 %v2503_v3, %v2312_v1 }
0x174e   :  { %v7002_v27 = vadd.f32 %v2498_v4, %v2311_v46  ;;  %v5882_v46 = vpack.c.bf16 %v5037_v24, %v5036_v23  ;;  %v7071_v4 = vld [vmem:[%s7452_s2 + $0x8] sm:$0xff] }
0x174f   :  { %v2514_v6 = vsel %vm69_vm0, %v7000_v5, 0.0 }
0x1750   :  { %2515 = vadd.xlane.f32.xlu1 %v2514_v6  ;;  %v2511_v7 = vsel %vm69_vm0, %v7002_v27, 0.0  ;;  %5883 = vmatprep.subr.bf16.mxu1 %v5882_v46 }
0x1751   :  { %2512 = vadd.xlane.f32.xlu0 %v2511_v7  ;;  %5885 = vmatpush3.bf16.msra.mxu1 %v5882_v46 }
0x17dd   :  { %v2516_v8 = vpop.xlane.xlu1 %2515 }
0x17de   :  { %v2518_v29 = vmul.f32 0.03125, %v2516_v8  ;;  %v2513_v10 = vpop.xlane.xlu0 %2512  ;;  %v7077_v8 = vld [vmem:[%s7452_s2] sm:$0xff] }
0x17df   :  { %v2517_v34 = vmul.f32 0.03125, %v2513_v10 }
0x17e0   :  { %v2520_v11 = vsub.f32 %v7000_v5, %v2518_v29 }
0x17e1   :  { %v2519_v48 = vsub.f32 %v7002_v27, %v2517_v34 }
0x17e2   :  { %v2522_v15 = vmul.f32 %v2520_v11, %v2520_v11 }
0x17e3   :  { %v2521_v17 = vmul.f32 %v2519_v48, %v2519_v48 }
0x17e4   :  { %v2526_v18 = vsel %vm69_vm0, %v2522_v15, 0.0 }
0x17e5   :  { %2527 = vadd.xlane.f32.xlu1 %v2526_v18  ;;  %v2523_v19 = vsel %vm69_vm0, %v2521_v17, 0.0 }
0x17e6   :  { %2524 = vadd.xlane.f32.xlu0 %v2523_v19 }
0x1872   :  { %v2528_v14 = vpop.xlane.xlu1 %2527 }
0x1873   :  { %v2530_v1 = vmul.f32 0.03125, %v2528_v14  ;;  %v2525_v36 = vpop.xlane.xlu0 %2524 }
0x1874   :  { %v2529_v9 = vmul.f32 0.03125, %v2525_v36 }
0x1875   :  { %v2532_v12 = vadd.f32 1e-05, %v2530_v1 }
0x1876   :  { %v2531_v13 = vadd.f32 1e-05, %v2529_v9 }
0x1877   :  { %6290 = vrsqrt.f32 %v2532_v12 }
0x1878   :  { %6292 = vrsqrt.f32 %v2531_v13 }
0x1881   :  { %v6291_v44 = vpop.eup %6290 }
0x1882   :  { %v6293_v40 = vpop.eup %6292  ;;  %v2536_v32 = vmul.f32 %v6291_v44, %v2520_v11 }
0x1883   :  { %v2535_v33 = vmul.f32 %v6293_v40, %v2519_v48 }
0x1884   :  { %v2542_v37 = vmul.f32 %v2540_v42, %v2536_v32 }
0x1885   :  { %v2541_v38 = vmul.f32 %v2540_v42, %v2535_v33 }
0x1886   :  { %v2548_v45 = vadd.f32 %v2546_v35, %v2542_v37 }
0x1887   :  { %v2547_v39 = vadd.f32 %v2546_v35, %v2541_v38 }
0x1889   :  { %5545 = vmatprep.mubr.msk.f32.mxu1 %vm69_vm0, %v2547_v39 }
0x188a   :  { %5546 = vmatmul.mubr.msk.f32.vlgmr.msra.gmra.mrb[22].mxu1 %vm69_vm0, %v2548_v45 }
0x195d   :  { %v5547_v50 = vpop.f32.mrb[22].mxu1 }
0x195e   :  { %v7038_v51 = vadd.f32 %v5547_v50, %v2562_v49  ;;  %v2635_v55 = vpop.f32.mrb[23].mxu1 }
0x195f   :  { %v7040_v43 = vadd.f32 %v2635_v55, %v2562_v49 }
0x1961   :  { %5552 = vmatprep.mubr.msk.f32.mxu1 %vm208_vm1, %v7040_v43  ;;  %v7046_v56 = vpack.i.bf16 %v7038_v51, %v7040_v43 }
0x1963   :  { %6131 = vrot.lane.b32.xlu1 %v7046_v56, %s6454_s22  ;;  %6126 = vrot.lane.b32.xlu0 %v7046_v56, %s6455_s23 }
0x1967   :  { %2844 = vrot.lane.b32.xlu1 %v7040_v43, %s6456_s24 }
0x196b   :  { %2846 = vrot.lane.b32.xlu1 %v7038_v51, %s6456_s24 }
0x19d5   :  { %v6132_v41 = vpop.permute.xlu1 %6131  ;;  %v6127_v59 = vpop.permute.xlu0 %6126 }
0x19d6   :  { %v6134_v60 = vunpack.i.h.bf16 %v6132_v41  ;;  %v6133_v57 = vunpack.i.l.bf16 %v6132_v41  ;;  %v6129_v61 = vunpack.i.h.bf16 %v6127_v59  ;;  %v6128_v62 = vunpack.i.l.bf16 %v6127_v59 }
0x19d8   :  { %v5886_v63 = vpack.c.bf16 %v6129_v61, %v6128_v62  ;;  %v5896_v47 = vpack.c.bf16 %v6134_v60, %v6133_v57 }
0x19d9   :  { %v2845_v25 = vpop.permute.xlu1 %2844 }
0x19da   :  { %5888 = vmatprep.subr.msk.bf16.mxu1 %vm6616_vm2, %v5886_v63 }
0x19db   :  { %5891 = vmatpush3.bf16.xpose.msk.msra.mxu1 %vm6616_vm2, %v5886_v63 }
0x19dc   :  { %5898 = vmatprep.subr.msk.bf16.mxu1 %vm6616_vm2, %v5896_v47 }
0x19dd   :  { %v2847_v3 = vpop.permute.xlu1 %2846 }
0x19e2   :  { %5553 = vmatmul.mubr.msk.f32.vlgmr.msra.gmra.mrb[24].mxu1 %vm208_vm1, %v7038_v51 }
0x19e3   :  { %5901 = vmatpush3.bf16.xpose.msk.msra.mxu1 %vm6616_vm2, %v5896_v47  ;;  %5566 = vmatprep.mubr.msk.f32.mxu1 %vm208_vm1, %v2845_v25 }
0x19ea   :  { %5567 = vmatmul.mubr.msk.f32.vlgmr.msra.gmra.mrb[26].mxu1 %vm208_vm1, %v2847_v3 }
0x1ab5   :  { %v5554_v2 = vpop.f32.mrb[24].mxu1 }
0x1ab6   :  { %v2730_v6 = vadd.f32 %v7071_v4, %v5554_v2  ;;  %v2724_v7 = vpop.f32.mrb[25].mxu1 }
0x1ab7   :  { %v2725_v29 = vadd.f32 %v7077_v8, %v2724_v7 }
0x1ab8   :  { %v2736_v10 = vsel %vm292_vm3, %v2730_v6, -inf }
0x1ab9   :  { %2737 = vmax.xlane.f32.xlu1 %v2736_v10  ;;  %v2733_v34 = vsel %vm292_vm3, %v2725_v29, -inf }
0x1aba   :  { %2734 = vmax.xlane.f32.xlu0 %v2733_v34 }
0x1abd   :  { %v5568_v11 = vpop.f32.mrb[26].mxu1 }
0x1abe   :  { %v2926_v48 = vpop.f32.mrb[27].mxu1  ;;  %v2932_v17 = vadd.f32 %v7071_v4, %v5568_v11 }
0x1abf   :  { %v2927_v15 = vadd.f32 %v7077_v8, %v2926_v48 }
0x1ac0   :  { %v2938_v19 = vsel %vm292_vm3, %v2932_v17, -inf }
0x1ac1   :  { %v2935_v18 = vsel %vm292_vm3, %v2927_v15, -inf }
0x1ac2   :  { %2936 = vmax.xlane.f32.xlu0 %v2935_v18 }
0x1ac6   :  { %2939 = vmax.xlane.f32.xlu0 %v2938_v19 }
0x1b46   :  { %v2738_v20 = vpop.xlane.xlu1 %2737 }
0x1b47   :  { %v2740_v21 = vsub.f32 %v2730_v6, %v2738_v20  ;;  %v2735_v22 = vpop.xlane.xlu0 %2734 }
0x1b48   :  { %v2739_v23 = vsub.f32 %v2725_v29, %v2735_v22 }
0x1b49   :  { %v2743_v24 = vmul.f32 1.442695, %v2740_v21 }
0x1b4a   :  { %v2741_v46 = vmul.f32 1.442695, %v2739_v23 }
0x1b4b   :  { %6294 = vpow2.f32 %v2743_v24 }
0x1b4c   :  { %6296 = vpow2.f32 %v2741_v46 }
0x1b4f   :  { %v2937_v14 = vpop.xlane.xlu0 %2936 }
0x1b50   :  { %v2941_v1 = vsub.f32 %v2927_v15, %v2937_v14 }
0x1b52   :  { %v2943_v36 = vmul.f32 1.442695, %v2941_v1 }
0x1b53   :  { %v2940_v9 = vpop.xlane.xlu0 %2939 }
0x1b54   :  { %6298 = vpow2.f32 %v2943_v36  ;;  %v2942_v12 = vsub.f32 %v2932_v17, %v2940_v9 }
0x1b55   :  { %v6295_v13 = vpop.eup %6294 }
0x1b56   :  { %v6297_v42 = vpop.eup %6296  ;;  %v2945_v44 = vmul.f32 1.442695, %v2942_v12  ;;  %v2748_v40 = vsel %vm292_vm3, %v6295_v13, 0.0 }
0x1b57   :  { %2749 = vadd.xlane.f32.xlu1 %v2748_v40  ;;  %v2745_v32 = vsel %vm292_vm3, %v6297_v42, 0.0 }
0x1b58   :  { %6300 = vpow2.f32 %v2945_v44  ;;  %2746 = vadd.xlane.f32.xlu0 %v2745_v32 }
0x1b5e   :  { %v6299_v33 = vpop.eup %6298 }
0x1b5f   :  { %v2947_v35 = vsel %vm292_vm3, %v6299_v33, 0.0 }
0x1b60   :  { %2948 = vadd.xlane.f32.xlu0 %v2947_v35 }
0x1b62   :  { %v6301_v37 = vpop.eup %6300 }
0x1b63   :  { %v2950_v38 = vsel %vm292_vm3, %v6301_v37, 0.0 }
0x1b64   :  { %2951 = vadd.xlane.f32.xlu1 %v2950_v38 }
0x1b75   :  { %6141 = vrot.lane.b32.xlu1 %v7046_v56, %s6457_s1 }
0x1b76   :  { %6136 = vrot.lane.b32.xlu0 %v7046_v56, %s6458_s28 }
0x1b79   :  { %6146 = vrot.lane.b32.xlu1 %v7046_v56, %s6459_s30 }
0x1b7a   :  { %3056 = vrot.lane.b32.xlu0 %v7038_v51, %s6460_s9 }
0x1b7d   :  { %3054 = vrot.lane.b32.xlu1 %v7040_v43, %s6460_s9 }
0x1be4   :  { %v2750_v45 = vpop.xlane.xlu1 %2749 }
0x1be5   :  { %v2747_v39 = vpop.xlane.xlu0 %2746 }
0x1be6   :  { %6302 = vrcp.f32 %v2747_v39 }
0x1be7   :  { %6304 = vrcp.f32 %v2750_v45 }
0x1bed   :  { %v2949_v49 = vpop.xlane.xlu0 %2948 }
0x1bee   :  { %6306 = vrcp.f32 %v2949_v49 }
0x1bf0   :  { %v6303_v50 = vpop.eup %6302 }
0x1bf1   :  { %v2952_v55 = vpop.xlane.xlu1 %2951  ;;  %v6137_v41 = vpop.permute.xlu0 %6136  ;;  %v2753_v59 = vmul.f32 %v6303_v50, %v6297_v42 }
0x1bf2   :  { %6308 = vrcp.f32 %v2952_v55  ;;  %v6139_v60 = vunpack.i.h.bf16 %v6137_v41  ;;  %v6138_v57 = vunpack.i.l.bf16 %v6137_v41  ;;  %v6305_v62 = vpop.eup %6304 }
0x1bf3   :  { %5559 = vmatprep.mubr.msk.f32.mxu0 %vm292_vm3, %v2753_v59  ;;  %v2754_v2 = vmul.f32 %v6305_v62, %v6295_v13 }
0x1bf4   :  { %v5892_v61 = vpack.c.bf16 %v6139_v60, %v6138_v57 }
0x1bf5   :  { %v6142_v63 = vpop.permute.xlu1 %6141  ;;  %v3057_v18 = vpop.permute.xlu0 %3056 }
0x1bf6   :  { %v6144_v47 = vunpack.i.h.bf16 %v6142_v63  ;;  %v6143_v25 = vunpack.i.l.bf16 %v6142_v63  ;;  %5893 = vmatprep.subr.bf16.mxu0 %v5892_v61 }
0x1bf7   :  { %5895 = vmatpush3.bf16.msra.mxu0 %v5892_v61 }
0x1bf8   :  { %v6307_v3 = vpop.eup %6306  ;;  %v5902_v6 = vpack.c.bf16 %v6144_v47, %v6143_v25  ;;  %v6373_v25 = vld [vmem:[#allocation3] sm:$0xff] }
0x1bf9   :  { %v6147_v7 = vpop.permute.xlu1 %6146  ;;  %v2955_v29 = vmul.f32 %v6307_v3, %v6299_v33 }
0x1bfa   :  { %v6149_v10 = vunpack.i.h.bf16 %v6147_v7  ;;  %v6148_v34 = vunpack.i.l.bf16 %v6147_v7  ;;  %5560 = vmatmul.mubr.msk.f32.vlgmr.msra.gmra.mrb[24].mxu0 %vm292_vm3, %v2754_v2  ;;  %5903 = vmatprep.subr.bf16.mxu0 %v5902_v6 }
0x1bfb   :  { %5905 = vmatpush3.bf16.msra.mxu0 %v5902_v6  ;;  %5573 = vmatprep.mubr.msk.f32.mxu0 %vm292_vm3, %v2955_v29 }
0x1bfc   :  { %v6309_v11 = vpop.eup %6308  ;;  %v5906_v48 = vpack.c.bf16 %v6149_v10, %v6148_v34 }
0x1bfd   :  { %v2956_v15 = vmul.f32 %v6309_v11, %v6301_v37  ;;  %v3055_v17 = vpop.permute.xlu1 %3054 }
0x1bfe   :  { %5908 = vmatprep.subr.msk.bf16.mxu0 %vm6616_vm2, %v5906_v48 }
0x1bff   :  { %5574 = vmatmul.mubr.msk.f32.vlgmr.msra.gmra.mrb[26].mxu0 %vm292_vm3, %v2956_v15 }
0x1c00   :  { %5580 = vmatprep.mubr.msk.f32.mxu0 %vm208_vm1, %v3055_v17 }
0x1c04   :  { %5911 = vmatpush3.bf16.xpose.msk.msra.mxu0 %vm6616_vm2, %v5906_v48 }
0x1c0b   :  { %5581 = vmatmul.mubr.msk.f32.vlgmr.msra.gmra.mrb[28].mxu0 %vm208_vm1, %v3057_v18 }
0x1ccd   :  { %v5561_v19 = vpop.f32.mrb[24].mxu0 }
0x1cce   :  { %2843 = vst.msk [vmem:[#allocation2 + $0x8] sm:$0xff] %vm208_vm1, %v5561_v19  ;;  %v2833_v20 = vpop.f32.mrb[25].mxu0 }
0x1ccf   :  { %2842 = vst.msk [vmem:[#allocation2] sm:$0xff] %vm208_vm1, %v2833_v20 }
0x1cd2   :  { %v7112_v21 = vpop.f32.mrb[26].mxu0 }
0x1cd3   :  { %v7114_v22 = vpop.f32.mrb[27].mxu0 }
0x1cde   :  { %v5582_v23 = vpop.f32.mrb[28].mxu0 }
0x1cdf   :  { %v3142_v24 = vadd.f32 %v7071_v4, %v5582_v23  ;;  %v3136_v46 = vpop.f32.mrb[29].mxu0 }
0x1ce0   :  { %v3137_v14 = vadd.f32 %v7077_v8, %v3136_v46 }
0x1ce1   :  { %v3148_v1 = vsel %vm292_vm3, %v3142_v24, -inf }
0x1ce2   :  { %3149 = vmax.xlane.f32.xlu0 %v3148_v1  ;;  %v3145_v36 = vsel %vm292_vm3, %v3137_v14, -inf }
0x1ce3   :  { %3146 = vmax.xlane.f32.xlu1 %v3145_v36 }
0x1cf4   :  { %6151 = vrot.lane.b32.xlu1 %v7046_v56, %s6461_s10 }
0x1cf8   :  { %3264 = vrot.lane.b32.xlu1 %v7040_v43, %s6462_s11 }
0x1cfc   :  { %3266 = vrot.lane.b32.xlu1 %v7038_v51, %s6462_s11 }
0x1d6f   :  { %v3150_v9 = vpop.xlane.xlu0 %3149 }
0x1d70   :  { %v3152_v12 = vsub.f32 %v3142_v24, %v3150_v9  ;;  %v3147_v13 = vpop.xlane.xlu1 %3146 }
0x1d71   :  { %v3151_v42 = vsub.f32 %v3137_v14, %v3147_v13  ;;  %v7163_v13 = vld [vmem:[%s7453_s3 + $0x68] sm:$0xff] }
0x1d72   :  { %v3155_v44 = vmul.f32 1.442695, %v3152_v12  ;;  %v7158_v12 = vld [vmem:[%s7453_s3 + $0x60] sm:$0xff] }
0x1d73   :  { %v3153_v40 = vmul.f32 1.442695, %v3151_v42  ;;  %v7168_v42 = vld [vmem:[%s7453_s3 + $0x70] sm:$0xff] }
0x1d74   :  { %6310 = vpow2.f32 %v3155_v44  ;;  %v6152_v32 = vpop.permute.xlu1 %6151  ;;  %v6175_v44 = vpack.i.bf16 %v7163_v13, %v7158_v12 }
0x1d75   :  { %v6154_v33 = vunpack.i.h.bf16 %v6152_v32  ;;  %v6153_v35 = vunpack.i.l.bf16 %v6152_v32  ;;  %6312 = vpow2.f32 %v3153_v40  ;;  %v7177_v40 = vld [vmem:[%s7453_s3 + $0x78] sm:$0xff] }
0x1d76   :  { %v6180_v32 = vpack.i.bf16 %v7177_v40, %v7168_v42 }
0x1d77   :  { %v5912_v37 = vpack.c.bf16 %v6154_v33, %v6153_v35  ;;  %v5938_v33 = vpack.c.bf16 %v7177_v40, %v7168_v42  ;;  %v6374_v35 = vld [vmem:[#allocation3 + $0x8] sm:$0xff] }
0x1d78   :  { %v3265_v63 = vpop.permute.xlu1 %3264 }
0x1d79   :  { %5913 = vmatprep.subr.bf16.mxu1 %v5912_v37 }
0x1d7a   :  { %5915 = vmatpush3.bf16.msra.mxu1 %v5912_v37 }
0x1d7c   :  { %v3267_v47 = vpop.permute.xlu1 %3266 }
0x1d7e   :  { %v6311_v38 = vpop.eup %6310 }
0x1d7f   :  { %v3160_v43 = vsel %vm292_vm3, %v6311_v38, 0.0  ;;  %v6313_v39 = vpop.eup %6312 }
0x1d80   :  { %3161 = vadd.xlane.f32.xlu0 %v3160_v43  ;;  %v3157_v51 = vsel %vm292_vm3, %v6313_v39, 0.0 }
0x1d84   :  { %3158 = vadd.xlane.f32.xlu0 %v3157_v51 }
0x1d9a   :  { %6156 = vrot.lane.b32.xlu0 %v7046_v56, %s6463_s0 }
0x1e0d   :  { %v3162_v45 = vpop.xlane.xlu0 %3161 }
0x1e0e   :  { %6314 = vrcp.f32 %v3162_v45 }
0x1e11   :  { %v3159_v49 = vpop.xlane.xlu0 %3158 }
0x1e12   :  { %6316 = vrcp.f32 %v3159_v49 }
0x1e15   :  { %v6157_v50 = vpop.permute.xlu0 %6156 }
0x1e16   :  { %v6159_v55 = vunpack.i.h.bf16 %v6157_v50  ;;  %v6158_v41 = vunpack.i.l.bf16 %v6157_v50  ;;  %v5038_v50 = vld [vmem:[%s7454_s4 + $0x40] sm:$0xff] }
0x1e18   :  { %v5916_v59 = vpack.c.bf16 %v6159_v55, %v6158_v41  ;;  %v6315_v60 = vpop.eup %6314  ;;  %v5039_v55 = vld [vmem:[%s7454_s4 + $0x48] sm:$0xff] }
0x1e19   :  { %v3166_v62 = vmul.f32 %v6315_v60, %v6311_v38  ;;  %v5926_v41 = vpack.c.bf16 %v5039_v55, %v5038_v50  ;;  %v5041_v60 = vld [vmem:[%s7454_s4 + $0x58] sm:$0xff] }
0x1e1a   :  { %5918 = vmatprep.subr.msk.bf16.mxu1 %vm6616_vm2, %v5916_v59  ;;  %v7267_v50 = vld [vmem:[%s7452_s2 + $0x18] sm:$0xff] }
0x1e1c   :  { %v6317_v57 = vpop.eup %6316 }
0x1e1d   :  { %v3165_v61 = vmul.f32 %v6317_v57, %v6313_v39 }
0x1e1f   :  { %5587 = vmatprep.mubr.msk.f32.mxu1 %vm292_vm3, %v3165_v61  ;;  %v7203_v61 = vld [vmem:[%s7457_s7 + $0x18] sm:$0xf] }
0x1e20   :  { %5588 = vmatmul.mubr.msk.f32.vlgmr.msra.gmra.mrb[28].mxu1 %vm292_vm3, %v3166_v62 }
0x1e21   :  { %5921 = vmatpush3.bf16.xpose.msk.msra.mxu1 %vm6616_vm2, %v5916_v59  ;;  %5594 = vmatprep.mubr.msk.f32.mxu1 %vm208_vm1, %v3265_v63  ;;  %v5040_v59 = vld [vmem:[%s7454_s4 + $0x50] sm:$0xff]  ;;  %v7207_v63 = vrot.slane %v7203_v61, %v6576_v28 }
0x1e22   :  { %v5930_v57 = vpack.c.bf16 %v5041_v60, %v5040_v59 }
0x1e28   :  { %5595 = vmatmul.mubr.msk.f32.vlgmr.msra.gmra.mrb[30].mxu1 %vm208_vm1, %v3267_v47 }
0x1e29   :  { %5623 = vmatprep.mubr.msk.f32.mxu1 %vm69_vm0, %v6373_v25 }
0x1ef3   :  { %v5589_v3 = vpop.f32.mrb[28].mxu1 }
0x1ef4   :  { %v3245_v2 = vpop.f32.mrb[29].mxu1 }
0x1efb   :  { %v5596_v6 = vpop.f32.mrb[30].mxu1 }
0x1efc   :  { %v3352_v7 = vadd.f32 %v7071_v4, %v5596_v6  ;;  %v3346_v29 = vpop.f32.mrb[31].mxu1 }
0x1efd   :  { %v3347_v10 = vadd.f32 %v7077_v8, %v3346_v29 }
0x1efe   :  { %v3358_v34 = vsel %vm292_vm3, %v3352_v7, -inf }
0x1eff   :  { %3359 = vmax.xlane.f32.xlu0 %v3358_v34  ;;  %v3355_v11 = vsel %vm292_vm3, %v3347_v10, -inf }
0x1f00   :  { %3356 = vmax.xlane.f32.xlu1 %v3355_v11 }
0x1f11   :  { %6161 = vrot.lane.b32.xlu1 %v7046_v56, %s6464_s5 }
0x1f15   :  { %3048 = vrot.lane.b32.xlu1 %v7112_v21, %s6452_s16 }
0x1f19   :  { %3256 = vrot.lane.b32.xlu1 %v3245_v2, %s6465_s12 }
0x1f1d   :  { %3258 = vrot.lane.b32.xlu1 %v5589_v3, %s6465_s12 }
0x1f8c   :  { %v3360_v4 = vpop.xlane.xlu0 %3359 }
0x1f8d   :  { %v3362_v48 = vsub.f32 %v3352_v7, %v3360_v4  ;;  %v3357_v15 = vpop.xlane.xlu1 %3356 }
0x1f8e   :  { %v3361_v8 = vsub.f32 %v3347_v10, %v3357_v15 }
0x1f8f   :  { %v3365_v17 = vmul.f32 1.442695, %v3362_v48 }
0x1f90   :  { %v3363_v18 = vmul.f32 1.442695, %v3361_v8 }
0x1f91   :  { %v6162_v19 = vpop.permute.xlu1 %6161 }
0x1f92   :  { %6318 = vpow2.f32 %v3363_v18  ;;  %v6164_v20 = vunpack.i.h.bf16 %v6162_v19  ;;  %v6163_v23 = vunpack.i.l.bf16 %v6162_v19 }
0x1f93   :  { %6320 = vpow2.f32 %v3365_v17 }
0x1f94   :  { %v5922_v24 = vpack.c.bf16 %v6164_v20, %v6163_v23  ;;  %v3479_v20 = vrot.slane %v7027_v31, %v1041_v58 }
0x1f95   :  { %v3049_v56 = vpop.permute.xlu1 %3048 }
0x1f96   :  { %3053 = vst.msk [vmem:[#allocation2 + $0x8] sm:$0xff] %vm612_vm4, %v3049_v56  ;;  %5923 = vmatprep.subr.bf16.mxu0 %v5922_v24 }
0x1f97   :  { %5925 = vmatpush3.bf16.msra.mxu0 %v5922_v24 }
0x1f98   :  { %5927 = vmatprep.subr.bf16.mxu0 %v5926_v41 }
0x1f99   :  { %v3257_v21 = vpop.permute.xlu1 %3256 }
0x1f9c   :  { %v6319_v46 = vpop.eup %6318 }
0x1f9d   :  { %v3259_v14 = vpop.permute.xlu1 %3258  ;;  %v3367_v1 = vsel %vm292_vm3, %v6319_v46, 0.0  ;;  %v6321_v36 = vpop.eup %6320 }
0x1f9e   :  { %3263 = vst.msk [vmem:[#allocation2 + $0x8] sm:$0xff] %vm823_vm5, %v3259_v14  ;;  %3368 = vadd.xlane.f32.xlu0 %v3367_v1  ;;  %v3370_v9 = vsel %vm292_vm3, %v6321_v36, 0.0 }
0x1fa2   :  { %3371 = vadd.xlane.f32.xlu0 %v3370_v9 }
0x1fb8   :  { %3046 = vrot.lane.b32.xlu0 %v7114_v22, %s6452_s16  ;;  %v5934_v22 = vpack.c.bf16 %v7163_v13, %v7158_v12 }
0x1fba   :  { %5935 = vmatprep.subr.bf16.mxu1 %v5934_v22 }
0x1fbb   :  { %5937 = vmatpush3.bf16.msra.mxu1 %v5934_v22 }
0x1fbc   :  { %5939 = vmatprep.subr.bf16.mxu1 %v5938_v33 }
0x1fbf   :  { %5941 = vmatpush3.bf16.msra.mxu1 %v5938_v33 }
0x1fc2   :  { %5624 = vmatmul.mubr.msk.f32.vlgmr.msra.gmra.mrb[32].mxu1 %vm69_vm0, %v6374_v35 }
0x202b   :  { %v3369_v37 = vpop.xlane.xlu0 %3368 }
0x202c   :  { %6322 = vrcp.f32 %v3369_v37 }
0x202f   :  { %v3372_v38 = vpop.xlane.xlu0 %3371 }
0x2030   :  { %6324 = vrcp.f32 %v3372_v38 }
0x2033   :  { %v3047_v43 = vpop.permute.xlu0 %3046 }
0x2034   :  { %3052 = vst.msk [vmem:[#allocation2] sm:$0xff] %vm612_vm4, %v3047_v43 }
0x2035   :  { %3262 = vst.msk [vmem:[#allocation2] sm:$0xff] %vm823_vm5, %v3257_v21 }
0x2036   :  { %v6323_v39 = vpop.eup %6322 }
0x2037   :  { %v3375_v51 = vmul.f32 %v6323_v39, %v6319_v46 }
0x2039   :  { %5601 = vmatprep.mubr.msk.f32.mxu0 %vm292_vm3, %v3375_v51 }
0x203a   :  { %v6325_v45 = vpop.eup %6324 }
0x203b   :  { %v3376_v49 = vmul.f32 %v6325_v45, %v6321_v36 }
0x203d   :  { %5602 = vmatmul.mubr.msk.f32.vlgmr.msra.gmra.mrb[30].mxu0 %vm292_vm3, %v3376_v49 }
0x203e   :  { %5929 = vmatpush3.bf16.msra.mxu0 %v5926_v41  ;;  %v7273_v41 = vld [vmem:[%s7452_s2 + $0x10] sm:$0xff] }
0x203f   :  { %5931 = vmatprep.subr.bf16.mxu0 %v5930_v57 }
0x2042   :  { %5933 = vmatpush3.bf16.msra.mxu0 %v5930_v57 }
0x2095   :  { %v5625_v62 = vpop.f32.mrb[32].mxu1 }
0x2096   :  { %v3681_v47 = vpop.f32.mrb[33].mxu1  ;;  %v7211_v2 = vadd.f32 %v5625_v62, %v7207_v63 }
0x2097   :  { %v7214_v6 = vadd.f32 %v3681_v47, %v7207_v63 }
0x2099   :  { %v7219_v7 = vpack.i.bf16 %v7211_v2, %v7214_v6  ;;  %5641 = vmatprep.mubr.msk.f32.mxu1 %vm208_vm1, %v7214_v6 }
0x2110   :  { %v5603_v25 = vpop.f32.mrb[30].mxu0 }
0x2111   :  { %3468 = vrot.lane.b32.xlu1 %v5603_v25, %s6466_s25  ;;  %v3455_v3 = vpop.f32.mrb[31].mxu0 }
0x2112   :  { %3466 = vrot.lane.b32.xlu0 %v3455_v3, %s6466_s25 }
0x2116   :  { %6166 = vrot.lane.b32.xlu0 %v7219_v7, %s6455_s23 }
0x211a   :  { %6171 = vrot.lane.b32.xlu0 %v7219_v7, %s6454_s22 }
0x2183   :  { %v3469_v28 = vpop.permute.xlu1 %3468 }
0x2184   :  { %3473 = vst.msk [vmem:[#allocation2 + $0x8] sm:$0xff] %vm1034_vm6, %v3469_v28  ;;  %v3467_v29 = vpop.permute.xlu0 %3466 }
0x2185   :  { %3472 = vst.msk [vmem:[#allocation2] sm:$0xff] %vm1034_vm6, %v3467_v29 }
0x2188   :  { %v6167_v10 = vpop.permute.xlu0 %6166 }
0x2189   :  { %v6169_v34 = vunpack.i.h.bf16 %v6167_v10  ;;  %v6168_v11 = vunpack.i.l.bf16 %v6167_v10 }
0x218b   :  { %v5950_v4 = vpack.c.bf16 %v6169_v34, %v6168_v11  ;;  %v3475_v15 = vld [vmem:[#allocation2 + $0x8] sm:$0xff]  ;;  %v3592_v11 = vrot.slane %v7027_v31, %v6838_v52 }
0x218c   :  { %v3474_v48 = vld [vmem:[#allocation2] sm:$0xff]  ;;  %v6172_v8 = vpop.permute.xlu0 %6171 }
0x218d   :  { %5612 = vmatprep.mubr.msk.f32.mxu0 %vm69_vm0, %v3474_v48  ;;  %5952 = vmatprep.subr.msk.bf16.mxu1 %vm6616_vm2, %v5950_v4  ;;  %v6174_v17 = vunpack.i.h.bf16 %v6172_v8  ;;  %v6173_v18 = vunpack.i.l.bf16 %v6172_v8 }
0x218e   :  { %5613 = vmatmul.mubr.msk.f32.vlgmr.msra.gmra.mrb[32].mxu0 %vm69_vm0, %v3475_v15  ;;  %5955 = vmatpush3.bf16.xpose.msk.msra.mxu1 %vm6616_vm2, %v5950_v4 }
0x218f   :  { %v5960_v19 = vpack.c.bf16 %v6174_v17, %v6173_v18  ;;  %v3598_v17 = vrot.slane %v7027_v31, %v6841_v53 }
0x2191   :  { %5962 = vmatprep.subr.msk.bf16.mxu1 %vm6616_vm2, %v5960_v19 }
0x2195   :  { %5642 = vmatmul.mubr.msk.f32.vlgmr.msra.gmra.mrb[34].mxu1 %vm208_vm1, %v7211_v2 }
0x2196   :  { %5965 = vmatpush3.bf16.xpose.msk.msra.mxu1 %vm6616_vm2, %v5960_v19 }
0x2261   :  { %v5614_v23 = vpop.f32.mrb[32].mxu0 }
0x2262   :  { %v3558_v24 = vadd.f32 %v5614_v23, %v3479_v20  ;;  %v3552_v56 = vpop.f32.mrb[33].mxu0 }
0x2263   :  { %v3553_v21 = vadd.f32 %v3552_v56, %v3479_v20 }
0x2264   :  { %v3562_v46 = vadd.f32 %v3558_v24, %v7000_v5 }
0x2265   :  { %v3561_v14 = vadd.f32 %v3553_v21, %v7002_v27 }
0x2266   :  { %v3566_v1 = vsel %vm69_vm0, %v3562_v46, 0.0 }
0x2267   :  { %3567 = vadd.xlane.f32.xlu0 %v3566_v1  ;;  %v3563_v36 = vsel %vm69_vm0, %v3561_v14, 0.0 }
0x2268   :  { %3564 = vadd.xlane.f32.xlu1 %v3563_v36  ;;  %v5643_v58 = vpop.f32.mrb[34].mxu1 }
0x2269   :  { %v3871_v9 = vpop.f32.mrb[35].mxu1  ;;  %v3877_v55 = vadd.f32 %v7267_v50, %v5643_v58 }
0x226a   :  { %v3872_v42 = vadd.f32 %v7273_v41, %v3871_v9 }
0x226b   :  { %v3883_v40 = vsel %vm292_vm3, %v3877_v55, -inf }
0x226c   :  { %v3880_v12 = vsel %vm292_vm3, %v3872_v42, -inf }
0x2279   :  { %3987 = vrot.lane.b32.xlu1 %v7211_v2, %s6456_s24 }
0x227d   :  { %3985 = vrot.lane.b32.xlu0 %v7214_v6, %s6456_s24 }
0x22f4   :  { %v3568_v22 = vpop.xlane.xlu0 %3567 }
0x22f5   :  { %v3570_v33 = vmul.f32 0.03125, %v3568_v22  ;;  %v3565_v35 = vpop.xlane.xlu1 %3564 }
0x22f6   :  { %v3569_v5 = vmul.f32 0.03125, %v3565_v35 }
0x22f7   :  { %v3572_v37 = vsub.f32 %v3562_v46, %v3570_v33 }
0x22f8   :  { %v3571_v27 = vsub.f32 %v3561_v14, %v3569_v5  ;;  %v3986_v38 = vpop.permute.xlu0 %3985 }
0x22f9   :  { %5655 = vmatprep.mubr.msk.f32.mxu1 %vm208_vm1, %v3986_v38  ;;  %v3988_v43 = vpop.permute.xlu1 %3987  ;;  %v3574_v39 = vmul.f32 %v3572_v37, %v3572_v37 }
0x22fa   :  { %5656 = vmatmul.mubr.msk.f32.vlgmr.msra.gmra.mrb[36].mxu1 %vm208_vm1, %v3988_v43  ;;  %v3573_v51 = vmul.f32 %v3571_v27, %v3571_v27 }
0x22fb   :  { %v3578_v45 = vsel %vm69_vm0, %v3574_v39, 0.0 }
0x22fc   :  { %3579 = vadd.xlane.f32.xlu0 %v3578_v45  ;;  %v3575_v49 = vsel %vm69_vm0, %v3573_v51, 0.0 }
0x22fd   :  { %3576 = vadd.xlane.f32.xlu1 %v3575_v49 }
0x230e   :  { %6181 = vrot.lane.b32.xlu1 %v6180_v32, %s6458_s28 }
0x2312   :  { %6176 = vrot.lane.b32.xlu0 %v6175_v44, %s6458_s28 }
0x2331   :  { %3884 = vmax.xlane.f32.xlu0 %v3883_v40 }
0x2332   :  { %3881 = vmax.xlane.f32.xlu1 %v3880_v12 }
0x2389   :  { %v3580_v13 = vpop.xlane.xlu0 %3579 }
0x238a   :  { %v3582_v44 = vmul.f32 0.03125, %v3580_v13  ;;  %v3577_v32 = vpop.xlane.xlu1 %3576 }
0x238b   :  { %v3581_v59 = vmul.f32 0.03125, %v3577_v32 }
0x238c   :  { %v3584_v60 = vadd.f32 1e-05, %v3582_v44 }
0x238d   :  { %v3583_v57 = vadd.f32 1e-05, %v3581_v59  ;;  %v6177_v62 = vpop.permute.xlu0 %6176 }
0x238e   :  { %6326 = vrsqrt.f32 %v3584_v60  ;;  %v6179_v47 = vunpack.i.h.bf16 %v6177_v62  ;;  %v6178_v25 = vunpack.i.l.bf16 %v6177_v62  ;;  %v6182_v3 = vpop.permute.xlu1 %6181 }
0x238f   :  { %6328 = vrsqrt.f32 %v3583_v57  ;;  %v6184_v28 = vunpack.i.h.bf16 %v6182_v3  ;;  %v6183_v29 = vunpack.i.l.bf16 %v6182_v3 }
0x2390   :  { %v5942_v10 = vpack.c.bf16 %v6179_v47, %v6178_v25 }
0x2391   :  { %v5946_v34 = vpack.c.bf16 %v6184_v28, %v6183_v29 }
0x2392   :  { %5943 = vmatprep.subr.bf16.mxu0 %v5942_v10 }
0x2393   :  { %5945 = vmatpush3.bf16.msra.mxu0 %v5942_v10 }
0x2394   :  { %5947 = vmatprep.subr.bf16.mxu0 %v5946_v34 }
0x2397   :  { %5949 = vmatpush3.bf16.msra.mxu0 %v5946_v34 }
0x2398   :  { %v6327_v4 = vpop.eup %6326 }
0x2399   :  { %v6329_v48 = vpop.eup %6328  ;;  %v3588_v15 = vmul.f32 %v6327_v4, %v3572_v37 }
0x239a   :  { %v3587_v8 = vmul.f32 %v6329_v48, %v3571_v27 }
0x239b   :  { %v3594_v18 = vmul.f32 %v3592_v11, %v3588_v15 }
0x239c   :  { %v3593_v19 = vmul.f32 %v3592_v11, %v3587_v8 }
0x239d   :  { %v7284_v23 = vadd.f32 %v3598_v17, %v3594_v18 }
0x239e   :  { %v7282_v20 = vadd.f32 %v3598_v17, %v3593_v19 }
0x23a0   :  { %5634 = vmatprep.mubr.msk.f32.mxu0 %vm69_vm0, %v7282_v20 }
0x23a1   :  { %5635 = vmatmul.mubr.msk.f32.vlgmr.msra.gmra.mrb[34].mxu0 %vm69_vm0, %v7284_v23 }
0x23be   :  { %v3885_v56 = vpop.xlane.xlu0 %3884 }
0x23bf   :  { %v3882_v24 = vpop.xlane.xlu1 %3881  ;;  %v3887_v46 = vsub.f32 %v3877_v55, %v3885_v56 }
0x23c0   :  { %v3886_v21 = vsub.f32 %v3872_v42, %v3882_v24 }
0x23c1   :  { %v3890_v1 = vmul.f32 1.442695, %v3887_v46 }
0x23c2   :  { %v3888_v14 = vmul.f32 1.442695, %v3886_v21 }
0x23c4   :  { %6330 = vpow2.f32 %v3888_v14 }
0x23c5   :  { %6332 = vpow2.f32 %v3890_v1 }
0x23cd   :  { %v5657_v31 = vpop.f32.mrb[36].mxu1 }
0x23ce   :  { %v4073_v36 = vadd.f32 %v7267_v50, %v5657_v31  ;;  %v4067_v58 = vpop.f32.mrb[37].mxu1  ;;  %v6331_v33 = vpop.eup %6330 }
0x23cf   :  { %v4068_v9 = vadd.f32 %v7273_v41, %v4067_v58  ;;  %v3892_v5 = vsel %vm292_vm3, %v6331_v33, 0.0  ;;  %v6333_v37 = vpop.eup %6332 }
0x23d0   :  { %v4079_v22 = vsel %vm292_vm3, %v4073_v36, -inf  ;;  %v3895_v27 = vsel %vm292_vm3, %v6333_v37, 0.0 }
0x23d1   :  { %4080 = vmax.xlane.f32.xlu1 %v4079_v22  ;;  %v4076_v35 = vsel %vm292_vm3, %v4068_v9, -inf }
0x23d2   :  { %4077 = vmax.xlane.f32.xlu0 %v4076_v35 }
0x23d5   :  { %3893 = vadd.xlane.f32.xlu1 %v3892_v5 }
0x23d9   :  { %3896 = vadd.xlane.f32.xlu1 %v3895_v27 }
0x23e8   :  { %3707 = vrot.lane.b32.xlu0 %v7207_v63, %s6458_s28 }
0x23ec   :  { %6191 = vrot.lane.b32.xlu0 %v7219_v7, %s6459_s30 }
0x23f0   :  { %4197 = vrot.lane.b32.xlu0 %v7214_v6, %s6460_s9 }
0x23f4   :  { %4199 = vrot.lane.b32.xlu0 %v7211_v2, %s6460_s9 }
0x245e   :  { %v4081_v38 = vpop.xlane.xlu1 %4080 }
0x245f   :  { %v4083_v43 = vsub.f32 %v4073_v36, %v4081_v38  ;;  %v4078_v39 = vpop.xlane.xlu0 %4077 }
0x2460   :  { %v4082_v51 = vsub.f32 %v4068_v9, %v4078_v39 }
0x2461   :  { %v4086_v45 = vmul.f32 1.442695, %v4083_v43 }
0x2462   :  { %v4084_v49 = vmul.f32 1.442695, %v4082_v51  ;;  %v3894_v55 = vpop.xlane.xlu1 %3893 }
0x2463   :  { %v3708_v59 = vpop.permute.xlu0 %3707 }
0x2464   :  { %6334 = vpow2.f32 %v4084_v49 }
0x2465   :  { %6336 = vrcp.f32 %v3894_v55 }
0x2466   :  { %6338 = vpow2.f32 %v4086_v45  ;;  %v3897_v63 = vpop.xlane.xlu1 %3896 }
0x2467   :  { %6340 = vrcp.f32 %v3897_v63  ;;  %v6192_v11 = vpop.permute.xlu0 %6191 }
0x2468   :  { %v6194_v48 = vunpack.i.h.bf16 %v6192_v11  ;;  %v6193_v15 = vunpack.i.l.bf16 %v6192_v11 }
0x246a   :  { %v5970_v56 = vpack.c.bf16 %v6194_v48, %v6193_v15 }
0x246b   :  { %v4198_v14 = vpop.permute.xlu0 %4197 }
0x246e   :  { %v6335_v42 = vpop.eup %6334 }
0x246f   :  { %v6337_v40 = vpop.eup %6336  ;;  %v4088_v12 = vsel %vm292_vm3, %v6335_v42, 0.0  ;;  %v4200_v1 = vpop.permute.xlu0 %4199 }
0x2470   :  { %v6339_v13 = vpop.eup %6338  ;;  %4089 = vadd.xlane.f32.xlu1 %v4088_v12  ;;  %v3900_v44 = vmul.f32 %v6337_v40, %v6331_v33 }
0x2471   :  { %v4091_v32 = vsel %vm292_vm3, %v6339_v13, 0.0  ;;  %v6341_v28 = vpop.eup %6340 }
0x2472   :  { %5648 = vmatprep.mubr.msk.f32.mxu0 %vm292_vm3, %v3900_v44  ;;  %v3901_v29 = vmul.f32 %v6341_v28, %v6333_v37 }
0x2474   :  { %4092 = vadd.xlane.f32.xlu1 %v4091_v32  ;;  %v5636_v60 = vpop.f32.mrb[34].mxu0 }
0x2475   :  { %v3788_v57 = vadd.f32 %v5636_v60, %v3708_v59  ;;  %v3782_v62 = vpop.f32.mrb[35].mxu0 }
0x2476   :  { %v3783_v47 = vadd.f32 %v3782_v62, %v3708_v59 }
0x2478   :  { %v5956_v25 = vpack.c.bf16 %v3788_v57, %v3783_v47  ;;  %v7307_v3 = vpack.i.bf16 %v3788_v57, %v3783_v47 }
0x247a   :  { %5957 = vmatprep.subr.bf16.mxu0 %v5956_v25 }
0x247b   :  { %5959 = vmatpush3.bf16.msra.mxu0 %v5956_v25 }
0x247e   :  { %5649 = vmatmul.mubr.msk.f32.vlgmr.msra.gmra.mrb[36].mxu0 %vm292_vm3, %v3901_v29 }
0x2485   :  { %6186 = vrot.lane.b32.xlu1 %v7307_v3, %s6456_s24 }
0x24fd   :  { %v4090_v10 = vpop.xlane.xlu1 %4089 }
0x24fe   :  { %6342 = vrcp.f32 %v4090_v10 }
0x2501   :  { %v4093_v34 = vpop.xlane.xlu1 %4092 }
0x2502   :  { %6344 = vrcp.f32 %v4093_v34 }
0x2505   :  { %v6187_v4 = vpop.permute.xlu1 %6186 }
0x2506   :  { %v6189_v8 = vunpack.i.h.bf16 %v6187_v4  ;;  %v6188_v17 = vunpack.i.l.bf16 %v6187_v4 }
0x2508   :  { %v6343_v18 = vpop.eup %6342  ;;  %v5966_v19 = vpack.c.bf16 %v6189_v8, %v6188_v17 }
0x2509   :  { %v4096_v24 = vmul.f32 %v6343_v18, %v6335_v42 }
0x250a   :  { %5967 = vmatprep.subr.bf16.mxu0 %v5966_v19 }
0x250b   :  { %5969 = vmatpush3.bf16.msra.mxu0 %v5966_v19  ;;  %5662 = vmatprep.mubr.msk.f32.mxu0 %vm292_vm3, %v4096_v24 }
0x250c   :  { %v6345_v21 = vpop.eup %6344  ;;  %5972 = vmatprep.subr.msk.bf16.mxu0 %vm6616_vm2, %v5970_v56 }
0x250d   :  { %v4097_v46 = vmul.f32 %v6345_v21, %v6339_v13 }
0x250f   :  { %5663 = vmatmul.mubr.msk.f32.vlgmr.msra.gmra.mrb[38].mxu0 %vm292_vm3, %v4097_v46 }
0x2510   :  { %5669 = vmatprep.mubr.msk.f32.mxu0 %vm208_vm1, %v4198_v14 }
0x2514   :  { %5975 = vmatpush3.bf16.xpose.msk.msra.mxu0 %vm6616_vm2, %v5970_v56 }
0x251b   :  { %5670 = vmatmul.mubr.msk.f32.vlgmr.msra.gmra.mrb[40].mxu0 %vm208_vm1, %v4200_v1 }
0x2551   :  { %v5650_v31 = vpop.f32.mrb[36].mxu0 }
0x2552   :  { %3984 = vst.msk [vmem:[#allocation2 + $0x8] sm:$0xff] %vm208_vm1, %v5650_v31  ;;  %v3974_v36 = vpop.f32.mrb[37].mxu0 }
0x2553   :  { %3983 = vst.msk [vmem:[#allocation2] sm:$0xff] %vm208_vm1, %v3974_v36 }
0x25e2   :  { %v7322_v58 = vpop.f32.mrb[38].mxu0 }
0x25e3   :  { %v7324_v9 = vpop.f32.mrb[39].mxu0 }
0x25ee   :  { %v5671_v22 = vpop.f32.mrb[40].mxu0 }
0x25ef   :  { %v4285_v33 = vadd.f32 %v7267_v50, %v5671_v22  ;;  %v4279_v35 = vpop.f32.mrb[41].mxu0 }
0x25f0   :  { %v4280_v5 = vadd.f32 %v7273_v41, %v4279_v35 }
0x25f1   :  { %v4291_v37 = vsel %vm292_vm3, %v4285_v33, -inf }
0x25f2   :  { %4292 = vmax.xlane.f32.xlu0 %v4291_v37  ;;  %v4288_v27 = vsel %vm292_vm3, %v4280_v5, -inf }
0x25f3   :  { %4289 = vmax.xlane.f32.xlu1 %v4288_v27 }
0x2604   :  { %6196 = vrot.lane.b32.xlu1 %v7307_v3, %s6460_s9 }
0x2608   :  { %4407 = vrot.lane.b32.xlu1 %v7214_v6, %s6462_s11 }
0x260c   :  { %4409 = vrot.lane.b32.xlu1 %v7211_v2, %s6462_s11 }
0x267f   :  { %v4293_v38 = vpop.xlane.xlu0 %4292 }
0x2680   :  { %v4295_v43 = vsub.f32 %v4285_v33, %v4293_v38  ;;  %v4290_v39 = vpop.xlane.xlu1 %4289 }
0x2681   :  { %v4294_v51 = vsub.f32 %v4280_v5, %v4290_v39 }
0x2682   :  { %v4298_v45 = vmul.f32 1.442695, %v4295_v43 }
0x2683   :  { %v4296_v49 = vmul.f32 1.442695, %v4294_v51 }
0x2684   :  { %6346 = vpow2.f32 %v4298_v45  ;;  %v6197_v55 = vpop.permute.xlu1 %6196  ;;  %v5075_v45 = vld [vmem:[%s7454_s4 + $0x68] sm:$0xff] }
0x2685   :  { %v6199_v63 = vunpack.i.h.bf16 %v6197_v55  ;;  %v6198_v42 = vunpack.i.l.bf16 %v6197_v55  ;;  %6348 = vpow2.f32 %v4296_v49  ;;  %v5076_v55 = vld [vmem:[%s7454_s4 + $0x70] sm:$0xff] }
0x2687   :  { %v5976_v40 = vpack.c.bf16 %v6199_v63, %v6198_v42  ;;  %v5077_v63 = vld [vmem:[%s7454_s4 + $0x78] sm:$0xff] }
0x2688   :  { %v4408_v10 = vpop.permute.xlu1 %4407  ;;  %v5994_v42 = vpack.c.bf16 %v5077_v63, %v5076_v55  ;;  %v5117_v55 = vld [vmem:[%s7456_s6 + $0x78] sm:$0xff] }
0x2689   :  { %5977 = vmatprep.subr.bf16.mxu1 %v5976_v40 }
0x268a   :  { %5979 = vmatpush3.bf16.msra.mxu1 %v5976_v40 }
0x268e   :  { %v6347_v12 = vpop.eup %6346 }
0x268f   :  { %v4303_v6 = vsel %vm292_vm3, %v6347_v12, 0.0  ;;  %v6349_v13 = vpop.eup %6348 }
0x2690   :  { %4304 = vadd.xlane.f32.xlu0 %v4303_v6  ;;  %v4300_v2 = vsel %vm292_vm3, %v6349_v13, 0.0 }
0x2694   :  { %4301 = vadd.xlane.f32.xlu0 %v4300_v2 }
0x26aa   :  { %6201 = vrot.lane.b32.xlu0 %v7219_v7, %s6463_s0  ;;  %v4410_v7 = vpop.permute.xlu1 %4409 }
0x271d   :  { %v4305_v44 = vpop.xlane.xlu0 %4304 }
0x271e   :  { %6350 = vrcp.f32 %v4305_v44 }
0x2721   :  { %v4302_v32 = vpop.xlane.xlu0 %4301 }
0x2722   :  { %6352 = vrcp.f32 %v4302_v32  ;;  %v4622_v32 = vrot.slane %v7203_v61, %v6584_v30 }
0x2725   :  { %v6202_v59 = vpop.permute.xlu0 %6201 }
0x2726   :  { %v6204_v60 = vunpack.i.h.bf16 %v6202_v59  ;;  %v6203_v57 = vunpack.i.l.bf16 %v6202_v59 }
0x2728   :  { %v5980_v62 = vpack.c.bf16 %v6204_v60, %v6203_v57  ;;  %v6351_v47 = vpop.eup %6350 }
0x2729   :  { %v4309_v29 = vmul.f32 %v6351_v47, %v6347_v12 }
0x272a   :  { %5982 = vmatprep.subr.msk.bf16.mxu1 %vm6616_vm2, %v5980_v62 }
0x272c   :  { %v6353_v25 = vpop.eup %6352 }
0x272d   :  { %v4308_v28 = vmul.f32 %v6353_v25, %v6349_v13 }
0x272f   :  { %5676 = vmatprep.mubr.msk.f32.mxu1 %vm292_vm3, %v4308_v28 }
0x2730   :  { %5677 = vmatmul.mubr.msk.f32.vlgmr.msra.gmra.mrb[38].mxu1 %vm292_vm3, %v4309_v29 }
0x2731   :  { %5985 = vmatpush3.bf16.xpose.msk.msra.mxu1 %vm6616_vm2, %v5980_v62  ;;  %5683 = vmatprep.mubr.msk.f32.mxu1 %vm208_vm1, %v4408_v10 }
0x2738   :  { %5684 = vmatmul.mubr.msk.f32.vlgmr.msra.gmra.mrb[40].mxu1 %vm208_vm1, %v4410_v7 }
0x2803   :  { %v5678_v34 = vpop.f32.mrb[38].mxu1 }
0x2804   :  { %v4388_v11 = vpop.f32.mrb[39].mxu1 }
0x280b   :  { %v5685_v4 = vpop.f32.mrb[40].mxu1 }
0x280c   :  { %v4495_v48 = vadd.f32 %v7267_v50, %v5685_v4  ;;  %v4489_v15 = vpop.f32.mrb[41].mxu1 }
0x280d   :  { %v4490_v8 = vadd.f32 %v7273_v41, %v4489_v15 }
0x280e   :  { %v4501_v17 = vsel %vm292_vm3, %v4495_v48, -inf }
0x280f   :  { %4502 = vmax.xlane.f32.xlu0 %v4501_v17  ;;  %v4498_v18 = vsel %vm292_vm3, %v4490_v8, -inf  ;;  %v4746_v17 = vld [vmem:[#allocation6 + $0x28] sm:$0xff] }
0x2810   :  { %4499 = vmax.xlane.f32.xlu1 %v4498_v18 }
0x2821   :  { %6206 = vrot.lane.b32.xlu1 %v7307_v3, %s6462_s11 }
0x2825   :  { %4191 = vrot.lane.b32.xlu1 %v7322_v58, %s6452_s16 }
0x2829   :  { %4399 = vrot.lane.b32.xlu1 %v4388_v11, %s6465_s12 }
0x282d   :  { %4401 = vrot.lane.b32.xlu1 %v5678_v34, %s6465_s12 }
0x289c   :  { %v4503_v54 = vpop.xlane.xlu0 %4502 }
0x289d   :  { %v4505_v50 = vsub.f32 %v4495_v48, %v4503_v54  ;;  %v4500_v19 = vpop.xlane.xlu1 %4499  ;;  %v4747_v54 = vld [vmem:[#allocation6 + $0x30] sm:$0xff] }
0x289e   :  { %v4504_v41 = vsub.f32 %v4490_v8, %v4500_v19 }
0x289f   :  { %v4508_v24 = vmul.f32 1.442695, %v4505_v50  ;;  %v4748_v50 = vld [vmem:[#allocation6 + $0x38] sm:$0xff] }
0x28a0   :  { %v4506_v56 = vmul.f32 1.442695, %v4504_v41  ;;  %v6002_v19 = vpack.c.bf16 %v4748_v50, %v4747_v54 }
0x28a1   :  { %v6207_v21 = vpop.permute.xlu1 %6206 }
0x28a2   :  { %6354 = vpow2.f32 %v4506_v56  ;;  %v6209_v46 = vunpack.i.h.bf16 %v6207_v21  ;;  %v6208_v14 = vunpack.i.l.bf16 %v6207_v21 }
0x28a3   :  { %6356 = vpow2.f32 %v4508_v24 }
0x28a4   :  { %v5986_v1 = vpack.c.bf16 %v6209_v46, %v6208_v14 }
0x28a5   :  { %v4192_v3 = vpop.permute.xlu1 %4191 }
0x28a6   :  { %4196 = vst.msk [vmem:[#allocation2 + $0x8] sm:$0xff] %vm612_vm4, %v4192_v3  ;;  %5987 = vmatprep.subr.bf16.mxu0 %v5986_v1 }
0x28a7   :  { %5989 = vmatpush3.bf16.msra.mxu0 %v5986_v1  ;;  %v6377_v1 = vld [vmem:[%s7457_s7 + $0x10] sm:$0xff] }
0x28a8   :  { %v4735_v3 = vrot.slane %v6377_v1, %v2303_v16  ;;  %v5111_v16 = vld [vmem:[%s7456_s6 + $0x48] sm:$0xff] }
0x28a9   :  { %v4400_v31 = vpop.permute.xlu1 %4399 }
0x28ac   :  { %v6355_v36 = vpop.eup %6354 }
0x28ad   :  { %v4402_v58 = vpop.permute.xlu1 %4401  ;;  %v4510_v22 = vsel %vm292_vm3, %v6355_v36, 0.0  ;;  %v6357_v33 = vpop.eup %6356 }
0x28ae   :  { %4406 = vst.msk [vmem:[#allocation2 + $0x8] sm:$0xff] %vm823_vm5, %v4402_v58  ;;  %4511 = vadd.xlane.f32.xlu0 %v4510_v22  ;;  %v4513_v35 = vsel %vm292_vm3, %v6357_v33, 0.0  ;;  %v4741_v58 = vrot.slane %v6377_v1, %v2309_v0  ;;  %v5112_v0 = vld [vmem:[%s7456_s6 + $0x50] sm:$0xff] }
0x28b2   :  { %4514 = vadd.xlane.f32.xlu0 %v4513_v35 }
0x28c8   :  { %4189 = vrot.lane.b32.xlu0 %v7324_v9, %s6452_s16  ;;  %v5074_v9 = vld [vmem:[%s7454_s4 + $0x60] sm:$0xff] }
0x28c9   :  { %v5990_v49 = vpack.c.bf16 %v5075_v45, %v5074_v9  ;;  %v5115_v9 = vld [vmem:[%s7456_s6 + $0x68] sm:$0xff] }
0x28cb   :  { %5991 = vmatprep.subr.bf16.mxu0 %v5990_v49 }
0x293b   :  { %v4512_v5 = vpop.xlane.xlu0 %4511 }
0x293c   :  { %6358 = vrcp.f32 %v4512_v5 }
0x293f   :  { %v4515_v37 = vpop.xlane.xlu0 %4514 }
0x2940   :  { %6360 = vrcp.f32 %v4515_v37 }
0x2943   :  { %v4190_v27 = vpop.permute.xlu0 %4189 }
0x2944   :  { %4195 = vst.msk [vmem:[#allocation2] sm:$0xff] %vm612_vm4, %v4190_v27 }
0x2945   :  { %4405 = vst.msk [vmem:[#allocation2] sm:$0xff] %vm823_vm5, %v4400_v31 }
0x2946   :  { %v6359_v38 = vpop.eup %6358 }
0x2947   :  { %v4518_v43 = vmul.f32 %v6359_v38, %v6355_v36  ;;  %v5110_v38 = vld [vmem:[%s7456_s6 + $0x40] sm:$0xff] }
0x2948   :  { %v6006_v26 = vpack.c.bf16 %v5111_v16, %v5110_v38 }
0x2949   :  { %5690 = vmatprep.mubr.msk.f32.mxu0 %vm292_vm3, %v4518_v43  ;;  %v5113_v43 = vld [vmem:[%s7456_s6 + $0x58] sm:$0xff] }
0x294a   :  { %v6361_v39 = vpop.eup %6360 }
0x294b   :  { %v4519_v51 = vmul.f32 %v6361_v39, %v6357_v33  ;;  %v6010_v39 = vpack.c.bf16 %v5113_v43, %v5112_v0 }
0x294d   :  { %5691 = vmatmul.mubr.msk.f32.vlgmr.msra.gmra.mrb[42].mxu0 %vm292_vm3, %v4519_v51  ;;  %v5114_v51 = vld [vmem:[%s7456_s6 + $0x60] sm:$0xff] }
0x294e   :  { %5993 = vmatpush3.bf16.msra.mxu0 %v5990_v49  ;;  %v6014_v45 = vpack.c.bf16 %v5115_v9, %v5114_v51  ;;  %v5116_v49 = vld [vmem:[%s7456_s6 + $0x70] sm:$0xff]  ;;  %s6467_s6 = smov [#allocation8]  }
0x294f   :  { %5995 = vmatprep.subr.bf16.mxu0 %v5994_v42  ;;  %v6018_v63 = vpack.c.bf16 %v5117_v55, %v5116_v49  ;;  %s4947_s18 = sshll.u32 %s6467_s6, 4  ;;  %s4948_s18 = int_to_ptr.vmem [resolvable:$true] %s4947_s18 }
0x2950   :  { %s6422_s2 = scalar_lea.vmem %s4948_s18, 256  ;;  %p6427_p3 = scmp.lt.s32.totalorder %s4948_s18, %s4948_s18 }
0x2951   :  { %p6423_p2 = scmp.ne.s32.totalorder %s4948_s18, %s6422_s2  ;;  %p6428_p4 = scmp.lt.s32.totalorder %s6422_s2, %s6422_s2 }
0x2952   :  { %5997 = vmatpush3.bf16.msra.mxu0 %v5994_v42  ;;  %v4752_v42 = vrot.slane %v7203_v61, %v6838_v52  ;;  %v4856_v52 = vrot.slane %v7203_v61, %v6841_v53 }
0x2953   :  { %6007 = vmatprep.subr.bf16.mxu0 %v6006_v26  ;;  %p6429_p5 = por %p6428_p4, %p6427_p3 }
0x2955   :  { %p6430_p6 = pnand %p6429_p5, %p6423_p2 }
0x2a20   :  { %v5692_v40 = vpop.f32.mrb[42].mxu0 }
0x2a21   :  { %4611 = vrot.lane.b32.xlu1 %v5692_v40, %s6466_s25  ;;  %v4598_v12 = vpop.f32.mrb[43].mxu0 }
0x2a22   :  { %4609 = vrot.lane.b32.xlu0 %v4598_v12, %s6466_s25 }
0x2a93   :  { %v4612_v6 = vpop.permute.xlu1 %4611 }
0x2a94   :  { %4616 = vst.msk [vmem:[#allocation2 + $0x8] sm:$0xff] %vm1034_vm6, %v4612_v6  ;;  %v4610_v13 = vpop.permute.xlu0 %4609 }
0x2a95   :  { %4615 = vst.msk [vmem:[#allocation2] sm:$0xff] %vm1034_vm6, %v4610_v13 }
0x2a9b   :  { %v4618_v44 = vld [vmem:[#allocation2 + $0x8] sm:$0xff] }
0x2a9c   :  { %v4617_v2 = vld [vmem:[#allocation2] sm:$0xff] }
0x2a9d   :  { %5701 = vmatprep.mubr.msk.f32.mxu0 %vm69_vm0, %v4617_v2 }
0x2a9e   :  { %5702 = vmatmul.mubr.msk.f32.vlgmr.msra.gmra.mrb[44].mxu0 %vm69_vm0, %v4618_v44 }
0x2a9f   :  { %6009 = vmatpush3.bf16.msra.mxu0 %v6006_v26 }
0x2aa0   :  { %6011 = vmatprep.subr.bf16.mxu0 %v6010_v39 }
0x2aa3   :  { %6013 = vmatpush3.bf16.msra.mxu0 %v6010_v39 }
0x2aa4   :  { %6015 = vmatprep.subr.bf16.mxu0 %v6014_v45 }
0x2aa7   :  { %6017 = vmatpush3.bf16.msra.mxu0 %v6014_v45 }
0x2aa8   :  { %6019 = vmatprep.subr.bf16.mxu0 %v6018_v63 }
0x2aab   :  { %6021 = vmatpush3.bf16.msra.mxu0 %v6018_v63 }
0x2b71   :  { %v5703_v59 = vpop.f32.mrb[44].mxu0 }
0x2b72   :  { %v4701_v60 = vadd.f32 %v5703_v59, %v4622_v32  ;;  %v4695_v57 = vpop.f32.mrb[45].mxu0 }
0x2b73   :  { %v4696_v62 = vadd.f32 %v4695_v57, %v4622_v32 }
0x2b74   :  { %v4705_v47 = vadd.f32 %v4701_v60, %v7284_v23 }
0x2b75   :  { %v4704_v25 = vadd.f32 %v4696_v62, %v7282_v20  ;;  %v4745_v20 = vld [vmem:[#allocation6 + $0x20] sm:$0xff] }
0x2b76   :  { %v4709_v28 = vsel %vm69_vm0, %v4705_v47, 0.0  ;;  %v5998_v18 = vpack.c.bf16 %v4746_v17, %v4745_v20 }
0x2b77   :  { %4710 = vadd.xlane.f32.xlu1 %v4709_v28  ;;  %v4706_v29 = vsel %vm69_vm0, %v4704_v25, 0.0 }
0x2b78   :  { %4707 = vadd.xlane.f32.xlu0 %v4706_v29  ;;  %5999 = vmatprep.subr.bf16.mxu1 %v5998_v18 }
0x2b79   :  { %6001 = vmatpush3.bf16.msra.mxu1 %v5998_v18 }
0x2b7a   :  { %6003 = vmatprep.subr.bf16.mxu1 %v6002_v19 }
0x2b7d   :  { %6005 = vmatpush3.bf16.msra.mxu1 %v6002_v19 }
0x2c04   :  { %v4711_v10 = vpop.xlane.xlu1 %4710 }
0x2c05   :  { %v4713_v7 = vmul.f32 0.03125, %v4711_v10  ;;  %v4708_v34 = vpop.xlane.xlu0 %4707 }
0x2c06   :  { %v4712_v11 = vmul.f32 0.03125, %v4708_v34 }
0x2c07   :  { %v4715_v4 = vsub.f32 %v4705_v47, %v4713_v7 }
0x2c08   :  { %v4714_v30 = vsub.f32 %v4704_v25, %v4712_v11 }
0x2c09   :  { %v4717_v8 = vmul.f32 %v4715_v4, %v4715_v4 }
0x2c0a   :  { %v4716_v48 = vmul.f32 %v4714_v30, %v4714_v30 }
0x2c0b   :  { %v4721_v23 = vsel %vm69_vm0, %v4717_v8, 0.0 }
0x2c0c   :  { %v4718_v15 = vsel %vm69_vm0, %v4716_v48, 0.0 }
0x2c0d   :  { %4719 = vadd.xlane.f32.xlu0 %v4718_v15 }
0x2c11   :  { %4722 = vadd.xlane.f32.xlu0 %v4721_v23 }
0x2c9a   :  { %v4720_v41 = vpop.xlane.xlu0 %4719 }
0x2c9b   :  { %v4724_v24 = vmul.f32 0.03125, %v4720_v41 }
0x2c9d   :  { %v4726_v56 = vadd.f32 1e-05, %v4724_v24 }
0x2c9e   :  { %v4723_v21 = vpop.xlane.xlu0 %4722 }
0x2c9f   :  { %6362 = vrsqrt.f32 %v4726_v56  ;;  %v4725_v46 = vmul.f32 0.03125, %v4723_v21 }
0x2ca1   :  { %v4727_v14 = vadd.f32 1e-05, %v4725_v46 }
0x2ca3   :  { %6364 = vrsqrt.f32 %v4727_v14 }
0x2ca9   :  { %v6363_v31 = vpop.eup %6362 }
0x2caa   :  { %v4730_v36 = vmul.f32 %v6363_v31, %v4714_v30 }
0x2cac   :  { %v4736_v22 = vmul.f32 %v4735_v3, %v4730_v36 }
0x2cad   :  { %v6365_v33 = vpop.eup %6364 }
0x2cae   :  { %v4731_v35 = vmul.f32 %v6365_v33, %v4715_v4  ;;  %v4742_v5 = vadd.f32 %v4741_v58, %v4736_v22 }
0x2cb0   :  { %v4737_v37 = vmul.f32 %v4735_v3, %v4731_v35  ;;  %5712 = vmatprep.mubr.msk.f32.mxu1 %vm69_vm0, %v4742_v5 }
0x2cb2   :  { %v4743_v27 = vadd.f32 %v4741_v58, %v4737_v37 }
0x2cb4   :  { %5713 = vmatmul.mubr.msk.f32.vlgmr.msra.gmra.mrb[42].mxu1 %vm69_vm0, %v4743_v27 }
0x2d87   :  { %v5714_v40 = vpop.f32.mrb[42].mxu1 }
0x2d88   :  { %v4831_v12 = vadd.f32 %v5714_v40, %v4752_v42  ;;  %v4825_v6 = vpop.f32.mrb[43].mxu1 }
0x2d89   :  { %v4826_v13 = vadd.f32 %v4825_v6, %v4752_v42 }
0x2d8a   :  { %v4837_v2 = vmul.f32 0.70710677, %v4831_v12  ;;  %v4835_v47 = vmul.f32 0.5, %v4831_v12 }
0x2d8b   :  { %v4836_v44 = vmul.f32 0.70710677, %v4826_v13  ;;  %v4834_v57 = vmul.f32 0.5, %v4826_v13 }
0x2d8c   :  { %6366 = verf.f32 %v4837_v2 }
0x2d8d   :  { %6368 = verf.f32 %v4836_v44 }
0x2d96   :  { %v6367_v32 = vpop.eup %6366 }
0x2d97   :  { %v6369_v59 = vpop.eup %6368  ;;  %v4841_v60 = vadd.f32 1.0, %v6367_v32 }
0x2d98   :  { %v4840_v62 = vadd.f32 1.0, %v6369_v59 }
0x2d99   :  { %v4843_v28 = vmul.f32 %v4841_v60, %v4835_v47 }
0x2d9a   :  { %v4842_v25 = vmul.f32 %v4840_v62, %v4834_v57 }
0x2d9c   :  { %5731 = vmatprep.mubr.msk.f32.mxu0 %vm2424_vm7, %v4842_v25 }
0x2d9d   :  { %5732 = vmatmul.mubr.msk.f32.vlgmr.msra.gmra.mrb[46].mxu0 %vm2424_vm7, %v4843_v28 }
0x2e70   :  { %v5733_v29 = vpop.f32.mrb[46].mxu0 }
0x2e71   :  { %v4935_v10 = vadd.f32 %v5733_v29, %v4856_v52  ;;  %v4929_v7 = vpop.f32.mrb[47].mxu0 }
0x2e72   :  { %v4930_v34 = vadd.f32 %v4929_v7, %v4856_v52 }
0x2e73   :  { %v4939_v11 = vadd.f32 %v4935_v10, %v4743_v27 }
0x2e74   :  { %v4938_v4 = vadd.f32 %v4930_v34, %v4742_v5 }
0x2e75   :  { %4941 = vst.msk [vmem:[#allocation8 + $0x8] sm:$0xff] %vm69_vm0, %v4939_v11 }
0x2e76   :  { %4940 = vst.msk [vmem:[#allocation8] sm:$0xff] %vm69_vm0, %v4938_v4 }
0x2e77   :  { %6433 = shalt.err (!%p6430_p6)
}
0x2e78   :  { %s6434_s30 = scalar_lea.hbm %s7458_s8, 256 }
0x2e79   :  { %p6435_p7 = scmp.ne.s32.totalorder %s7458_s8, %s6434_s30  ;;  %p6438_p8 = scmp.lt.u32.totalorder %s6434_s30, %s7458_s8 }
0x2e7b   :  { %p6440_p9 = pnand %p6438_p8, %p6435_p7 }
0x2e7d   :  { %6443 = shalt.err (!%p6440_p9)
}
0x2e7e   :  { %4953 = dma.vmem_to_hbm [thread:$0]  %s4948_s18, 256, %s7458_s8, [#allocation5], %s6451_s15, %s6451_s15, %s6452_s16  }
0x2e7f   :  { %6448 = dma.done.wait [#allocation5], 256  }
0x2e80   :  { %6449 = vsyncadd [#allocation5], 4294967040 }
0x2e81   :  { %4957 = vsyncpa [#allocation4], 1 }
0x2e82   :  { %4958 = vsyncpa [#allocation7], 1 }
0x2e83   :  { %4959 = vsyncpa [#allocation5], 1 }

</bundles_post_ra>
